<compile_context>
chip_gen: v6e
topology: v6e:2x2x1
jax: 0.10.0
libtpu: 0.0.40
codegen_flags: <defaults>
</compile_context>

<pallas_src>
import functools
import math

import jax
import jax.numpy as jnp
from jax.experimental import pallas as pl
from jax.experimental.pallas import tpu as pltpu

K = 5               # kernel_size of every conv layer
PAD = K // 2        # 'same' padding for stride=1, odd kernel
N_LAYERS = 6
C_MAX = 64          # widest layer
CHANNELS_TAIL = [16, 32, 64, 32, 16, 1]


def _round_up(a, b):
    return (a + b - 1) // b * b


def _make_fused_kernel(layer_dims, tl, le, seq_len, halo, mm_dtype):
    """Fused 6x(conv k=5 'same' + PReLU) for one (batch, L-tile) grid step."""
    n_layers = len(layer_dims)

    def kernel(*refs):
        x_ref = refs[0]                     # (1, 1, c_in, le)      mm_dtype
        w_refs = refs[1:1 + n_layers]       # (cout, K*cin)         mm_dtype
        b_ref = refs[1 + n_layers]          # (C_MAX, n_layers)     f32
        a_ref = refs[2 + n_layers]          # (n_layers,) SMEM      f32
        o_ref = refs[3 + n_layers]          # (1, 1, tl)            f32
        act_ref = refs[4 + n_layers]        # (2, C_MAX, le)        mm_dtype
        xcol_ref = refs[5 + n_layers]       # (K*C_MAX, le)         mm_dtype

        t = pl.program_id(1)
        base = t * tl - halo                # global pos of window column 0

        # PReLU alphas: read all SMEM scalars once, up front.
        alphas = [a_ref[j] for j in range(n_layers)]

        # Hoisted position vector / validity mask; only consumed on edge tiles.
        pos = base + jax.lax.broadcasted_iota(jnp.int32, (1, le), 1)
        in_range = jnp.logical_and(pos >= 0, pos < seq_len)
        is_edge = jnp.logical_or(base < 0, base + le > seq_len)

        cur = 0                             # act slot holding this layer's input
        width = le
        for j, (cin, cout) in enumerate(layer_dims):
            width -= 2 * PAD                # output width of this layer

            if j == 0:
                # cin <= 2: degenerate contraction -> VPU broadcast FMA straight
                # from the input window (skip im2col / MXU).
                wj = w_refs[0][...].astype(jnp.float32)          # (cout, K*cin)
                y = jnp.zeros((cout, width), jnp.float32)
                for k in range(K):
                    xk = x_ref[0, 0, :, k:k + width].astype(jnp.float32)
                    for ci in range(cin):
                        col = k * cin + ci
                        y = y + wj[:, col:col + 1] * xk[ci:ci + 1, :]
            else:
                # im2col: K shifted slices of the previous activation, stacked
                # at sublane-aligned row offsets k*cin (cin in {16,32,64}).
                for k in range(K):
                    xcol_ref[k * cin:(k + 1) * cin, 0:width] = (
                        act_ref[cur, 0:cin, k:k + width])
                # One MXU matmul per layer: contraction K*cin (80..320),
                # mm_dtype operands, f32 accumulation.
                y = jnp.dot(w_refs[j][...], xcol_ref[0:K * cin, 0:width],
                            preferred_element_type=jnp.float32)

            y = y + b_ref[0:cout, j:j + 1]                       # bias   (f32)
            y = jnp.where(y > 0, y, alphas[j] * y)               # PReLU  (f32)

            if j == n_layers - 1:
                # width == tl here: lane-dense final store.
                o_ref[0] = y.astype(o_ref.dtype)
            else:
                nxt = 1 - cur
                act_ref[nxt, 0:cout, 0:width] = y.astype(mm_dtype)

                # 'same' zero padding across the fused stack: re-zero columns
                # whose global position lies outside [0, seq_len).  Only the
                # first/last tile of a sequence can have such columns, so
                # interior tiles skip this entirely.
                @pl.when(is_edge)
                def _():
                    ok = in_range[:, 2 * (j + 1):2 * (j + 1) + width]
                    act_ref[nxt, 0:cout, 0:width] = (
                        jnp.where(ok, y, 0.0).astype(mm_dtype))

                cur = nxt

    return kernel


@functools.partial(jax.jit, static_argnames=("tile_l", "matmul_dtype"))
def simple_conv1d_forward(x, params, tile_l=512, matmul_dtype=jnp.bfloat16):
    """Equivalent of SimpleConv1D.forward.  x: (N, L, input_dim) -> (N, L, 1)."""
    n, seq_len, c_in = x.shape
    assert tile_l % 128 == 0 and tile_l >= 128

    layer_dims = [(w.shape[2], w.shape[1]) for (w, _, _) in params]
    n_layers = len(layer_dims)
    assert layer_dims[0][0] == c_in and c_in <= 4
    assert max(co for _, co in layer_dims) <= C_MAX
    for a, b in zip(layer_dims[:-1], layer_dims[1:]):
        assert a[1] == b[0] and a[1] % 8 == 0

    # --- tiling -----------------------------------------------------------
    l128 = _round_up(seq_len, 128)
    tl = min(tile_l, l128)
    if n == 1 and l128 >= 256:
        # Keep >= 2 L-tiles so both v7x TensorCores get work when batch == 1.
        tl = min(tl, max(128, (l128 // 2) // 128 * 128))
    l_pad = _round_up(seq_len, tl)
    n_tiles = l_pad // tl
    halo = n_layers * PAD                   # 12: fused-stencil halo
    le = tl + 2 * halo

    # --- host-side prep ---------------------------------------------------
    # Channel-first; zero-pad halo + tail once, then pre-extract the per-tile
    # halo'd windows so the in-kernel copy is a plain auto-pipelined BlockSpec.
    xt = jnp.transpose(x.astype(jnp.float32), (0, 2, 1))          # (N, C, L)
    xp = jnp.pad(xt, ((0, 0), (0, 0), (halo, halo + l_pad - seq_len)))
    xp = xp.astype(matmul_dtype)
    xw = jnp.stack([xp[:, :, t * tl:t * tl + le] for t in range(n_tiles)],
                   axis=1)                                        # (N, T, C, le)

    # Weights reshaped on the host for im2col: W[co, k*cin + ci] = w[k, co, ci].
    w_augs = []
    for (w, _, _) in params:
        kk, cout, cin = w.shape
        w_augs.append(jnp.transpose(w, (1, 0, 2)).reshape(cout, kk * cin)
                      .astype(matmul_dtype))
    b_all = jnp.zeros((C_MAX, n_layers), jnp.float32)
    a_all = jnp.zeros((n_layers,), jnp.float32)
    for i, (_, b, alpha) in enumerate(params):
        b_all = b_all.at[:b.shape[0], i].set(b.astype(jnp.float32))
        a_all = a_all.at[i].set(jnp.asarray(alpha, jnp.float32))

    kernel = _make_fused_kernel(layer_dims, tl, le, seq_len, halo, matmul_dtype)

    out = pl.pallas_call(
        kernel,
        out_shape=jax.ShapeDtypeStruct((n, 1, l_pad), jnp.float32),
        grid=(n, n_tiles),
        in_specs=[pl.BlockSpec((1, 1, c_in, le), lambda i, j: (i, j, 0, 0))]
        + [pl.BlockSpec(w.shape, lambda i, j: (0, 0)) for w in w_augs]
        + [pl.BlockSpec((C_MAX, n_layers), lambda i, j: (0, 0)),
           pl.BlockSpec(memory_space=pltpu.MemorySpace.SMEM)],     # alphas
        out_specs=pl.BlockSpec((1, 1, tl), lambda i, j: (i, 0, j)),
        scratch_shapes=[
            pltpu.VMEM((2, C_MAX, le), matmul_dtype),      # act ping-pong
            pltpu.VMEM((K * C_MAX, le), matmul_dtype),     # im2col buffer
        ],
        compiler_params=pltpu.CompilerParams(
            dimension_semantics=("parallel", "parallel")),
    )(xw, *w_augs, b_all, a_all)

    return jnp.transpose(out[:, :, :seq_len], (0, 2, 1))          # (N, L, 1)


def init_params(key, input_dim=1):
    """Deterministic init mirroring torch Conv1d defaults (uniform +/-1/sqrt(fan_in))
    and PReLU default alpha=0.25.  Weights stored as (K, Cout, Cin)."""
    channels = [input_dim] + CHANNELS_TAIL
    params = []
    for i in range(N_LAYERS):
        cin, cout = channels[i], channels[i + 1]
        key, kw, kb = jax.random.split(key, 3)
        bound = 1.0 / math.sqrt(cin * K)
        w = jax.random.uniform(kw, (K, cout, cin), jnp.float32, -bound, bound)
        b = jax.random.uniform(kb, (cout,), jnp.float32, -bound, bound)
        params.append((w, b, jnp.float32(0.25)))
    return params


def reference_forward(x, params, matmul_dtype=jnp.float32):
    """Pure-JAX reference.  With matmul_dtype=bfloat16 it mirrors the kernel's
    quantization points (conv operands bf16, f32 accumulation, f32 bias/PReLU)."""
    h = jnp.transpose(x.astype(jnp.float32), (0, 2, 1))           # (N, C, L)
    for (w, b, alpha) in params:
        kk, cout, cin = w.shape
        nb, _, length = h.shape
        hp = jnp.pad(h, ((0, 0), (0, 0), (PAD, PAD))).astype(matmul_dtype)
        wq = w.astype(matmul_dtype)
        acc = jnp.zeros((nb, cout, length), jnp.float32)
        for k in range(kk):
            acc = acc + jnp.einsum("oc,ncl->nol", wq[k],
                                   hp[:, :, k:k + length],
                                   preferred_element_type=jnp.float32)
        y = acc + b[None, :, None].astype(jnp.float32)
        h = jnp.where(y > 0, y, alpha * y)
    return jnp.transpose(h, (0, 2, 1))


if __name__ == "__main__":
    key = jax.random.PRNGKey(0)
    kp, kx1, kx2, kx3 = jax.random.split(key, 4)

    # Case 1: default model (input_dim=1), small shapes, single tile.
    x1 = jax.random.normal(kx1, (2, 16, 1), jnp.float32)
    p1 = init_params(kp, input_dim=1)
    out1 = jax.block_until_ready(simple_conv1d_forward(x1, p1))
    ref1 = reference_forward(x1, p1, matmul_dtype=jnp.bfloat16)
    ref1_f32 = reference_forward(x1, p1)
    assert out1.shape == (2, 16, 1)
    assert jnp.allclose(out1, ref1, atol=1e-3, rtol=1e-3), \
        float(jnp.max(jnp.abs(out1 - ref1)))
    assert jnp.allclose(out1, ref1_f32, atol=1e-1, rtol=1e-1), \
        float(jnp.max(jnp.abs(out1 - ref1_f32)))

    # Case 2: param=True variant (input_dim=2), multi-tile + boundary masking.
    x2 = jax.random.normal(kx2, (1, 200, 2), jnp.float32)
    p2 = init_params(kp, input_dim=2)
    out2 = jax.block_until_ready(simple_conv1d_forward(x2, p2, tile_l=128))
    ref2 = reference_forward(x2, p2, matmul_dtype=jnp.bfloat16)
    assert out2.shape == (1, 200, 1)
    assert jnp.allclose(out2, ref2, atol=1e-3, rtol=1e-3), \
        float(jnp.max(jnp.abs(out2 - ref2)))

    # Case 3: longer sequence, default tile -> interior tiles skip masking;
    # also exercise the exact-f32 fallback path.
    x3 = jax.random.normal(kx3, (1, 2000, 1), jnp.float32)
    out3 = jax.block_until_ready(simple_conv1d_forward(x3, p1))
    ref3 = reference_forward(x3, p1, matmul_dtype=jnp.bfloat16)
    assert out3.shape == (1, 2000, 1)
    assert jnp.allclose(out3, ref3, atol=1e-3, rtol=1e-3), \
        float(jnp.max(jnp.abs(out3 - ref3)))

    out3f = jax.block_until_ready(
        simple_conv1d_forward(x3, p1, matmul_dtype=jnp.float32))
    ref3f = reference_forward(x3, p1)
    assert jnp.allclose(out3f, ref3f, atol=1e-3, rtol=1e-3), \
        float(jnp.max(jnp.abs(out3f - ref3f)))

    print("KERNEL_OK")
</pallas_src>

<mosaic_0001>
module attributes {stable_mosaic.version = 11 : i64} {
  func.func @kernel(%arg0: i32, %arg1: i32, %arg2: memref<1x1x1x152xbf16, #tpu.memory_space<vmem>>, %arg3: memref<16x5xbf16, #tpu.memory_space<vmem>>, %arg4: memref<32x80xbf16, #tpu.memory_space<vmem>>, %arg5: memref<64x160xbf16, #tpu.memory_space<vmem>>, %arg6: memref<32x320xbf16, #tpu.memory_space<vmem>>, %arg7: memref<16x160xbf16, #tpu.memory_space<vmem>>, %arg8: memref<1x80xbf16, #tpu.memory_space<vmem>>, %arg9: memref<64x6xf32, #tpu.memory_space<vmem>>, %arg10: memref<6xf32, #tpu.memory_space<smem>>, %arg11: memref<1x1x128xf32, #tpu.memory_space<vmem>>, %arg12: memref<2x64x152xbf16, #tpu.memory_space<vmem>>, %arg13: memref<320x152xbf16, #tpu.memory_space<vmem>>) attributes {dimension_semantics = [#tpu.dimension_semantics<parallel>, #tpu.dimension_semantics<parallel>], iteration_bounds = array<i64: 2, 1>, scalar_prefetch = 0 : i64, scratch_operands = 2 : i64, tpu.core_type = #tpu.core_type<tc>, window_params = [{transform_indices = @transform_0, window_bounds = array<i64: 1, 1, 1, 152>}, {pipeline_mode = #tpu.pipeline_mode<synchronous>, transform_indices = @transform_1, window_bounds = array<i64: 16, 5>}, {pipeline_mode = #tpu.pipeline_mode<synchronous>, transform_indices = @transform_2, window_bounds = array<i64: 32, 80>}, {pipeline_mode = #tpu.pipeline_mode<synchronous>, transform_indices = @transform_3, window_bounds = array<i64: 64, 160>}, {pipeline_mode = #tpu.pipeline_mode<synchronous>, transform_indices = @transform_4, window_bounds = array<i64: 32, 320>}, {pipeline_mode = #tpu.pipeline_mode<synchronous>, transform_indices = @transform_5, window_bounds = array<i64: 16, 160>}, {pipeline_mode = #tpu.pipeline_mode<synchronous>, transform_indices = @transform_6, window_bounds = array<i64: 1, 80>}, {pipeline_mode = #tpu.pipeline_mode<synchronous>, transform_indices = @transform_7, window_bounds = array<i64: 64, 6>}, {transform_indices = @transform_8, window_bounds = array<i64: 6>}, {transform_indices = @transform_9, window_bounds = array<i64: 1, 1, 128>}]} {
    %c128_i32 = arith.constant 128 : i32
    %0 = arith.muli %arg1, %c128_i32 : i32
    %c12_i32 = arith.constant 12 : i32
    %1 = arith.subi %0, %c12_i32 : i32
    %c0 = arith.constant 0 : index
    %2 = memref.load %arg10[%c0] : memref<6xf32, #tpu.memory_space<smem>>
    %c1 = arith.constant 1 : index
    %3 = memref.load %arg10[%c1] : memref<6xf32, #tpu.memory_space<smem>>
    %c2 = arith.constant 2 : index
    %4 = memref.load %arg10[%c2] : memref<6xf32, #tpu.memory_space<smem>>
    %c3 = arith.constant 3 : index
    %5 = memref.load %arg10[%c3] : memref<6xf32, #tpu.memory_space<smem>>
    %c4 = arith.constant 4 : index
    %6 = memref.load %arg10[%c4] : memref<6xf32, #tpu.memory_space<smem>>
    %c5 = arith.constant 5 : index
    %7 = memref.load %arg10[%c5] : memref<6xf32, #tpu.memory_space<smem>>
    %8 = tpu.iota {dimensions = array<i32: 1>} : vector<1x152xi32>
    %9 = vector.broadcast %1 : i32 to vector<1x152xi32>
    %10 = arith.addi %9, %8 : vector<1x152xi32>
    %c0_i32 = arith.constant 0 : i32
    %11 = vector.broadcast %c0_i32 : i32 to vector<1x152xi32>
    %12 = arith.cmpi sge, %10, %11 : vector<1x152xi32>
    %c16_i32 = arith.constant 16 : i32
    %13 = vector.broadcast %c16_i32 : i32 to vector<1x152xi32>
    %14 = arith.cmpi slt, %10, %13 : vector<1x152xi32>
    %15 = arith.andi %12, %14 : vector<1x152xi1>
    %c0_i32_0 = arith.constant 0 : i32
    %16 = arith.cmpi slt, %1, %c0_i32_0 : i32
    %c152_i32 = arith.constant 152 : i32
    %17 = arith.addi %1, %c152_i32 : i32
    %c16_i32_1 = arith.constant 16 : i32
    %18 = arith.cmpi sgt, %17, %c16_i32_1 : i32
    %19 = arith.ori %16, %18 : i1
    %c0_2 = arith.constant 0 : index
    %c0_3 = arith.constant 0 : index
    %20 = vector.load %arg3[%c0_2, %c0_3] : memref<16x5xbf16, #tpu.memory_space<vmem>>, vector<16x5xbf16>
    %21 = arith.extf %20 : vector<16x5xbf16> to vector<16x5xf32>
    %cst = arith.constant 0.000000e+00 : f32
    %22 = vector.broadcast %cst : f32 to vector<16x148xf32>
    %c0_4 = arith.constant 0 : index
    %c0_5 = arith.constant 0 : index
    %c0_6 = arith.constant 0 : index
    %c0_7 = arith.constant 0 : index
    %23 = vector.load %arg2[%c0_4, %c0_5, %c0_6, %c0_7] : memref<1x1x1x152xbf16, #tpu.memory_space<vmem>>, vector<1x1x1x148xbf16>
    %24 = vector.shape_cast %23 : vector<1x1x1x148xbf16> to vector<1x148xbf16>
    %25 = arith.extf %24 : vector<1x148xbf16> to vector<1x148xf32>
    %26 = vector.extract_strided_slice %21 {offsets = [0, 0], sizes = [16, 1], strides = [1, 1]} : vector<16x5xf32> to vector<16x1xf32>
    %27 = vector.broadcast %26 : vector<16x1xf32> to vector<16x148xf32>
    %28 = vector.broadcast %25 : vector<1x148xf32> to vector<16x148xf32>
    %29 = arith.mulf %27, %28 : vector<16x148xf32>
    %30 = arith.addf %22, %29 : vector<16x148xf32>
    %c0_8 = arith.constant 0 : index
    %c0_9 = arith.constant 0 : index
    %c0_10 = arith.constant 0 : index
    %c1_11 = arith.constant 1 : index
    %31 = vector.load %arg2[%c0_8, %c0_9, %c0_10, %c1_11] : memref<1x1x1x152xbf16, #tpu.memory_space<vmem>>, vector<1x1x1x148xbf16>
    %32 = vector.shape_cast %31 : vector<1x1x1x148xbf16> to vector<1x148xbf16>
    %33 = arith.extf %32 : vector<1x148xbf16> to vector<1x148xf32>
    %34 = vector.extract_strided_slice %21 {offsets = [0, 1], sizes = [16, 1], strides = [1, 1]} : vector<16x5xf32> to vector<16x1xf32>
    %35 = vector.broadcast %34 : vector<16x1xf32> to vector<16x148xf32>
    %36 = vector.broadcast %33 : vector<1x148xf32> to vector<16x148xf32>
    %37 = arith.mulf %35, %36 : vector<16x148xf32>
    %38 = arith.addf %30, %37 : vector<16x148xf32>
    %c0_12 = arith.constant 0 : index
    %c0_13 = arith.constant 0 : index
    %c0_14 = arith.constant 0 : index
    %c2_15 = arith.constant 2 : index
    %39 = vector.load %arg2[%c0_12, %c0_13, %c0_14, %c2_15] : memref<1x1x1x152xbf16, #tpu.memory_space<vmem>>, vector<1x1x1x148xbf16>
    %40 = vector.shape_cast %39 : vector<1x1x1x148xbf16> to vector<1x148xbf16>
    %41 = arith.extf %40 : vector<1x148xbf16> to vector<1x148xf32>
    %42 = vector.extract_strided_slice %21 {offsets = [0, 2], sizes = [16, 1], strides = [1, 1]} : vector<16x5xf32> to vector<16x1xf32>
    %43 = vector.broadcast %42 : vector<16x1xf32> to vector<16x148xf32>
    %44 = vector.broadcast %41 : vector<1x148xf32> to vector<16x148xf32>
    %45 = arith.mulf %43, %44 : vector<16x148xf32>
    %46 = arith.addf %38, %45 : vector<16x148xf32>
    %c0_16 = arith.constant 0 : index
    %c0_17 = arith.constant 0 : index
    %c0_18 = arith.constant 0 : index
    %c3_19 = arith.constant 3 : index
    %47 = vector.load %arg2[%c0_16, %c0_17, %c0_18, %c3_19] : memref<1x1x1x152xbf16, #tpu.memory_space<vmem>>, vector<1x1x1x148xbf16>
    %48 = vector.shape_cast %47 : vector<1x1x1x148xbf16> to vector<1x148xbf16>
    %49 = arith.extf %48 : vector<1x148xbf16> to vector<1x148xf32>
    %50 = vector.extract_strided_slice %21 {offsets = [0, 3], sizes = [16, 1], strides = [1, 1]} : vector<16x5xf32> to vector<16x1xf32>
    %51 = vector.broadcast %50 : vector<16x1xf32> to vector<16x148xf32>
    %52 = vector.broadcast %49 : vector<1x148xf32> to vector<16x148xf32>
    %53 = arith.mulf %51, %52 : vector<16x148xf32>
    %54 = arith.addf %46, %53 : vector<16x148xf32>
    %c0_20 = arith.constant 0 : index
    %c0_21 = arith.constant 0 : index
    %c0_22 = arith.constant 0 : index
    %c4_23 = arith.constant 4 : index
    %55 = vector.load %arg2[%c0_20, %c0_21, %c0_22, %c4_23] : memref<1x1x1x152xbf16, #tpu.memory_space<vmem>>, vector<1x1x1x148xbf16>
    %56 = vector.shape_cast %55 : vector<1x1x1x148xbf16> to vector<1x148xbf16>
    %57 = arith.extf %56 : vector<1x148xbf16> to vector<1x148xf32>
    %58 = vector.extract_strided_slice %21 {offsets = [0, 4], sizes = [16, 1], strides = [1, 1]} : vector<16x5xf32> to vector<16x1xf32>
    %59 = vector.broadcast %58 : vector<16x1xf32> to vector<16x148xf32>
    %60 = vector.broadcast %57 : vector<1x148xf32> to vector<16x148xf32>
    %61 = arith.mulf %59, %60 : vector<16x148xf32>
    %62 = arith.addf %54, %61 : vector<16x148xf32>
    %c0_24 = arith.constant 0 : index
    %c0_25 = arith.constant 0 : index
    %63 = vector.load %arg9[%c0_24, %c0_25] : memref<64x6xf32, #tpu.memory_space<vmem>>, vector<16x1xf32>
    %64 = vector.broadcast %63 : vector<16x1xf32> to vector<16x148xf32>
    %65 = arith.addf %62, %64 : vector<16x148xf32>
    %cst_26 = arith.constant 0.000000e+00 : f32
    %66 = vector.broadcast %cst_26 : f32 to vector<16x148xf32>
    %67 = arith.cmpf ogt, %65, %66 : vector<16x148xf32>
    %68 = vector.broadcast %2 : f32 to vector<16x148xf32>
    %69 = arith.mulf %68, %65 : vector<16x148xf32>
    %70 = arith.select %67, %65, %69 : vector<16x148xi1>, vector<16x148xf32>
    %71 = arith.truncf %70 : vector<16x148xf32> to vector<16x148xbf16>
    %c1_27 = arith.constant 1 : index
    %c0_28 = arith.constant 0 : index
    %c0_29 = arith.constant 0 : index
    %72 = vector.load %arg12[%c1_27, %c0_28, %c0_29] : memref<2x64x152xbf16, #tpu.memory_space<vmem>>, vector<1x16x148xbf16>
    %73 = vector.shape_cast %72 : vector<1x16x148xbf16> to vector<16x148xbf16>
    %74 = vector.shape_cast %71 : vector<16x148xbf16> to vector<1x16x148xbf16>
    tpu.vector_store %arg12[%c1_27, %c0_28, %c0_29], %74 {strides = array<i32>} : memref<2x64x152xbf16, #tpu.memory_space<vmem>>, vector<1x16x148xbf16>,
    %75 = arith.extui %19 : i1 to i32
    %c0_i32_30 = arith.constant 0 : i32
    %76 = arith.cmpi ne, %75, %c0_i32_30 : i32
    scf.if %76 {
      %234 = vector.extract_strided_slice %15 {offsets = [0, 2], sizes = [1, 148], strides = [1, 1]} : vector<1x152xi1> to vector<1x148xi1>
      %cst_207 = arith.constant 0.000000e+00 : f32
      %235 = vector.shape_cast %234 : vector<1x148xi1> to vector<1x148xi1>
      %236 = vector.broadcast %235 : vector<1x148xi1> to vector<16x148xi1>
      %237 = vector.broadcast %cst_207 : f32 to vector<16x148xf32>
      %238 = arith.select %236, %70, %237 : vector<16x148xi1>, vector<16x148xf32>
      %239 = arith.truncf %238 : vector<16x148xf32> to vector<16x148xbf16>
      %c1_208 = arith.constant 1 : index
      %c0_209 = arith.constant 0 : index
      %c0_210 = arith.constant 0 : index
      %240 = vector.load %arg12[%c1_208, %c0_209, %c0_210] : memref<2x64x152xbf16, #tpu.memory_space<vmem>>, vector<1x16x148xbf16>
      %241 = vector.shape_cast %240 : vector<1x16x148xbf16> to vector<16x148xbf16>
      %242 = vector.shape_cast %239 : vector<16x148xbf16> to vector<1x16x148xbf16>
      tpu.vector_store %arg12[%c1_208, %c0_209, %c0_210], %242 {strides = array<i32>} : memref<2x64x152xbf16, #tpu.memory_space<vmem>>, vector<1x16x148xbf16>,
    } else {
    }
    %c1_31 = arith.constant 1 : index
    %c0_32 = arith.constant 0 : index
    %c0_33 = arith.constant 0 : index
    %77 = vector.load %arg12[%c1_31, %c0_32, %c0_33] : memref<2x64x152xbf16, #tpu.memory_space<vmem>>, vector<1x16x144xbf16>
    %78 = vector.shape_cast %77 : vector<1x16x144xbf16> to vector<16x144xbf16>
    %c0_34 = arith.constant 0 : index
    %c0_35 = arith.constant 0 : index
    %79 = vector.load %arg13[%c0_34, %c0_35] : memref<320x152xbf16, #tpu.memory_space<vmem>>, vector<16x144xbf16>
    tpu.vector_store %arg13[%c0_34, %c0_35], %78 {strides = array<i32>} : memref<320x152xbf16, #tpu.memory_space<vmem>>, vector<16x144xbf16>,
    %c1_36 = arith.constant 1 : index
    %c0_37 = arith.constant 0 : index
    %c1_38 = arith.constant 1 : index
    %80 = vector.load %arg12[%c1_36, %c0_37, %c1_38] : memref<2x64x152xbf16, #tpu.memory_space<vmem>>, vector<1x16x144xbf16>
    %81 = vector.shape_cast %80 : vector<1x16x144xbf16> to vector<16x144xbf16>
    %c16 = arith.constant 16 : index
    %c0_39 = arith.constant 0 : index
    %82 = vector.load %arg13[%c16, %c0_39] : memref<320x152xbf16, #tpu.memory_space<vmem>>, vector<16x144xbf16>
    tpu.vector_store %arg13[%c16, %c0_39], %81 {strides = array<i32>} : memref<320x152xbf16, #tpu.memory_space<vmem>>, vector<16x144xbf16>,
    %c1_40 = arith.constant 1 : index
    %c0_41 = arith.constant 0 : index
    %c2_42 = arith.constant 2 : index
    %83 = vector.load %arg12[%c1_40, %c0_41, %c2_42] : memref<2x64x152xbf16, #tpu.memory_space<vmem>>, vector<1x16x144xbf16>
    %84 = vector.shape_cast %83 : vector<1x16x144xbf16> to vector<16x144xbf16>
    %c32 = arith.constant 32 : index
    %c0_43 = arith.constant 0 : index
    %85 = vector.load %arg13[%c32, %c0_43] : memref<320x152xbf16, #tpu.memory_space<vmem>>, vector<16x144xbf16>
    tpu.vector_store %arg13[%c32, %c0_43], %84 {strides = array<i32>} : memref<320x152xbf16, #tpu.memory_space<vmem>>, vector<16x144xbf16>,
    %c1_44 = arith.constant 1 : index
    %c0_45 = arith.constant 0 : index
    %c3_46 = arith.constant 3 : index
    %86 = vector.load %arg12[%c1_44, %c0_45, %c3_46] : memref<2x64x152xbf16, #tpu.memory_space<vmem>>, vector<1x16x144xbf16>
    %87 = vector.shape_cast %86 : vector<1x16x144xbf16> to vector<16x144xbf16>
    %c48 = arith.constant 48 : index
    %c0_47 = arith.constant 0 : index
    %88 = vector.load %arg13[%c48, %c0_47] : memref<320x152xbf16, #tpu.memory_space<vmem>>, vector<16x144xbf16>
    tpu.vector_store %arg13[%c48, %c0_47], %87 {strides = array<i32>} : memref<320x152xbf16, #tpu.memory_space<vmem>>, vector<16x144xbf16>,
    %c1_48 = arith.constant 1 : index
    %c0_49 = arith.constant 0 : index
    %c4_50 = arith.constant 4 : index
    %89 = vector.load %arg12[%c1_48, %c0_49, %c4_50] : memref<2x64x152xbf16, #tpu.memory_space<vmem>>, vector<1x16x144xbf16>
    %90 = vector.shape_cast %89 : vector<1x16x144xbf16> to vector<16x144xbf16>
    %c64 = arith.constant 64 : index
    %c0_51 = arith.constant 0 : index
    %91 = vector.load %arg13[%c64, %c0_51] : memref<320x152xbf16, #tpu.memory_space<vmem>>, vector<16x144xbf16>
    tpu.vector_store %arg13[%c64, %c0_51], %90 {strides = array<i32>} : memref<320x152xbf16, #tpu.memory_space<vmem>>, vector<16x144xbf16>,
    %c0_52 = arith.constant 0 : index
    %c0_53 = arith.constant 0 : index
    %92 = vector.load %arg4[%c0_52, %c0_53] : memref<32x80xbf16, #tpu.memory_space<vmem>>, vector<32x80xbf16>
    %c0_54 = arith.constant 0 : index
    %c0_55 = arith.constant 0 : index
    %93 = vector.load %arg13[%c0_54, %c0_55] : memref<320x152xbf16, #tpu.memory_space<vmem>>, vector<80x144xbf16>
    %cst_56 = arith.constant dense<0.000000e+00> : vector<32x144xf32>
    %94 = tpu.matmul %92, %93, %cst_56 {dimension_numbers = #tpu.dot_dimension_numbers<[1], [0], [0], [1], [0, 0, 1, 1], [], []>} : vector<32x80xbf16>, vector<80x144xbf16>, vector<32x144xf32> -> vector<32x144xf32>
    %c0_57 = arith.constant 0 : index
    %c1_58 = arith.constant 1 : index
    %95 = vector.load %arg9[%c0_57, %c1_58] : memref<64x6xf32, #tpu.memory_space<vmem>>, vector<32x1xf32>
    %96 = vector.broadcast %95 : vector<32x1xf32> to vector<32x144xf32>
    %97 = arith.addf %94, %96 : vector<32x144xf32>
    %cst_59 = arith.constant 0.000000e+00 : f32
    %98 = vector.broadcast %cst_59 : f32 to vector<32x144xf32>
    %99 = arith.cmpf ogt, %97, %98 : vector<32x144xf32>
    %100 = vector.broadcast %3 : f32 to vector<32x144xf32>
    %101 = arith.mulf %100, %97 : vector<32x144xf32>
    %102 = arith.select %99, %97, %101 : vector<32x144xi1>, vector<32x144xf32>
    %103 = arith.truncf %102 : vector<32x144xf32> to vector<32x144xbf16>
    %c0_60 = arith.constant 0 : index
    %c0_61 = arith.constant 0 : index
    %c0_62 = arith.constant 0 : index
    %104 = vector.load %arg12[%c0_60, %c0_61, %c0_62] : memref<2x64x152xbf16, #tpu.memory_space<vmem>>, vector<1x32x144xbf16>
    %105 = vector.shape_cast %104 : vector<1x32x144xbf16> to vector<32x144xbf16>
    %106 = vector.shape_cast %103 : vector<32x144xbf16> to vector<1x32x144xbf16>
    tpu.vector_store %arg12[%c0_60, %c0_61, %c0_62], %106 {strides = array<i32>} : memref<2x64x152xbf16, #tpu.memory_space<vmem>>, vector<1x32x144xbf16>,
    %107 = arith.extui %19 : i1 to i32
    %c0_i32_63 = arith.constant 0 : i32
    %108 = arith.cmpi ne, %107, %c0_i32_63 : i32
    scf.if %108 {
      %234 = vector.extract_strided_slice %15 {offsets = [0, 4], sizes = [1, 144], strides = [1, 1]} : vector<1x152xi1> to vector<1x144xi1>
      %cst_207 = arith.constant 0.000000e+00 : f32
      %235 = vector.shape_cast %234 : vector<1x144xi1> to vector<1x144xi1>
      %236 = vector.broadcast %235 : vector<1x144xi1> to vector<32x144xi1>
      %237 = vector.broadcast %cst_207 : f32 to vector<32x144xf32>
      %238 = arith.select %236, %102, %237 : vector<32x144xi1>, vector<32x144xf32>
      %239 = arith.truncf %238 : vector<32x144xf32> to vector<32x144xbf16>
      %c0_208 = arith.constant 0 : index
      %c0_209 = arith.constant 0 : index
      %c0_210 = arith.constant 0 : index
      %240 = vector.load %arg12[%c0_208, %c0_209, %c0_210] : memref<2x64x152xbf16, #tpu.memory_space<vmem>>, vector<1x32x144xbf16>
      %241 = vector.shape_cast %240 : vector<1x32x144xbf16> to vector<32x144xbf16>
      %242 = vector.shape_cast %239 : vector<32x144xbf16> to vector<1x32x144xbf16>
      tpu.vector_store %arg12[%c0_208, %c0_209, %c0_210], %242 {strides = array<i32>} : memref<2x64x152xbf16, #tpu.memory_space<vmem>>, vector<1x32x144xbf16>,
    } else {
    }
    %c0_64 = arith.constant 0 : index
    %c0_65 = arith.constant 0 : index
    %c0_66 = arith.constant 0 : index
    %109 = vector.load %arg12[%c0_64, %c0_65, %c0_66] : memref<2x64x152xbf16, #tpu.memory_space<vmem>>, vector<1x32x140xbf16>
    %110 = vector.shape_cast %109 : vector<1x32x140xbf16> to vector<32x140xbf16>
    %c0_67 = arith.constant 0 : index
    %c0_68 = arith.constant 0 : index
    %111 = vector.load %arg13[%c0_67, %c0_68] : memref<320x152xbf16, #tpu.memory_space<vmem>>, vector<32x140xbf16>
    tpu.vector_store %arg13[%c0_67, %c0_68], %110 {strides = array<i32>} : memref<320x152xbf16, #tpu.memory_space<vmem>>, vector<32x140xbf16>,
    %c0_69 = arith.constant 0 : index
    %c0_70 = arith.constant 0 : index
    %c1_71 = arith.constant 1 : index
    %112 = vector.load %arg12[%c0_69, %c0_70, %c1_71] : memref<2x64x152xbf16, #tpu.memory_space<vmem>>, vector<1x32x140xbf16>
    %113 = vector.shape_cast %112 : vector<1x32x140xbf16> to vector<32x140xbf16>
    %c32_72 = arith.constant 32 : index
    %c0_73 = arith.constant 0 : index
    %114 = vector.load %arg13[%c32_72, %c0_73] : memref<320x152xbf16, #tpu.memory_space<vmem>>, vector<32x140xbf16>
    tpu.vector_store %arg13[%c32_72, %c0_73], %113 {strides = array<i32>} : memref<320x152xbf16, #tpu.memory_space<vmem>>, vector<32x140xbf16>,
    %c0_74 = arith.constant 0 : index
    %c0_75 = arith.constant 0 : index
    %c2_76 = arith.constant 2 : index
    %115 = vector.load %arg12[%c0_74, %c0_75, %c2_76] : memref<2x64x152xbf16, #tpu.memory_space<vmem>>, vector<1x32x140xbf16>
    %116 = vector.shape_cast %115 : vector<1x32x140xbf16> to vector<32x140xbf16>
    %c64_77 = arith.constant 64 : index
    %c0_78 = arith.constant 0 : index
    %117 = vector.load %arg13[%c64_77, %c0_78] : memref<320x152xbf16, #tpu.memory_space<vmem>>, vector<32x140xbf16>
    tpu.vector_store %arg13[%c64_77, %c0_78], %116 {strides = array<i32>} : memref<320x152xbf16, #tpu.memory_space<vmem>>, vector<32x140xbf16>,
    %c0_79 = arith.constant 0 : index
    %c0_80 = arith.constant 0 : index
    %c3_81 = arith.constant 3 : index
    %118 = vector.load %arg12[%c0_79, %c0_80, %c3_81] : memref<2x64x152xbf16, #tpu.memory_space<vmem>>, vector<1x32x140xbf16>
    %119 = vector.shape_cast %118 : vector<1x32x140xbf16> to vector<32x140xbf16>
    %c96 = arith.constant 96 : index
    %c0_82 = arith.constant 0 : index
    %120 = vector.load %arg13[%c96, %c0_82] : memref<320x152xbf16, #tpu.memory_space<vmem>>, vector<32x140xbf16>
    tpu.vector_store %arg13[%c96, %c0_82], %119 {strides = array<i32>} : memref<320x152xbf16, #tpu.memory_space<vmem>>, vector<32x140xbf16>,
    %c0_83 = arith.constant 0 : index
    %c0_84 = arith.constant 0 : index
    %c4_85 = arith.constant 4 : index
    %121 = vector.load %arg12[%c0_83, %c0_84, %c4_85] : memref<2x64x152xbf16, #tpu.memory_space<vmem>>, vector<1x32x140xbf16>
    %122 = vector.shape_cast %121 : vector<1x32x140xbf16> to vector<32x140xbf16>
    %c128 = arith.constant 128 : index
    %c0_86 = arith.constant 0 : index
    %123 = vector.load %arg13[%c128, %c0_86] : memref<320x152xbf16, #tpu.memory_space<vmem>>, vector<32x140xbf16>
    tpu.vector_store %arg13[%c128, %c0_86], %122 {strides = array<i32>} : memref<320x152xbf16, #tpu.memory_space<vmem>>, vector<32x140xbf16>,
    %c0_87 = arith.constant 0 : index
    %c0_88 = arith.constant 0 : index
    %124 = vector.load %arg5[%c0_87, %c0_88] : memref<64x160xbf16, #tpu.memory_space<vmem>>, vector<64x160xbf16>
    %c0_89 = arith.constant 0 : index
    %c0_90 = arith.constant 0 : index
    %125 = vector.load %arg13[%c0_89, %c0_90] : memref<320x152xbf16, #tpu.memory_space<vmem>>, vector<160x140xbf16>
    %cst_91 = arith.constant dense<0.000000e+00> : vector<64x140xf32>
    %126 = tpu.matmul %124, %125, %cst_91 {dimension_numbers = #tpu.dot_dimension_numbers<[1], [0], [0], [1], [0, 0, 1, 1], [], []>} : vector<64x160xbf16>, vector<160x140xbf16>, vector<64x140xf32> -> vector<64x140xf32>
    %c0_92 = arith.constant 0 : index
    %c2_93 = arith.constant 2 : index
    %127 = vector.load %arg9[%c0_92, %c2_93] : memref<64x6xf32, #tpu.memory_space<vmem>>, vector<64x1xf32>
    %128 = vector.broadcast %127 : vector<64x1xf32> to vector<64x140xf32>
    %129 = arith.addf %126, %128 : vector<64x140xf32>
    %cst_94 = arith.constant 0.000000e+00 : f32
    %130 = vector.broadcast %cst_94 : f32 to vector<64x140xf32>
    %131 = arith.cmpf ogt, %129, %130 : vector<64x140xf32>
    %132 = vector.broadcast %4 : f32 to vector<64x140xf32>
    %133 = arith.mulf %132, %129 : vector<64x140xf32>
    %134 = arith.select %131, %129, %133 : vector<64x140xi1>, vector<64x140xf32>
    %135 = arith.truncf %134 : vector<64x140xf32> to vector<64x140xbf16>
    %c1_95 = arith.constant 1 : index
    %c0_96 = arith.constant 0 : index
    %c0_97 = arith.constant 0 : index
    %136 = vector.load %arg12[%c1_95, %c0_96, %c0_97] : memref<2x64x152xbf16, #tpu.memory_space<vmem>>, vector<1x64x140xbf16>
    %137 = vector.shape_cast %136 : vector<1x64x140xbf16> to vector<64x140xbf16>
    %138 = vector.shape_cast %135 : vector<64x140xbf16> to vector<1x64x140xbf16>
    tpu.vector_store %arg12[%c1_95, %c0_96, %c0_97], %138 {strides = array<i32>} : memref<2x64x152xbf16, #tpu.memory_space<vmem>>, vector<1x64x140xbf16>,
    %139 = arith.extui %19 : i1 to i32
    %c0_i32_98 = arith.constant 0 : i32
    %140 = arith.cmpi ne, %139, %c0_i32_98 : i32
    scf.if %140 {
      %234 = vector.extract_strided_slice %15 {offsets = [0, 6], sizes = [1, 140], strides = [1, 1]} : vector<1x152xi1> to vector<1x140xi1>
      %cst_207 = arith.constant 0.000000e+00 : f32
      %235 = vector.shape_cast %234 : vector<1x140xi1> to vector<1x140xi1>
      %236 = vector.broadcast %235 : vector<1x140xi1> to vector<64x140xi1>
      %237 = vector.broadcast %cst_207 : f32 to vector<64x140xf32>
      %238 = arith.select %236, %134, %237 : vector<64x140xi1>, vector<64x140xf32>
      %239 = arith.truncf %238 : vector<64x140xf32> to vector<64x140xbf16>
      %c1_208 = arith.constant 1 : index
      %c0_209 = arith.constant 0 : index
      %c0_210 = arith.constant 0 : index
      %240 = vector.load %arg12[%c1_208, %c0_209, %c0_210] : memref<2x64x152xbf16, #tpu.memory_space<vmem>>, vector<1x64x140xbf16>
      %241 = vector.shape_cast %240 : vector<1x64x140xbf16> to vector<64x140xbf16>
      %242 = vector.shape_cast %239 : vector<64x140xbf16> to vector<1x64x140xbf16>
      tpu.vector_store %arg12[%c1_208, %c0_209, %c0_210], %242 {strides = array<i32>} : memref<2x64x152xbf16, #tpu.memory_space<vmem>>, vector<1x64x140xbf16>,
    } else {
    }
    %c1_99 = arith.constant 1 : index
    %c0_100 = arith.constant 0 : index
    %c0_101 = arith.constant 0 : index
    %141 = vector.load %arg12[%c1_99, %c0_100, %c0_101] : memref<2x64x152xbf16, #tpu.memory_space<vmem>>, vector<1x64x136xbf16>
    %142 = vector.shape_cast %141 : vector<1x64x136xbf16> to vector<64x136xbf16>
    %c0_102 = arith.constant 0 : index
    %c0_103 = arith.constant 0 : index
    %143 = vector.load %arg13[%c0_102, %c0_103] : memref<320x152xbf16, #tpu.memory_space<vmem>>, vector<64x136xbf16>
    tpu.vector_store %arg13[%c0_102, %c0_103], %142 {strides = array<i32>} : memref<320x152xbf16, #tpu.memory_space<vmem>>, vector<64x136xbf16>,
    %c1_104 = arith.constant 1 : index
    %c0_105 = arith.constant 0 : index
    %c1_106 = arith.constant 1 : index
    %144 = vector.load %arg12[%c1_104, %c0_105, %c1_106] : memref<2x64x152xbf16, #tpu.memory_space<vmem>>, vector<1x64x136xbf16>
    %145 = vector.shape_cast %144 : vector<1x64x136xbf16> to vector<64x136xbf16>
    %c64_107 = arith.constant 64 : index
    %c0_108 = arith.constant 0 : index
    %146 = vector.load %arg13[%c64_107, %c0_108] : memref<320x152xbf16, #tpu.memory_space<vmem>>, vector<64x136xbf16>
    tpu.vector_store %arg13[%c64_107, %c0_108], %145 {strides = array<i32>} : memref<320x152xbf16, #tpu.memory_space<vmem>>, vector<64x136xbf16>,
    %c1_109 = arith.constant 1 : index
    %c0_110 = arith.constant 0 : index
    %c2_111 = arith.constant 2 : index
    %147 = vector.load %arg12[%c1_109, %c0_110, %c2_111] : memref<2x64x152xbf16, #tpu.memory_space<vmem>>, vector<1x64x136xbf16>
    %148 = vector.shape_cast %147 : vector<1x64x136xbf16> to vector<64x136xbf16>
    %c128_112 = arith.constant 128 : index
    %c0_113 = arith.constant 0 : index
    %149 = vector.load %arg13[%c128_112, %c0_113] : memref<320x152xbf16, #tpu.memory_space<vmem>>, vector<64x136xbf16>
    tpu.vector_store %arg13[%c128_112, %c0_113], %148 {strides = array<i32>} : memref<320x152xbf16, #tpu.memory_space<vmem>>, vector<64x136xbf16>,
    %c1_114 = arith.constant 1 : index
    %c0_115 = arith.constant 0 : index
    %c3_116 = arith.constant 3 : index
    %150 = vector.load %arg12[%c1_114, %c0_115, %c3_116] : memref<2x64x152xbf16, #tpu.memory_space<vmem>>, vector<1x64x136xbf16>
    %151 = vector.shape_cast %150 : vector<1x64x136xbf16> to vector<64x136xbf16>
    %c192 = arith.constant 192 : index
    %c0_117 = arith.constant 0 : index
    %152 = vector.load %arg13[%c192, %c0_117] : memref<320x152xbf16, #tpu.memory_space<vmem>>, vector<64x136xbf16>
    tpu.vector_store %arg13[%c192, %c0_117], %151 {strides = array<i32>} : memref<320x152xbf16, #tpu.memory_space<vmem>>, vector<64x136xbf16>,
    %c1_118 = arith.constant 1 : index
    %c0_119 = arith.constant 0 : index
    %c4_120 = arith.constant 4 : index
    %153 = vector.load %arg12[%c1_118, %c0_119, %c4_120] : memref<2x64x152xbf16, #tpu.memory_space<vmem>>, vector<1x64x136xbf16>
    %154 = vector.shape_cast %153 : vector<1x64x136xbf16> to vector<64x136xbf16>
    %c256 = arith.constant 256 : index
    %c0_121 = arith.constant 0 : index
    %155 = vector.load %arg13[%c256, %c0_121] : memref<320x152xbf16, #tpu.memory_space<vmem>>, vector<64x136xbf16>
    tpu.vector_store %arg13[%c256, %c0_121], %154 {strides = array<i32>} : memref<320x152xbf16, #tpu.memory_space<vmem>>, vector<64x136xbf16>,
    %c0_122 = arith.constant 0 : index
    %c0_123 = arith.constant 0 : index
    %156 = vector.load %arg6[%c0_122, %c0_123] : memref<32x320xbf16, #tpu.memory_space<vmem>>, vector<32x320xbf16>
    %c0_124 = arith.constant 0 : index
    %c0_125 = arith.constant 0 : index
    %157 = vector.load %arg13[%c0_124, %c0_125] : memref<320x152xbf16, #tpu.memory_space<vmem>>, vector<320x136xbf16>
    %cst_126 = arith.constant dense<0.000000e+00> : vector<32x136xf32>
    %158 = tpu.matmul %156, %157, %cst_126 {dimension_numbers = #tpu.dot_dimension_numbers<[1], [0], [0], [1], [0, 0, 1, 1], [], []>} : vector<32x320xbf16>, vector<320x136xbf16>, vector<32x136xf32> -> vector<32x136xf32>
    %c0_127 = arith.constant 0 : index
    %c3_128 = arith.constant 3 : index
    %159 = vector.load %arg9[%c0_127, %c3_128] : memref<64x6xf32, #tpu.memory_space<vmem>>, vector<32x1xf32>
    %160 = vector.broadcast %159 : vector<32x1xf32> to vector<32x136xf32>
    %161 = arith.addf %158, %160 : vector<32x136xf32>
    %cst_129 = arith.constant 0.000000e+00 : f32
    %162 = vector.broadcast %cst_129 : f32 to vector<32x136xf32>
    %163 = arith.cmpf ogt, %161, %162 : vector<32x136xf32>
    %164 = vector.broadcast %5 : f32 to vector<32x136xf32>
    %165 = arith.mulf %164, %161 : vector<32x136xf32>
    %166 = arith.select %163, %161, %165 : vector<32x136xi1>, vector<32x136xf32>
    %167 = arith.truncf %166 : vector<32x136xf32> to vector<32x136xbf16>
    %c0_130 = arith.constant 0 : index
    %c0_131 = arith.constant 0 : index
    %c0_132 = arith.constant 0 : index
    %168 = vector.load %arg12[%c0_130, %c0_131, %c0_132] : memref<2x64x152xbf16, #tpu.memory_space<vmem>>, vector<1x32x136xbf16>
    %169 = vector.shape_cast %168 : vector<1x32x136xbf16> to vector<32x136xbf16>
    %170 = vector.shape_cast %167 : vector<32x136xbf16> to vector<1x32x136xbf16>
    tpu.vector_store %arg12[%c0_130, %c0_131, %c0_132], %170 {strides = array<i32>} : memref<2x64x152xbf16, #tpu.memory_space<vmem>>, vector<1x32x136xbf16>,
    %171 = arith.extui %19 : i1 to i32
    %c0_i32_133 = arith.constant 0 : i32
    %172 = arith.cmpi ne, %171, %c0_i32_133 : i32
    scf.if %172 {
      %234 = vector.extract_strided_slice %15 {offsets = [0, 8], sizes = [1, 136], strides = [1, 1]} : vector<1x152xi1> to vector<1x136xi1>
      %cst_207 = arith.constant 0.000000e+00 : f32
      %235 = vector.shape_cast %234 : vector<1x136xi1> to vector<1x136xi1>
      %236 = vector.broadcast %235 : vector<1x136xi1> to vector<32x136xi1>
      %237 = vector.broadcast %cst_207 : f32 to vector<32x136xf32>
      %238 = arith.select %236, %166, %237 : vector<32x136xi1>, vector<32x136xf32>
      %239 = arith.truncf %238 : vector<32x136xf32> to vector<32x136xbf16>
      %c0_208 = arith.constant 0 : index
      %c0_209 = arith.constant 0 : index
      %c0_210 = arith.constant 0 : index
      %240 = vector.load %arg12[%c0_208, %c0_209, %c0_210] : memref<2x64x152xbf16, #tpu.memory_space<vmem>>, vector<1x32x136xbf16>
      %241 = vector.shape_cast %240 : vector<1x32x136xbf16> to vector<32x136xbf16>
      %242 = vector.shape_cast %239 : vector<32x136xbf16> to vector<1x32x136xbf16>
      tpu.vector_store %arg12[%c0_208, %c0_209, %c0_210], %242 {strides = array<i32>} : memref<2x64x152xbf16, #tpu.memory_space<vmem>>, vector<1x32x136xbf16>,
    } else {
    }
    %c0_134 = arith.constant 0 : index
    %c0_135 = arith.constant 0 : index
    %c0_136 = arith.constant 0 : index
    %173 = vector.load %arg12[%c0_134, %c0_135, %c0_136] : memref<2x64x152xbf16, #tpu.memory_space<vmem>>, vector<1x32x132xbf16>
    %174 = vector.shape_cast %173 : vector<1x32x132xbf16> to vector<32x132xbf16>
    %c0_137 = arith.constant 0 : index
    %c0_138 = arith.constant 0 : index
    %175 = vector.load %arg13[%c0_137, %c0_138] : memref<320x152xbf16, #tpu.memory_space<vmem>>, vector<32x132xbf16>
    tpu.vector_store %arg13[%c0_137, %c0_138], %174 {strides = array<i32>} : memref<320x152xbf16, #tpu.memory_space<vmem>>, vector<32x132xbf16>,
    %c0_139 = arith.constant 0 : index
    %c0_140 = arith.constant 0 : index
    %c1_141 = arith.constant 1 : index
    %176 = vector.load %arg12[%c0_139, %c0_140, %c1_141] : memref<2x64x152xbf16, #tpu.memory_space<vmem>>, vector<1x32x132xbf16>
    %177 = vector.shape_cast %176 : vector<1x32x132xbf16> to vector<32x132xbf16>
    %c32_142 = arith.constant 32 : index
    %c0_143 = arith.constant 0 : index
    %178 = vector.load %arg13[%c32_142, %c0_143] : memref<320x152xbf16, #tpu.memory_space<vmem>>, vector<32x132xbf16>
    tpu.vector_store %arg13[%c32_142, %c0_143], %177 {strides = array<i32>} : memref<320x152xbf16, #tpu.memory_space<vmem>>, vector<32x132xbf16>,
    %c0_144 = arith.constant 0 : index
    %c0_145 = arith.constant 0 : index
    %c2_146 = arith.constant 2 : index
    %179 = vector.load %arg12[%c0_144, %c0_145, %c2_146] : memref<2x64x152xbf16, #tpu.memory_space<vmem>>, vector<1x32x132xbf16>
    %180 = vector.shape_cast %179 : vector<1x32x132xbf16> to vector<32x132xbf16>
    %c64_147 = arith.constant 64 : index
    %c0_148 = arith.constant 0 : index
    %181 = vector.load %arg13[%c64_147, %c0_148] : memref<320x152xbf16, #tpu.memory_space<vmem>>, vector<32x132xbf16>
    tpu.vector_store %arg13[%c64_147, %c0_148], %180 {strides = array<i32>} : memref<320x152xbf16, #tpu.memory_space<vmem>>, vector<32x132xbf16>,
    %c0_149 = arith.constant 0 : index
    %c0_150 = arith.constant 0 : index
    %c3_151 = arith.constant 3 : index
    %182 = vector.load %arg12[%c0_149, %c0_150, %c3_151] : memref<2x64x152xbf16, #tpu.memory_space<vmem>>, vector<1x32x132xbf16>
    %183 = vector.shape_cast %182 : vector<1x32x132xbf16> to vector<32x132xbf16>
    %c96_152 = arith.constant 96 : index
    %c0_153 = arith.constant 0 : index
    %184 = vector.load %arg13[%c96_152, %c0_153] : memref<320x152xbf16, #tpu.memory_space<vmem>>, vector<32x132xbf16>
    tpu.vector_store %arg13[%c96_152, %c0_153], %183 {strides = array<i32>} : memref<320x152xbf16, #tpu.memory_space<vmem>>, vector<32x132xbf16>,
    %c0_154 = arith.constant 0 : index
    %c0_155 = arith.constant 0 : index
    %c4_156 = arith.constant 4 : index
    %185 = vector.load %arg12[%c0_154, %c0_155, %c4_156] : memref<2x64x152xbf16, #tpu.memory_space<vmem>>, vector<1x32x132xbf16>
    %186 = vector.shape_cast %185 : vector<1x32x132xbf16> to vector<32x132xbf16>
    %c128_157 = arith.constant 128 : index
    %c0_158 = arith.constant 0 : index
    %187 = vector.load %arg13[%c128_157, %c0_158] : memref<320x152xbf16, #tpu.memory_space<vmem>>, vector<32x132xbf16>
    tpu.vector_store %arg13[%c128_157, %c0_158], %186 {strides = array<i32>} : memref<320x152xbf16, #tpu.memory_space<vmem>>, vector<32x132xbf16>,
    %c0_159 = arith.constant 0 : index
    %c0_160 = arith.constant 0 : index
    %188 = vector.load %arg7[%c0_159, %c0_160] : memref<16x160xbf16, #tpu.memory_space<vmem>>, vector<16x160xbf16>
    %c0_161 = arith.constant 0 : index
    %c0_162 = arith.constant 0 : index
    %189 = vector.load %arg13[%c0_161, %c0_162] : memref<320x152xbf16, #tpu.memory_space<vmem>>, vector<160x132xbf16>
    %cst_163 = arith.constant dense<0.000000e+00> : vector<16x132xf32>
    %190 = tpu.matmul %188, %189, %cst_163 {dimension_numbers = #tpu.dot_dimension_numbers<[1], [0], [0], [1], [0, 0, 1, 1], [], []>} : vector<16x160xbf16>, vector<160x132xbf16>, vector<16x132xf32> -> vector<16x132xf32>
    %c0_164 = arith.constant 0 : index
    %c4_165 = arith.constant 4 : index
    %191 = vector.load %arg9[%c0_164, %c4_165] : memref<64x6xf32, #tpu.memory_space<vmem>>, vector<16x1xf32>
    %192 = vector.broadcast %191 : vector<16x1xf32> to vector<16x132xf32>
    %193 = arith.addf %190, %192 : vector<16x132xf32>
    %cst_166 = arith.constant 0.000000e+00 : f32
    %194 = vector.broadcast %cst_166 : f32 to vector<16x132xf32>
    %195 = arith.cmpf ogt, %193, %194 : vector<16x132xf32>
    %196 = vector.broadcast %6 : f32 to vector<16x132xf32>
    %197 = arith.mulf %196, %193 : vector<16x132xf32>
    %198 = arith.select %195, %193, %197 : vector<16x132xi1>, vector<16x132xf32>
    %199 = arith.truncf %198 : vector<16x132xf32> to vector<16x132xbf16>
    %c1_167 = arith.constant 1 : index
    %c0_168 = arith.constant 0 : index
    %c0_169 = arith.constant 0 : index
    %200 = vector.load %arg12[%c1_167, %c0_168, %c0_169] : memref<2x64x152xbf16, #tpu.memory_space<vmem>>, vector<1x16x132xbf16>
    %201 = vector.shape_cast %200 : vector<1x16x132xbf16> to vector<16x132xbf16>
    %202 = vector.shape_cast %199 : vector<16x132xbf16> to vector<1x16x132xbf16>
    tpu.vector_store %arg12[%c1_167, %c0_168, %c0_169], %202 {strides = array<i32>} : memref<2x64x152xbf16, #tpu.memory_space<vmem>>, vector<1x16x132xbf16>,
    %203 = arith.extui %19 : i1 to i32
    %c0_i32_170 = arith.constant 0 : i32
    %204 = arith.cmpi ne, %203, %c0_i32_170 : i32
    scf.if %204 {
      %234 = vector.extract_strided_slice %15 {offsets = [0, 10], sizes = [1, 132], strides = [1, 1]} : vector<1x152xi1> to vector<1x132xi1>
      %cst_207 = arith.constant 0.000000e+00 : f32
      %235 = vector.shape_cast %234 : vector<1x132xi1> to vector<1x132xi1>
      %236 = vector.broadcast %235 : vector<1x132xi1> to vector<16x132xi1>
      %237 = vector.broadcast %cst_207 : f32 to vector<16x132xf32>
      %238 = arith.select %236, %198, %237 : vector<16x132xi1>, vector<16x132xf32>
      %239 = arith.truncf %238 : vector<16x132xf32> to vector<16x132xbf16>
      %c1_208 = arith.constant 1 : index
      %c0_209 = arith.constant 0 : index
      %c0_210 = arith.constant 0 : index
      %240 = vector.load %arg12[%c1_208, %c0_209, %c0_210] : memref<2x64x152xbf16, #tpu.memory_space<vmem>>, vector<1x16x132xbf16>
      %241 = vector.shape_cast %240 : vector<1x16x132xbf16> to vector<16x132xbf16>
      %242 = vector.shape_cast %239 : vector<16x132xbf16> to vector<1x16x132xbf16>
      tpu.vector_store %arg12[%c1_208, %c0_209, %c0_210], %242 {strides = array<i32>} : memref<2x64x152xbf16, #tpu.memory_space<vmem>>, vector<1x16x132xbf16>,
    } else {
    }
    %c1_171 = arith.constant 1 : index
    %c0_172 = arith.constant 0 : index
    %c0_173 = arith.constant 0 : index
    %205 = vector.load %arg12[%c1_171, %c0_172, %c0_173] : memref<2x64x152xbf16, #tpu.memory_space<vmem>>, vector<1x16x128xbf16>
    %206 = vector.shape_cast %205 : vector<1x16x128xbf16> to vector<16x128xbf16>
    %c0_174 = arith.constant 0 : index
    %c0_175 = arith.constant 0 : index
    %207 = vector.load %arg13[%c0_174, %c0_175] : memref<320x152xbf16, #tpu.memory_space<vmem>>, vector<16x128xbf16>
    tpu.vector_store %arg13[%c0_174, %c0_175], %206 {strides = array<i32>} : memref<320x152xbf16, #tpu.memory_space<vmem>>, vector<16x128xbf16>,
    %c1_176 = arith.constant 1 : index
    %c0_177 = arith.constant 0 : index
    %c1_178 = arith.constant 1 : index
    %208 = vector.load %arg12[%c1_176, %c0_177, %c1_178] : memref<2x64x152xbf16, #tpu.memory_space<vmem>>, vector<1x16x128xbf16>
    %209 = vector.shape_cast %208 : vector<1x16x128xbf16> to vector<16x128xbf16>
    %c16_179 = arith.constant 16 : index
    %c0_180 = arith.constant 0 : index
    %210 = vector.load %arg13[%c16_179, %c0_180] : memref<320x152xbf16, #tpu.memory_space<vmem>>, vector<16x128xbf16>
    tpu.vector_store %arg13[%c16_179, %c0_180], %209 {strides = array<i32>} : memref<320x152xbf16, #tpu.memory_space<vmem>>, vector<16x128xbf16>,
    %c1_181 = arith.constant 1 : index
    %c0_182 = arith.constant 0 : index
    %c2_183 = arith.constant 2 : index
    %211 = vector.load %arg12[%c1_181, %c0_182, %c2_183] : memref<2x64x152xbf16, #tpu.memory_space<vmem>>, vector<1x16x128xbf16>
    %212 = vector.shape_cast %211 : vector<1x16x128xbf16> to vector<16x128xbf16>
    %c32_184 = arith.constant 32 : index
    %c0_185 = arith.constant 0 : index
    %213 = vector.load %arg13[%c32_184, %c0_185] : memref<320x152xbf16, #tpu.memory_space<vmem>>, vector<16x128xbf16>
    tpu.vector_store %arg13[%c32_184, %c0_185], %212 {strides = array<i32>} : memref<320x152xbf16, #tpu.memory_space<vmem>>, vector<16x128xbf16>,
    %c1_186 = arith.constant 1 : index
    %c0_187 = arith.constant 0 : index
    %c3_188 = arith.constant 3 : index
    %214 = vector.load %arg12[%c1_186, %c0_187, %c3_188] : memref<2x64x152xbf16, #tpu.memory_space<vmem>>, vector<1x16x128xbf16>
    %215 = vector.shape_cast %214 : vector<1x16x128xbf16> to vector<16x128xbf16>
    %c48_189 = arith.constant 48 : index
    %c0_190 = arith.constant 0 : index
    %216 = vector.load %arg13[%c48_189, %c0_190] : memref<320x152xbf16, #tpu.memory_space<vmem>>, vector<16x128xbf16>
    tpu.vector_store %arg13[%c48_189, %c0_190], %215 {strides = array<i32>} : memref<320x152xbf16, #tpu.memory_space<vmem>>, vector<16x128xbf16>,
    %c1_191 = arith.constant 1 : index
    %c0_192 = arith.constant 0 : index
    %c4_193 = arith.constant 4 : index
    %217 = vector.load %arg12[%c1_191, %c0_192, %c4_193] : memref<2x64x152xbf16, #tpu.memory_space<vmem>>, vector<1x16x128xbf16>
    %218 = vector.shape_cast %217 : vector<1x16x128xbf16> to vector<16x128xbf16>
    %c64_194 = arith.constant 64 : index
    %c0_195 = arith.constant 0 : index
    %219 = vector.load %arg13[%c64_194, %c0_195] : memref<320x152xbf16, #tpu.memory_space<vmem>>, vector<16x128xbf16>
    tpu.vector_store %arg13[%c64_194, %c0_195], %218 {strides = array<i32>} : memref<320x152xbf16, #tpu.memory_space<vmem>>, vector<16x128xbf16>,
    %c0_196 = arith.constant 0 : index
    %c0_197 = arith.constant 0 : index
    %220 = vector.load %arg8[%c0_196, %c0_197] : memref<1x80xbf16, #tpu.memory_space<vmem>>, vector<1x80xbf16>
    %c0_198 = arith.constant 0 : index
    %c0_199 = arith.constant 0 : index
    %221 = vector.load %arg13[%c0_198, %c0_199] : memref<320x152xbf16, #tpu.memory_space<vmem>>, vector<80x128xbf16>
    %cst_200 = arith.constant dense<0.000000e+00> : vector<1x128xf32>
    %222 = tpu.matmul %220, %221, %cst_200 {dimension_numbers = #tpu.dot_dimension_numbers<[1], [0], [0], [1], [0, 0, 1, 1], [], []>} : vector<1x80xbf16>, vector<80x128xbf16>, vector<1x128xf32> -> vector<1x128xf32>
    %c0_201 = arith.constant 0 : index
    %c5_202 = arith.constant 5 : index
    %223 = vector.load %arg9[%c0_201, %c5_202] : memref<64x6xf32, #tpu.memory_space<vmem>>, vector<1x1xf32>
    %224 = vector.broadcast %223 : vector<1x1xf32> to vector<1x128xf32>
    %225 = arith.addf %222, %224 : vector<1x128xf32>
    %cst_203 = arith.constant 0.000000e+00 : f32
    %226 = vector.broadcast %cst_203 : f32 to vector<1x128xf32>
    %227 = arith.cmpf ogt, %225, %226 : vector<1x128xf32>
    %228 = vector.broadcast %7 : f32 to vector<1x128xf32>
    %229 = arith.mulf %228, %225 : vector<1x128xf32>
    %230 = arith.select %227, %225, %229 : vector<1x128xi1>, vector<1x128xf32>
    %c0_204 = arith.constant 0 : index
    %c0_205 = arith.constant 0 : index
    %c0_206 = arith.constant 0 : index
    %231 = vector.load %arg11[%c0_204, %c0_205, %c0_206] : memref<1x1x128xf32, #tpu.memory_space<vmem>>, vector<1x1x128xf32>
    %232 = vector.shape_cast %231 : vector<1x1x128xf32> to vector<1x128xf32>
    %233 = vector.shape_cast %230 : vector<1x128xf32> to vector<1x1x128xf32>
    tpu.vector_store %arg11[%c0_204, %c0_205, %c0_206], %233 {strides = array<i32>} : memref<1x1x128xf32, #tpu.memory_space<vmem>>, vector<1x1x128xf32>,
    return
  }
  func.func @transform_0(%arg0: i32, %arg1: i32) -> (i32, i32, i32, i32) {
    %c0_i32 = arith.constant 0 : i32
    %c0_i32_0 = arith.constant 0 : i32
    %c0_i32_1 = arith.constant 0 : i32
    return %arg0, %arg1, %c0_i32, %c0_i32_0 : i32, i32, i32, i32
  }
  func.func @transform_1(%arg0: i32, %arg1: i32) -> (i32, i32) {
    %c0_i32 = arith.constant 0 : i32
    %c0_i32_0 = arith.constant 0 : i32
    %c0_i32_1 = arith.constant 0 : i32
    return %c0_i32, %c0_i32_0 : i32, i32
  }
  func.func @transform_2(%arg0: i32, %arg1: i32) -> (i32, i32) {
    %c0_i32 = arith.constant 0 : i32
    %c0_i32_0 = arith.constant 0 : i32
    %c0_i32_1 = arith.constant 0 : i32
    return %c0_i32, %c0_i32_0 : i32, i32
  }
  func.func @transform_3(%arg0: i32, %arg1: i32) -> (i32, i32) {
    %c0_i32 = arith.constant 0 : i32
    %c0_i32_0 = arith.constant 0 : i32
    %c0_i32_1 = arith.constant 0 : i32
    return %c0_i32, %c0_i32_0 : i32, i32
  }
  func.func @transform_4(%arg0: i32, %arg1: i32) -> (i32, i32) {
    %c0_i32 = arith.constant 0 : i32
    %c0_i32_0 = arith.constant 0 : i32
    %c0_i32_1 = arith.constant 0 : i32
    return %c0_i32, %c0_i32_0 : i32, i32
  }
  func.func @transform_5(%arg0: i32, %arg1: i32) -> (i32, i32) {
    %c0_i32 = arith.constant 0 : i32
    %c0_i32_0 = arith.constant 0 : i32
    %c0_i32_1 = arith.constant 0 : i32
    return %c0_i32, %c0_i32_0 : i32, i32
  }
  func.func @transform_6(%arg0: i32, %arg1: i32) -> (i32, i32) {
    %c0_i32 = arith.constant 0 : i32
    %c0_i32_0 = arith.constant 0 : i32
    %c0_i32_1 = arith.constant 0 : i32
    return %c0_i32, %c0_i32_0 : i32, i32
  }
  func.func @transform_7(%arg0: i32, %arg1: i32) -> (i32, i32) {
    %c0_i32 = arith.constant 0 : i32
    %c0_i32_0 = arith.constant 0 : i32
    %c0_i32_1 = arith.constant 0 : i32
    return %c0_i32, %c0_i32_0 : i32, i32
  }
  func.func @transform_8(%arg0: i32, %arg1: i32) -> i32 {
    %c0_i32 = arith.constant 0 : i32
    %c0_i32_0 = arith.constant 0 : i32
    return %c0_i32 : i32
  }
  func.func @transform_9(%arg0: i32, %arg1: i32) -> (i32, i32, i32) {
    %c0_i32 = arith.constant 0 : i32
    %c0_i32_0 = arith.constant 0 : i32
    return %arg0, %c0_i32, %arg1 : i32, i32, i32
  }
}

</mosaic_0001>

<bundles_post_ra>
// kernel: simple_conv1d_forward.1
= control target key start
LH: loop header
LB: loop body
LE: loop exit
PB: predicated region body
PF: predicated region fallthrough
CT: control target
= control target key end

     0   :  { %14 = vsyncpa [#allocation5], 0  ;;  %s3928_s30 = smov 0   ;;  %s3930_s10 = smov 0   ;;  %s4768_s0 = inlined_call_operand.vmem [shape: bf16[2,1,1,152], index: 0, kind: input, shape index: {}]   ;;  %s4769_s1 = inlined_call_operand.vmem [shape: bf16[16,5], index: 1, kind: input, shape index: {}]   ;;  %s4770_s2 = inlined_call_operand.vmem [shape: bf16[32,80], index: 2, kind: input, shape index: {}]   ;;  %s4771_s3 = inlined_call_operand.vmem [shape: bf16[64,160], index: 3, kind: input, shape index: {}]   ;;  %s4772_s4 = inlined_call_operand.vmem [shape: bf16[32,320], index: 4, kind: input, shape index: {}]   ;;  %s4773_s5 = inlined_call_operand.vmem [shape: bf16[16,160], index: 5, kind: input, shape index: {}]   ;;  %s4774_s6 = inlined_call_operand.vmem [shape: bf16[1,80], index: 6, kind: input, shape index: {}]   ;;  %s4775_s7 = inlined_call_operand.vmem [shape: f32[64,6], index: 7, kind: input, shape index: {}]   ;;  %s4776_s8 = inlined_call_operand.vmem [shape: f32[6], index: 8, kind: input, shape index: {}]   ;;  %s4777_s9 = inlined_call_operand.vmem [shape: f32[2,1,128], index: 9, kind: output, shape index: {}]  }
   0x1   :  { %s3932_s11 = smov 0  }
   0x2 LB: > { %s3282_s12 = sadd.s32 4294967295, %s3854_s11   ;;  %s32_s13 = sadd.s32 1, %s3850_s10  ;;  %s3854_s11 = sphi %s3932_s11, %s20_s11   ;;  %s3850_s10 = sphi %s3930_s10, %s4793_s10   ;;  %s3846_s30 = sphi %s3928_s30, %s4792_s30  }
   0x3   : > { %p34_p0 = scmp.ge.s32.totalorder %s32_s13, 2  ;;  %p3284_p1 = scmp.ge.s32.totalorder %s3854_s11, 1 }
   0x4   : > { %p261_p2 = scmp.lt.s32.totalorder %s3854_s11, 3  ;;  %p3953_p4 = scmp.eq.s32.totalorder %s3282_s12, 0 }
   0x5   : > { %s4795_s13 = smov (%p34_p0, %s32_s13), 0  ;;  %s295_s18 = sshll.u32 %s4776_s8, 4  ;;  %s296_s18 = int_to_ptr.vmem [resolvable:$true] %s295_s18 }
   0x6   : > { %p3949_p3 = pnand %p3284_p1, %p261_p2  ;;  %s3813_s19 = scalar_lea.vmem %s296_s18, 16 }
   0x7   : > { %p3814_p7 = scmp.ne.s32.totalorder %s296_s18, %s3813_s19  ;;  %p3821_p11 = scmp.lt.s32.totalorder %s296_s18, %s296_s18 }
   0x8   : > { %p3508_p5 = pneg %p3949_p3  ;;  %p3822_p12 = scmp.lt.s32.totalorder %s3813_s19, %s3813_s19 }
   0xa   : > { %p3509_p6 = pnand %p3953_p4, %p3508_p5  ;;  %p3823_p13 = por %p3822_p12, %p3821_p11 }
   0xc   : > { %p3815_p8 = pneg %p3509_p6 }
   0xe   : > { %p3816_p9 = pnand %p3815_p8, %p3814_p7 }
  0x10   : > { %p3817_p10 = pneg %p3816_p9 }
  0x12   : > { %p3824_p0 = pnand %p3823_p13, %p3817_p10 }
  0x14   : > { %3827 = shalt.err (!%p3824_p0)
}
  0x15   : > { %s3856_s20 = smov [#allocation4]   ;;  %319 = sbr.rel (%p3949_p3) target bundleno = 3427 (0xd63), region = 56 }
  0x16   : > { %3511 = dma.vmem_to_smem (!%p3509_p6), %s296_s18, 16, %s3856_s20, [#allocation5]  }
  0x1a   : > { %3841 = dma.done.wait (%p3953_p4), [#allocation5], 16  }
  0x1b   : > { %3843 = vsyncadd (%p3953_p4), [#allocation5], 4294967280 }
  0x1c   : > { %325 = sfence }
  0x1d   : > { %v3481_v0 = vld [vmem:[%s4769_s1] sm:$0xff]   ;;  %v3857_v1 = vmov 1   ;;  %v3858_v4 = vmov 3   ;;  %v3859_v5 = vmov 0   ;;  %v3860_v7 = vmov 2   ;;  %v3988_v10 = vld [vmem:[%s4775_s7 + $0x8] sm:$0xff] }
  0x1e   : > { %3560 = vset.pattern.permute.xlu0 %v3857_v1  ;;  %v3482_v2 = vunpack.c.l.bf16 %v3481_v0  ;;  %v3483_v3 = vunpack.c.h.bf16 %v3481_v0  ;;  %3572 = vset.pattern.permute.xlu1 %v3858_v4  ;;  %v3861_v8 = vmov 4   ;;  %v3980_v9 = vld [vmem:[%s4775_s7] sm:$0xff]  ;;  %p360_p1 = scmp.lt.s32.totalorder %s3846_s30, 1  ;;  %v383_v11 = vlaneseq  ;;  %s3862_s14 = smov 127  }
  0x1f   : > { %893 = vmatprep.mubr.bf16.mxu0 %v3859_v5  ;;  %s3863_s15 = smov 126   ;;  %s3864_s16 = smov 125   ;;  %vm466_vm0 = vcmask 1039360   ;;  %vm501_vm1 = vcmask 1031168   ;;  %vm536_vm2 = vcmask 1022976   ;;  %vm571_vm3 = vcmask 1014784  }
  0x20   : > { %v3561_v6 = vpack.i.bf16 %v3483_v3, %v3482_v2  ;;  %s4797_s30 = smov (!%p360_p1, %s3846_s30), 1  ;;  %v417_v12 = vshrl.u32 %v383_v11, 7  ;;  %s3865_s17 = smov 124   ;;  %vm624_vm4 = vcmask 1043456   ;;  %vm625_vm5 = vcmask 162820  }
  0x21   : > { %s3289_s27 = sshll.u32 %s4797_s30, 1  ;;  %s377_s18 = sld [smem:[#allocation4]]  ;;  %vm4053_vm8 = vmor %vm625_vm5, %vm624_vm4  ;;  %vm684_vm14 = vcmask 130052   ;;  %vm854_vm5 = vcmask 654336  }
  0x22   : > { %3562 = vperm.xlu0 %3560, %v3561_v6   ;;  %3574 = vperm.xlu1 %3572, %v3561_v6   ;;  %s367_s12 = scalar_lea.vmem %s4768_s0, %s3289_s27  ;;  %v418_v15 = vsub.s32 0, %v417_v12  ;;  %v422_v16 = vsub.s32 2, %v417_v12  ;;  %s3866_s19 = smov 2   ;;  %vm4081_vm15 = vmor %vm684_vm14, %vm624_vm4 }
  0x23   : > { %v403_v13 = vld [vmem:[%s367_s12] sm:$0x3]  ;;  %s3290_s28 = sld [smem:[#allocation4 + $0x1]]  ;;  %s3868_s29 = smov 4  }
  0x24   : > { %v404_v14 = vunpack.c.l.bf16 %v403_v13  ;;  %s3869_s20 = smov 6   ;;  %s3870_s21 = smov 122  }
  0x25   : > { %s3871_s12 = smov 8   ;;  %s3293_s23 = sld [smem:[#allocation4 + $0x4]] }
  0x26   : > { %3566 = vset.pattern.permute.xlu0 %v3860_v7  ;;  %3578 = vset.pattern.permute.xlu1 %v3861_v8  ;;  %v423_v17 = vrot.slane %v404_v14, %v422_v16  ;;  %v419_v18 = vrot.slane %v404_v14, %v418_v15  ;;  %s3873_s24 = smov 10   ;;  %s3874_s25 = smov 118  }
  0x27   : > { %3568 = vperm.xlu0 %3566, %v3561_v6   ;;  %3580 = vperm.xlu1 %3578, %v3561_v6  }
  0x28   : > { %v4000_v19 = vrot.slane %v423_v17, %v418_v15  ;;  %v4002_v20 = vrot.slane %v419_v18, %v418_v15 }
  0x2b   : > { %3584 = vset.pattern.permute.xlu1 %v3859_v5  ;;  %3590 = vset.pattern.permute.xlu0 %v3859_v5 }
  0x2c   : > { %3586 = vperm.xlu1 %3584, %v3561_v6   ;;  %586 = vperm.xlu0 %3590, %v3980_v9  }
  0x30   : > { %591 = vperm.xlu1 %3584, %v3988_v10   ;;  %3596 = vset.pattern.permute.xlu0 %v3857_v1 }
  0x34   : > { %3597 = vset.pattern.permute.xlu1 %v3857_v1 }
  0x9d   : > { %v3563_v21 = vpop.permute.xlu0 %3562  ;;  %v3575_v32 = vpop.permute.xlu1 %3574 }
  0x9e   : > { %v3564_v22 = vunpack.i.l.bf16 %v3563_v21  ;;  %v3565_v23 = vunpack.i.h.bf16 %v3563_v21  ;;  %v3576_v34 = vunpack.i.l.bf16 %v3575_v32  ;;  %v3577_v40 = vunpack.i.h.bf16 %v3575_v32 }
  0xa0   : > { %v451_v24 = vmul.f32 %v3564_v22, %v4000_v19  ;;  %v450_v25 = vmul.f32 %v3564_v22, %v4002_v20  ;;  %v453_v28 = vmul.f32 %v3565_v23, %v4000_v19  ;;  %v452_v29 = vmul.f32 %v3565_v23, %v4002_v20 }
  0xa1   : > { %v521_v37 = vmul.f32 %v3576_v34, %v4000_v19  ;;  %v520_v38 = vmul.f32 %v3576_v34, %v4002_v20  ;;  %v523_v42 = vmul.f32 %v3577_v40, %v4000_v19  ;;  %v522_v43 = vmul.f32 %v3577_v40, %v4002_v20 }
  0xa2   : > { %460 = vrot.lane.b32.xlu1 %v451_v24, %s3862_s14  ;;  %458 = vrot.lane.b32.xlu0 %v450_v25, %s3862_s14  ;;  %v3569_v26 = vpop.permute.xlu0 %3568  ;;  %v3581_v39 = vpop.permute.xlu1 %3580  ;;  %v602_v34 = vstv %s377_s18  ;;  %s3872_s18 = smov 120  }
  0xa3   : > { %v3570_v27 = vunpack.i.l.bf16 %v3569_v26  ;;  %v3571_v33 = vunpack.i.h.bf16 %v3569_v26  ;;  %v3582_v41 = vunpack.i.l.bf16 %v3581_v39  ;;  %v3583_v46 = vunpack.i.h.bf16 %v3581_v39 }
  0xa5   : > { %v486_v30 = vmul.f32 %v3570_v27, %v4000_v19  ;;  %v485_v31 = vmul.f32 %v3570_v27, %v4002_v20  ;;  %v488_v35 = vmul.f32 %v3571_v33, %v4000_v19  ;;  %v487_v36 = vmul.f32 %v3571_v33, %v4002_v20 }
  0xa6   : > { %464 = vrot.lane.b32.xlu1 %v453_v28, %s3862_s14  ;;  %462 = vrot.lane.b32.xlu0 %v452_v29, %s3862_s14  ;;  %v555_v44 = vmul.f32 %v3582_v41, %v4002_v20  ;;  %v556_v45 = vmul.f32 %v3582_v41, %v4000_v19  ;;  %v557_v47 = vmul.f32 %v3583_v46, %v4002_v20 }
  0xa7   : > { %v558_v48 = vmul.f32 %v3583_v46, %v4000_v19  ;;  %v3587_v49 = vpop.permute.xlu1 %3586  ;;  %v587_v50 = vpop.permute.xlu0 %586 }
  0xa8   : > { %v3588_v60 = vunpack.i.l.bf16 %v3587_v49  ;;  %v3589_v63 = vunpack.i.h.bf16 %v3587_v49 }
  0xaa   : > { %495 = vrot.lane.b32.xlu1 %v486_v30, %s3863_s15  ;;  %493 = vrot.lane.b32.xlu0 %v485_v31, %s3863_s15  ;;  %v435_v0 = vmul.f32 %v3588_v60, %v4000_v19  ;;  %v434_v2 = vmul.f32 %v3588_v60, %v4002_v20  ;;  %v437_v15 = vmul.f32 %v3589_v63, %v4000_v19 }
  0xab   : > { %v4036_v51 = vpop.permute.xlu1 %591  ;;  %v436_v21 = vmul.f32 %v3589_v63, %v4002_v20 }
  0xae   : > { %499 = vrot.lane.b32.xlu1 %v488_v35, %s3863_s15  ;;  %497 = vrot.lane.b32.xlu0 %v487_v36, %s3863_s15 }
  0xb2   : > { %530 = vrot.lane.b32.xlu1 %v521_v37, %s3864_s16  ;;  %528 = vrot.lane.b32.xlu0 %v520_v38, %s3864_s16 }
  0xb6   : > { %534 = vrot.lane.b32.xlu1 %v523_v42, %s3864_s16  ;;  %532 = vrot.lane.b32.xlu0 %v522_v43, %s3864_s16 }
  0xba   : > { %563 = vrot.lane.b32.xlu1 %v555_v44, %s3865_s17  ;;  %565 = vrot.lane.b32.xlu0 %v556_v45, %s3865_s17 }
  0xbe   : > { %567 = vrot.lane.b32.xlu1 %v557_v47, %s3865_s17  ;;  %569 = vrot.lane.b32.xlu0 %v558_v48, %s3865_s17 }
 0x114   : > { %v461_v52 = vpop.permute.xlu1 %460  ;;  %v459_v53 = vpop.permute.xlu0 %458 }
 0x115   : > { %v467_v1 = vsel %vm466_vm0, %v459_v53, %v461_v52  ;;  %v474_v3 = vadd.f32 %v461_v52, %v435_v0 }
 0x116   : > { %v473_v12 = vadd.f32 %v467_v1, %v434_v2 }
 0x118   : > { %v465_v54 = vpop.permute.xlu1 %464  ;;  %v463_v55 = vpop.permute.xlu0 %462 }
 0x119   : > { %v468_v16 = vsel %vm466_vm0, %v463_v55, %v465_v54  ;;  %v476_v23 = vadd.f32 %v465_v54, %v437_v15 }
 0x11a   : > { %v475_v26 = vadd.f32 %v468_v16, %v436_v21 }
 0x11c   : > { %v496_v56 = vpop.permute.xlu1 %495  ;;  %v494_v57 = vpop.permute.xlu0 %493 }
 0x11d   : > { %v502_v6 = vsel %vm501_vm1, %v494_v57, %v496_v56  ;;  %v509_v17 = vadd.f32 %v496_v56, %v474_v3  ;;  %v3867_v3 = vmov 0.0|0.0  }
 0x11e   : > { %v508_v22 = vadd.f32 %v502_v6, %v473_v12 }
 0x120   : > { %v500_v58 = vpop.permute.xlu1 %499  ;;  %v498_v59 = vpop.permute.xlu0 %497 }
 0x121   : > { %v503_v24 = vsel %vm501_vm1, %v498_v59, %v500_v58  ;;  %v511_v30 = vadd.f32 %v500_v58, %v476_v23  ;;  %v4100_v23 = vld [vmem:[%s4775_s7 + $0x18] sm:$0xff] }
 0x122   : > { %v510_v33 = vadd.f32 %v503_v24, %v475_v26  ;;  %v4105_v24 = vld [vmem:[%s4775_s7 + $0x10] sm:$0xff] }
 0x124   : > { %v531_v61 = vpop.permute.xlu1 %530  ;;  %v529_v62 = vpop.permute.xlu0 %528 }
 0x125   : > { %v537_v18 = vsel %vm536_vm2, %v529_v62, %v531_v61  ;;  %v544_v25 = vadd.f32 %v531_v61, %v509_v17 }
 0x126   : > { %v543_v27 = vadd.f32 %v537_v18, %v508_v22 }
 0x128   : > { %v535_v13 = vpop.permute.xlu1 %534  ;;  %v533_v14 = vpop.permute.xlu0 %532 }
 0x129   : > { %v538_v19 = vsel %vm536_vm2, %v533_v14, %v535_v13  ;;  %v546_v20 = vadd.f32 %v535_v13, %v511_v30 }
 0x12a   : > { %v545_v37 = vadd.f32 %v538_v19, %v510_v33 }
 0x12c   : > { %v564_v28 = vpop.permute.xlu1 %563  ;;  %v566_v29 = vpop.permute.xlu0 %565 }
 0x12d   : > { %v572_v31 = vsel %vm571_vm3, %v564_v28, %v566_v29  ;;  %v579_v32 = vadd.f32 %v566_v29, %v544_v25 }
 0x12e   : > { %v578_v35 = vadd.f32 %v572_v31, %v543_v27 }
 0x12f   : > { %v595_v36 = vadd.f32 %v587_v50, %v579_v32 }
 0x130   : > { %v594_v38 = vadd.f32 %v587_v50, %v578_v35  ;;  %v568_v39 = vpop.permute.xlu1 %567  ;;  %v570_v40 = vpop.permute.xlu0 %569 }
 0x131   : > { %v604_v41 = vmul.f32 %v602_v34, %v595_v36  ;;  %v573_v42 = vsel %vm571_vm3, %v568_v39, %v570_v40  ;;  %v581_v43 = vadd.f32 %v570_v40, %v546_v20  ;;  %vm599_vm6 = vcmp.gt.f32.partialorder %v595_v36, 0.0 }
 0x132   : > { %v580_v44 = vadd.f32 %v573_v42, %v545_v37  ;;  %vm598_vm7 = vcmp.gt.f32.partialorder %v594_v38, 0.0  ;;  %v603_v45 = vmul.f32 %v602_v34, %v594_v38 }
 0x133   : > { %v597_v46 = vadd.f32 %v4036_v51, %v581_v43  ;;  %v608_v47 = vsel %vm599_vm6, %v595_v36, %v604_v41 }
 0x134   : > { %v596_v48 = vadd.f32 %v4036_v51, %v580_v44  ;;  %v607_v49 = vsel %vm598_vm7, %v594_v38, %v603_v45  ;;  %v384_v51 = vand.u32 127, %v383_v11 }
 0x135   : > { %v606_v52 = vmul.f32 %v602_v34, %v597_v46  ;;  %vm601_vm9 = vcmp.gt.f32.partialorder %v597_v46, 0.0  ;;  %v3460_v53 = vpack.c.bf16 %v608_v47, %v607_v49 }
 0x136   : > { %vm600_vm10 = vcmp.gt.f32.partialorder %v596_v48, 0.0  ;;  %v605_v54 = vmul.f32 %v602_v34, %v596_v48  ;;  %v387_v59 = vadd.s32 4294967284, %v384_v51 }
 0x137   : > { %v610_v55 = vsel %vm601_vm9, %v597_v46, %v606_v52  ;;  %627 = vst.msk [vmem:[#allocation2 + $0x40] sm:$0xff] %vm4053_vm8, %v3460_v53 }
 0x138   : > { %v609_v56 = vsel %vm600_vm10, %v596_v48, %v605_v54  ;;  %vm389_vm11 = vcmp.ge.s32.totalorder %v387_v59, 0  ;;  %vm391_vm12 = vcmp.lt.s32.totalorder %v387_v59, 16 }
 0x139   : > { %v3461_v57 = vpack.c.bf16 %v610_v55, %v609_v56  ;;  %v3591_v58 = vpack.i.bf16 %v609_v56, %v607_v49  ;;  %vm4062_vm13 = vmand %vm389_vm11, %vm391_vm12  ;;  %v3666_v55 = vld [vmem:[%s4770_s2] sm:$0xff]   ;;  %v3667_v56 = vld [vmem:[%s4770_s2 + $0x8] sm:$0xff]  }
 0x13b   : > { %3592 = vrot.lane.b32.xlu1 %v3591_v58, %s3866_s19  ;;  %628 = vst.msk [vmem:[#allocation2 + $0x48] sm:$0xff] %vm4053_vm8, %v3461_v57  ;;  %s3291_s19 = sld [smem:[#allocation4 + $0x2]] }
 0x1ad   : > { %v3593_v61 = vpop.permute.xlu1 %3592 }
 0x1ae   : > { %v3595_v62 = vunpack.i.h.bf16 %v3593_v61  ;;  %v3594_v63 = vunpack.i.l.bf16 %v3593_v61  ;;  %v922_v61 = vstv %s3290_s28 }
 0x1b0   : > { %v657_v0 = vsel %vm4062_vm13, %v3595_v62, 0.0  ;;  %v655_v1 = vsel %vm4062_vm13, %v3594_v63, 0.0 }
 0x1b1   : > { %v659_v2 = vpack.c.bf16 %v657_v0, %v655_v1 }
 0x1b3   : > { %v3298_v11 = vcombine.high %v659_v2, %v3867_v3  ;;  %v3297_v6 = vcombine.low %v659_v2, %v3867_v3 }
 0x1b5   : > { %671 = vrot.lane.b32.xlu1 %v3298_v11, %s3863_s15  ;;  %669 = vrot.lane.b32.xlu0 %v3297_v6, %s3863_s15 }
 0x227   : > { %v672_v12 = vpop.permute.xlu1 %671  ;;  %v670_v13 = vpop.permute.xlu0 %669 }
 0x228   : > { %v674_v14 = vrot.slane %v672_v12, 4  ;;  %v673_v15 = vrot.slane %v670_v13, 4 }
 0x22a   : > { %v677_v16 = vsel %vm501_vm1, %v672_v12, %v674_v14  ;;  %v676_v17 = vsel %vm501_vm1, %v670_v13, %v673_v15 }
 0x22b   : > { %681 = vst.msk [vmem:[#allocation2 + $0x48] sm:$0xff] %vm4053_vm8, %v677_v16  ;;  %680 = vst.msk [vmem:[#allocation2 + $0x40] sm:$0xff] %vm4053_vm8, %v676_v17 }
 0x232   : > { %v683_v21 = vld [vmem:[#allocation2 + $0x48] sm:$0xff]  ;;  %v682_v22 = vld [vmem:[#allocation2 + $0x40] sm:$0xff] }
 0x233   : > { %687 = vst.msk [vmem:[#allocation3 + $0x8] sm:$0xff] %vm4081_vm15, %v683_v21  ;;  %686 = vst.msk [vmem:[#allocation3] sm:$0xff] %vm4081_vm15, %v682_v22  ;;  %745 = vrot.lane.b32.xlu1 %v683_v21, %s3865_s17  ;;  %743 = vrot.lane.b32.xlu0 %v682_v22, %s3865_s17 }
 0x237   : > { %728 = vrot.lane.b32.xlu1 %v683_v21, %s3864_s16  ;;  %726 = vrot.lane.b32.xlu0 %v682_v22, %s3864_s16 }
 0x23a   : > { %v3663_v53 = vld [vmem:[#allocation3 + $0x4] ss:$8 sps:$4 sm:$0xff]   ;;  %v3665_v54 = vld [vmem:[#allocation3] ss:$8 sps:$4 sm:$0xff]  }
 0x23b   : > { %711 = vrot.lane.b32.xlu1 %v683_v21, %s3863_s15  ;;  %709 = vrot.lane.b32.xlu0 %v682_v22, %s3863_s15 }
 0x23f   : > { %694 = vrot.lane.b32.xlu1 %v683_v21, %s3862_s14  ;;  %692 = vrot.lane.b32.xlu0 %v682_v22, %s3862_s14 }
 0x243   : > { %791 = vperm.xlu1 %3597, %v4100_v23   ;;  %786 = vperm.xlu0 %3596, %v4105_v24  }
 0x247   : > { %776 = vperm.xlu1 %3597, %v3980_v9   ;;  %781 = vperm.xlu0 %3596, %v3988_v10  }
 0x24b   : > { %3608 = vset.pattern.permute.xlu1 %v3860_v7  ;;  %3609 = vset.pattern.permute.xlu0 %v3860_v7 }
 0x2a5   : > { %v746_v25 = vpop.permute.xlu1 %745  ;;  %v744_v26 = vpop.permute.xlu0 %743 }
 0x2a6   : > { %v748_v27 = vrot.slane %v746_v25, 4  ;;  %v747_v28 = vrot.slane %v744_v26, 4 }
 0x2a8   : > { %v751_v29 = vsel %vm571_vm3, %v746_v25, %v748_v27  ;;  %v750_v30 = vsel %vm571_vm3, %v744_v26, %v747_v28 }
 0x2a9   : > { %755 = vst.msk [vmem:[#allocation3 + $0x48] sm:$0xff] %vm4081_vm15, %v751_v29  ;;  %754 = vst.msk [vmem:[#allocation3 + $0x40] sm:$0xff] %vm4081_vm15, %v750_v30  ;;  %v729_v9 = vpop.permute.xlu1 %728  ;;  %v727_v10 = vpop.permute.xlu0 %726 }
 0x2aa   : > { %v731_v19 = vrot.slane %v729_v9, 4  ;;  %v730_v31 = vrot.slane %v727_v10, 4 }
 0x2ac   : > { %v734_v7 = vsel %vm536_vm2, %v729_v9, %v731_v19  ;;  %v733_v32 = vsel %vm536_vm2, %v727_v10, %v730_v31 }
 0x2ad   : > { %738 = vst.msk [vmem:[#allocation3 + $0x38] sm:$0xff] %vm4081_vm15, %v734_v7  ;;  %737 = vst.msk [vmem:[#allocation3 + $0x30] sm:$0xff] %vm4081_vm15, %v733_v32  ;;  %v712_v33 = vpop.permute.xlu1 %711  ;;  %v710_v34 = vpop.permute.xlu0 %709 }
 0x2ae   : > { %v714_v35 = vrot.slane %v712_v33, 4  ;;  %v713_v20 = vrot.slane %v710_v34, 4 }
 0x2b0   : > { %v717_v36 = vsel %vm501_vm1, %v712_v33, %v714_v35  ;;  %v716_v37 = vsel %vm501_vm1, %v710_v34, %v713_v20  ;;  %v3651_v38 = vld [vmem:[#allocation3 + $0x44] ss:$8 sps:$4 sm:$0xff]   ;;  %v3653_v41 = vld [vmem:[#allocation3 + $0x40] ss:$8 sps:$4 sm:$0xff]  }
 0x2b1   : > { %721 = vst.msk [vmem:[#allocation3 + $0x28] sm:$0xff] %vm4081_vm15, %v717_v36  ;;  %720 = vst.msk [vmem:[#allocation3 + $0x20] sm:$0xff] %vm4081_vm15, %v716_v37  ;;  %v695_v39 = vpop.permute.xlu1 %694  ;;  %v693_v40 = vpop.permute.xlu0 %692  ;;  %867 = vmatprep.subr.bf16.mxu0 %v3651_v38 }
 0x2b2   : > { %v697_v42 = vrot.slane %v695_v39, 4  ;;  %v696_v43 = vrot.slane %v693_v40, 4  ;;  %868 = vmatpush1.bf16.msra.mxu0 %v3653_v41 }
 0x2b4   : > { %v700_v44 = vsel %vm466_vm0, %v695_v39, %v697_v42  ;;  %v699_v45 = vsel %vm466_vm0, %v693_v40, %v696_v43  ;;  %v3654_v46 = vld [vmem:[#allocation3 + $0x34] ss:$8 sps:$4 sm:$0xff]   ;;  %v3656_v47 = vld [vmem:[#allocation3 + $0x30] ss:$8 sps:$4 sm:$0xff]  }
 0x2b5   : > { %704 = vst.msk [vmem:[#allocation3 + $0x18] sm:$0xff] %vm4081_vm15, %v700_v44  ;;  %703 = vst.msk [vmem:[#allocation3 + $0x10] sm:$0xff] %vm4081_vm15, %v699_v45  ;;  %869 = vmatprep.subr.bf16.mxu0 %v3654_v46 }
 0x2b6   : > { %870 = vmatpush1.bf16.msra.mxu0 %v3656_v47 }
 0x2b8   : > { %v3657_v48 = vld [vmem:[#allocation3 + $0x24] ss:$8 sps:$4 sm:$0xff]   ;;  %v3659_v49 = vld [vmem:[#allocation3 + $0x20] ss:$8 sps:$4 sm:$0xff]  }
 0x2b9   : > { %871 = vmatprep.subr.bf16.mxu0 %v3657_v48 }
 0x2ba   : > { %872 = vmatpush1.bf16.msra.mxu0 %v3659_v49 }
 0x2bc   : > { %v3660_v50 = vld [vmem:[#allocation3 + $0x14] ss:$8 sps:$4 sm:$0xff]   ;;  %v3662_v52 = vld [vmem:[#allocation3 + $0x10] ss:$8 sps:$4 sm:$0xff]  }
 0x2bd   : > { %873 = vmatprep.subr.bf16.mxu0 %v3660_v50 }
 0x2be   : > { %874 = vmatpush1.bf16.msra.mxu0 %v3662_v52  ;;  %v792_v57 = vpop.permute.xlu1 %791  ;;  %v787_v58 = vpop.permute.xlu0 %786 }
 0x2bf   : > { %875 = vmatprep.subr.bf16.mxu0 %v3663_v53 }
 0x2c2   : > { %876 = vmatpush1.bf16.msra.mxu0 %v3665_v54  ;;  %v777_v51 = vpop.permute.xlu1 %776  ;;  %v782_v0 = vpop.permute.xlu0 %781 }
 0x2c5   : > { %3311 = vmatmul.mubr.msk.bf16.vlgmr.msra.gmra.mxu0 %vm854_vm5, %v3666_v55 }
 0x2c6   : > { %903 = vmatprep.mubr.bf16.mxu0 %v3859_v5 }
 0x2cd   : > { %3312 = vmatmul.mubr.msk.bf16.gmra.mxu0 %vm854_vm5, %v3667_v56 }
 0x385   : > { %v895_v59 = vpop.f32.mrf.mxu0 }
 0x386   : > { %v896_v62 = vadd.f32 %v895_v59, %v777_v51 }
 0x387   : > { %v897_v63 = vpop.f32.mrf.mxu0 }
 0x388   : > { %vm914_vm6 = vcmp.gt.f32.partialorder %v896_v62, 0.0  ;;  %v923_v1 = vmul.f32 %v922_v61, %v896_v62  ;;  %v898_v2 = vadd.f32 %v897_v63, %v777_v51 }
 0x389   : > { %v899_v11 = vpop.f32.mrf.mxu0 }
 0x38a   : > { %vm915_vm7 = vcmp.gt.f32.partialorder %v898_v2, 0.0  ;;  %v924_v6 = vmul.f32 %v922_v61, %v898_v2  ;;  %v900_v12 = vadd.f32 %v899_v11, %v782_v0  ;;  %v931_v14 = vsel %vm914_vm6, %v896_v62, %v923_v1 }
 0x38b   : > { %v901_v13 = vpop.f32.mrf.mxu0  ;;  %vm1067_vm6 = vcmask 97284  }
 0x38c   : > { %v932_v15 = vsel %vm915_vm7, %v898_v2, %v924_v6  ;;  %vm916_vm8 = vcmp.gt.f32.partialorder %v900_v12, 0.0  ;;  %v925_v16 = vmul.f32 %v922_v61, %v900_v12  ;;  %v902_v17 = vadd.f32 %v901_v13, %v782_v0  ;;  %vm4183_vm7 = vmor %vm1067_vm6, %vm624_vm4 }
 0x38d   : > { %v905_v21 = vpop.f32.mrf.mxu0  ;;  %v3462_v22 = vpack.c.bf16 %v932_v15, %v931_v14  ;;  %v3769_v15 = vld [vmem:[%s4772_s4 + $0x4] ss:$12 sps:$4 sm:$0xff]  }
 0x38e   : > { %vm917_vm9 = vcmp.gt.f32.partialorder %v902_v17, 0.0  ;;  %v926_v25 = vmul.f32 %v922_v61, %v902_v17  ;;  %v906_v26 = vadd.f32 %v905_v21, %v787_v58  ;;  %v933_v27 = vsel %vm916_vm8, %v900_v12, %v925_v16  ;;  %2404 = vmatprep.mubr.bf16.mxu0 %v3769_v15 }
 0x38f   : > { %v907_v28 = vpop.f32.mrf.mxu0  ;;  %v3603_v29 = vpack.i.bf16 %v933_v27, %v931_v14  ;;  %963 = vst.msk [vmem:[#allocation2] sm:$0xff] %vm4081_vm15, %v3462_v22  ;;  %v3700_v22 = vld [vmem:[%s4771_s3 + $0x4] ss:$8 sps:$4 sm:$0xff]  }
 0x390   : > { %v934_v30 = vsel %vm917_vm9, %v902_v17, %v926_v25  ;;  %vm918_vm10 = vcmp.gt.f32.partialorder %v906_v26, 0.0  ;;  %v927_v9 = vmul.f32 %v922_v61, %v906_v26  ;;  %v908_v10 = vadd.f32 %v907_v28, %v787_v58  ;;  %v1235_v25 = vld [vmem:[%s4775_s7 + $0x30] sm:$0xff]  ;;  %v1234_v28 = vld [vmem:[%s4775_s7 + $0x28] sm:$0xff] }
 0x391   : > { %v909_v19 = vpop.f32.mrf.mxu0  ;;  %v3463_v31 = vpack.c.bf16 %v934_v30, %v933_v27  ;;  %3604 = vrot.lane.b32.xlu0 %v3603_v29, %s3868_s29  ;;  %v1233_v27 = vld [vmem:[%s4775_s7 + $0x20] sm:$0xff]  ;;  %v1230_v30 = vld [vmem:[%s4775_s7 + $0x8] sm:$0xff] }
 0x392   : > { %vm919_vm11 = vcmp.gt.f32.partialorder %v908_v10, 0.0  ;;  %v928_v7 = vmul.f32 %v922_v61, %v908_v10  ;;  %v910_v32 = vadd.f32 %v909_v19, %v792_v57  ;;  %v935_v34 = vsel %vm918_vm10, %v906_v26, %v927_v9  ;;  %v1236_v26 = vld [vmem:[%s4775_s7 + $0x38] sm:$0xff]  ;;  %v1229_v29 = vld [vmem:[%s4775_s7] sm:$0xff] }
 0x393   : > { %964 = vst.msk [vmem:[#allocation2 + $0x8] sm:$0xff] %vm4081_vm15, %v3463_v31  ;;  %v911_v33 = vpop.f32.mrf.mxu0 }
 0x394   : > { %v936_v35 = vsel %vm919_vm11, %v908_v10, %v928_v7  ;;  %vm920_vm12 = vcmp.gt.f32.partialorder %v910_v32, 0.0  ;;  %v929_v20 = vmul.f32 %v922_v61, %v910_v32  ;;  %v912_v36 = vadd.f32 %v911_v33, %v792_v57 }
 0x395   : > { %v3464_v37 = vpack.c.bf16 %v936_v35, %v935_v34 }
 0x396   : > { %vm921_vm14 = vcmp.gt.f32.partialorder %v912_v36, 0.0  ;;  %v930_v38 = vmul.f32 %v922_v61, %v912_v36  ;;  %v937_v39 = vsel %vm920_vm12, %v910_v32, %v929_v20 }
 0x397   : > { %v3598_v40 = vpack.i.bf16 %v937_v39, %v935_v34  ;;  %965 = vst.msk [vmem:[#allocation2 + $0x10] sm:$0xff] %vm4081_vm15, %v3464_v37 }
 0x398   : > { %v938_v41 = vsel %vm921_vm14, %v912_v36, %v930_v38 }
 0x399   : > { %v3465_v42 = vpack.c.bf16 %v938_v41, %v937_v39  ;;  %3599 = vrot.lane.b32.xlu1 %v3598_v40, %s3868_s29  ;;  %s3292_s29 = sld [smem:[#allocation4 + $0x3]] }
 0x39b   : > { %966 = vst.msk [vmem:[#allocation2 + $0x18] sm:$0xff] %vm4081_vm15, %v3465_v42 }
 0x403   : > { %v3605_v43 = vpop.permute.xlu0 %3604 }
 0x404   : > { %v3607_v44 = vunpack.i.h.bf16 %v3605_v43  ;;  %v3606_v45 = vunpack.i.l.bf16 %v3605_v43 }
 0x406   : > { %v1013_v49 = vsel %vm4062_vm13, %v3607_v44, 0.0  ;;  %v1011_v50 = vsel %vm4062_vm13, %v3606_v45, 0.0 }
 0x407   : > { %v1019_v57 = vpack.c.bf16 %v1013_v49, %v1011_v50 }
 0x409   : > { %v3318_v58 = vcombine.high %v1019_v57, %v3867_v3  ;;  %v3317_v51 = vcombine.low %v1019_v57, %v3867_v3 }
 0x40b   : > { %v3600_v46 = vpop.permute.xlu1 %3599 }
 0x40c   : > { %v3602_v47 = vunpack.i.h.bf16 %v3600_v46  ;;  %v3601_v48 = vunpack.i.l.bf16 %v3600_v46 }
 0x40e   : > { %v1017_v52 = vsel %vm4062_vm13, %v3602_v47, 0.0  ;;  %v1015_v53 = vsel %vm4062_vm13, %v3601_v48, 0.0 }
 0x40f   : > { %v1021_v54 = vpack.c.bf16 %v1017_v52, %v1015_v53 }
 0x411   : > { %v3319_v55 = vcombine.low %v1021_v54, %v3867_v3  ;;  %v3320_v56 = vcombine.high %v1021_v54, %v3867_v3 }
 0x413   : > { %1043 = vrot.lane.b32.xlu1 %v3319_v55, %s3865_s17  ;;  %1045 = vrot.lane.b32.xlu0 %v3320_v56, %s3865_s17 }
 0x417   : > { %1041 = vrot.lane.b32.xlu0 %v3318_v58, %s3865_s17  ;;  %1039 = vrot.lane.b32.xlu1 %v3317_v51, %s3865_s17 }
 0x485   : > { %v1044_v59 = vpop.permute.xlu1 %1043  ;;  %v1046_v61 = vpop.permute.xlu0 %1045 }
 0x486   : > { %v1049_v62 = vrot.slane %v1044_v59, 4  ;;  %v1050_v63 = vrot.slane %v1046_v61, 4 }
 0x488   : > { %v1053_v0 = vsel %vm571_vm3, %v1044_v59, %v1049_v62  ;;  %v1054_v1 = vsel %vm571_vm3, %v1046_v61, %v1050_v63 }
 0x489   : > { %1061 = vst.msk [vmem:[#allocation2 + $0x10] sm:$0xff] %vm4081_vm15, %v1053_v0  ;;  %1062 = vst.msk [vmem:[#allocation2 + $0x18] sm:$0xff] %vm4081_vm15, %v1054_v1  ;;  %v1042_v2 = vpop.permute.xlu0 %1041  ;;  %v1040_v11 = vpop.permute.xlu1 %1039 }
 0x48a   : > { %v1048_v6 = vrot.slane %v1042_v2, 4  ;;  %v1047_v12 = vrot.slane %v1040_v11, 4 }
 0x48c   : > { %v1052_v13 = vsel %vm571_vm3, %v1042_v2, %v1048_v6  ;;  %v1051_v14 = vsel %vm571_vm3, %v1040_v11, %v1047_v12 }
 0x48d   : > { %1060 = vst.msk [vmem:[#allocation2 + $0x8] sm:$0xff] %vm4081_vm15, %v1052_v13  ;;  %1059 = vst.msk [vmem:[#allocation2] sm:$0xff] %vm4081_vm15, %v1051_v14  ;;  %vm1413_vm15 = vcmask 261120  }
 0x48e   : > { %3349 = vmatprep.mubr.msk.bf16.mxu1 %vm1413_vm15, %v3700_v22 }
 0x490   : > { %v1065_v16 = vld [vmem:[#allocation2 + $0x10] sm:$0xff]  ;;  %v1066_v17 = vld [vmem:[#allocation2 + $0x18] sm:$0xff] }
 0x491   : > { %1071 = vst.msk [vmem:[#allocation3 + $0x10] sm:$0xff] %vm4183_vm7, %v1065_v16  ;;  %1072 = vst.msk [vmem:[#allocation3 + $0x18] sm:$0xff] %vm4183_vm7, %v1066_v17  ;;  %1151 = vrot.lane.b32.xlu0 %v1066_v17, %s3864_s16  ;;  %1149 = vrot.lane.b32.xlu1 %v1065_v16, %s3864_s16 }
 0x494   : > { %v1064_v21 = vld [vmem:[#allocation2 + $0x8] sm:$0xff]  ;;  %v1063_v18 = vld [vmem:[#allocation2] sm:$0xff] }
 0x495   : > { %1070 = vst.msk [vmem:[#allocation3 + $0x8] sm:$0xff] %vm4183_vm7, %v1064_v21  ;;  %1069 = vst.msk [vmem:[#allocation3] sm:$0xff] %vm4183_vm7, %v1063_v18  ;;  %1147 = vrot.lane.b32.xlu0 %v1064_v21, %s3864_s16  ;;  %1145 = vrot.lane.b32.xlu1 %v1063_v18, %s3864_s16 }
 0x499   : > { %1119 = vrot.lane.b32.xlu0 %v1066_v17, %s3863_s15  ;;  %1117 = vrot.lane.b32.xlu1 %v1065_v16, %s3863_s15 }
 0x49d   : > { %1115 = vrot.lane.b32.xlu0 %v1064_v21, %s3863_s15  ;;  %1113 = vrot.lane.b32.xlu1 %v1063_v18, %s3863_s15 }
 0x4a1   : > { %1087 = vrot.lane.b32.xlu0 %v1066_v17, %s3862_s14  ;;  %1085 = vrot.lane.b32.xlu1 %v1065_v16, %s3862_s14 }
 0x4a5   : > { %1083 = vrot.lane.b32.xlu0 %v1064_v21, %s3862_s14  ;;  %1081 = vrot.lane.b32.xlu1 %v1063_v18, %s3862_s14 }
 0x4a9   : > { %1183 = vrot.lane.b32.xlu0 %v1066_v17, %s3865_s17  ;;  %1181 = vrot.lane.b32.xlu1 %v1065_v16, %s3865_s17 }
 0x4ad   : > { %1179 = vrot.lane.b32.xlu0 %v1064_v21, %s3865_s17  ;;  %1177 = vrot.lane.b32.xlu1 %v1063_v18, %s3865_s17 }
 0x4b1   : > { %1269 = vperm.xlu1 %3608, %v1235_v25   ;;  %1274 = vperm.xlu0 %3609, %v1236_v26  }
 0x4b5   : > { %1259 = vperm.xlu1 %3608, %v1233_v27   ;;  %1249 = vperm.xlu0 %3609, %v4105_v24  }
 0x4b9   : > { %1264 = vperm.xlu1 %3608, %v1234_v28   ;;  %1239 = vperm.xlu0 %3609, %v1229_v29  }
 0x4bd   : > { %1254 = vperm.xlu1 %3608, %v4100_v23   ;;  %3630 = vset.pattern.permute.xlu0 %v3858_v4 }
 0x4c1   : > { %1244 = vperm.xlu1 %3608, %v1230_v30  }
 0x4c5   : > { %3631 = vset.pattern.permute.xlu1 %v3858_v4 }
 0x503   : > { %v1152_v24 = vpop.permute.xlu0 %1151  ;;  %v1150_v9 = vpop.permute.xlu1 %1149 }
 0x504   : > { %v1156_v10 = vrot.slane %v1152_v24, 4  ;;  %v1155_v19 = vrot.slane %v1150_v9, 4 }
 0x506   : > { %v1160_v31 = vsel %vm536_vm2, %v1152_v24, %v1156_v10  ;;  %v1159_v7 = vsel %vm536_vm2, %v1150_v9, %v1155_v19  ;;  %v3686_v9 = vld [vmem:[#allocation3 + $0x14] ss:$8 sps:$4 sm:$0xff]   ;;  %v3688_v10 = vld [vmem:[#allocation3 + $0x10] ss:$8 sps:$4 sm:$0xff]   ;;  %v3689_v19 = vld [vmem:[#allocation3 + $0x4] ss:$8 sps:$4 sm:$0xff]  }
 0x507   : > { %1168 = vst.msk [vmem:[#allocation3 + $0x78] sm:$0xff] %vm4183_vm7, %v1160_v31  ;;  %1167 = vst.msk [vmem:[#allocation3 + $0x70] sm:$0xff] %vm4183_vm7, %v1159_v7  ;;  %v1148_v23 = vpop.permute.xlu0 %1147  ;;  %v1146_v32 = vpop.permute.xlu1 %1145  ;;  %v3691_v31 = vld [vmem:[#allocation3] ss:$8 sps:$4 sm:$0xff]  }
 0x508   : > { %v1154_v33 = vrot.slane %v1148_v23, 4  ;;  %v1153_v34 = vrot.slane %v1146_v32, 4 }
 0x50a   : > { %v1158_v4 = vsel %vm536_vm2, %v1148_v23, %v1154_v33  ;;  %v1157_v35 = vsel %vm536_vm2, %v1146_v32, %v1153_v34  ;;  %v3698_v34 = vld [vmem:[%s4771_s3] ss:$8 sps:$4 sm:$0xff]  }
 0x50b   : > { %1166 = vst.msk [vmem:[#allocation3 + $0x68] sm:$0xff] %vm4183_vm7, %v1158_v4  ;;  %1165 = vst.msk [vmem:[#allocation3 + $0x60] sm:$0xff] %vm4183_vm7, %v1157_v35  ;;  %v1120_v20 = vpop.permute.xlu0 %1119  ;;  %v1118_v36 = vpop.permute.xlu1 %1117  ;;  %v3701_v4 = vld [vmem:[%s4771_s3 + $0x14] ss:$8 sps:$4 sm:$0xff]   ;;  %v3703_v35 = vld [vmem:[%s4771_s3 + $0x10] ss:$8 sps:$4 sm:$0xff]  }
 0x50c   : > { %v1124_v37 = vrot.slane %v1120_v20, 4  ;;  %v1123_v38 = vrot.slane %v1118_v36, 4 }
 0x50e   : > { %v1128_v39 = vsel %vm501_vm1, %v1120_v20, %v1124_v37  ;;  %v1127_v40 = vsel %vm501_vm1, %v1118_v36, %v1123_v38  ;;  %v3668_v41 = vld [vmem:[#allocation3 + $0x74] ss:$8 sps:$4 sm:$0xff]   ;;  %v3670_v44 = vld [vmem:[#allocation3 + $0x70] ss:$8 sps:$4 sm:$0xff]   ;;  %v3704_v20 = vld [vmem:[%s4771_s3 + $0x24] ss:$8 sps:$4 sm:$0xff]  }
 0x50f   : > { %1136 = vst.msk [vmem:[#allocation3 + $0x58] sm:$0xff] %vm4183_vm7, %v1128_v39  ;;  %1135 = vst.msk [vmem:[#allocation3 + $0x50] sm:$0xff] %vm4183_vm7, %v1127_v40  ;;  %v1116_v42 = vpop.permute.xlu0 %1115  ;;  %v1114_v43 = vpop.permute.xlu1 %1113  ;;  %1426 = vmatprep.subr.bf16.mxu1 %v3668_v41  ;;  %v3706_v36 = vld [vmem:[%s4771_s3 + $0x20] ss:$8 sps:$4 sm:$0xff]   ;;  %v3707_v37 = vld [vmem:[%s4771_s3 + $0x34] ss:$8 sps:$4 sm:$0xff]  }
 0x510   : > { %v1122_v45 = vrot.slane %v1116_v42, 4  ;;  %v1121_v46 = vrot.slane %v1114_v43, 4  ;;  %1427 = vmatpush1.bf16.msra.mxu1 %v3670_v44  ;;  %v3709_v38 = vld [vmem:[%s4771_s3 + $0x30] ss:$8 sps:$4 sm:$0xff]  }
 0x512   : > { %v1126_v47 = vsel %vm501_vm1, %v1116_v42, %v1122_v45  ;;  %v1125_v48 = vsel %vm501_vm1, %v1114_v43, %v1121_v46  ;;  %v3671_v49 = vld [vmem:[#allocation3 + $0x64] ss:$8 sps:$4 sm:$0xff]   ;;  %v3673_v53 = vld [vmem:[#allocation3 + $0x60] ss:$8 sps:$4 sm:$0xff]  }
 0x513   : > { %1134 = vst.msk [vmem:[#allocation3 + $0x48] sm:$0xff] %vm4183_vm7, %v1126_v47  ;;  %1133 = vst.msk [vmem:[#allocation3 + $0x40] sm:$0xff] %vm4183_vm7, %v1125_v48  ;;  %v1088_v50 = vpop.permute.xlu0 %1087  ;;  %v1086_v52 = vpop.permute.xlu1 %1085  ;;  %1428 = vmatprep.subr.bf16.mxu1 %v3671_v49  ;;  %v4316_v47 = vstv %s3291_s19 }
 0x514   : > { %v1092_v54 = vrot.slane %v1088_v50, 4  ;;  %v1091_v55 = vrot.slane %v1086_v52, 4  ;;  %1429 = vmatpush1.bf16.msra.mxu1 %v3673_v53 }
 0x516   : > { %v1096_v56 = vsel %vm466_vm0, %v1088_v50, %v1092_v54  ;;  %v1095_v57 = vsel %vm466_vm0, %v1086_v52, %v1091_v55  ;;  %v3674_v58 = vld [vmem:[#allocation3 + $0x54] ss:$8 sps:$4 sm:$0xff]   ;;  %v3676_v61 = vld [vmem:[#allocation3 + $0x50] ss:$8 sps:$4 sm:$0xff]  }
 0x517   : > { %1104 = vst.msk [vmem:[#allocation3 + $0x38] sm:$0xff] %vm4183_vm7, %v1096_v56  ;;  %1103 = vst.msk [vmem:[#allocation3 + $0x30] sm:$0xff] %vm4183_vm7, %v1095_v57  ;;  %v1084_v51 = vpop.permute.xlu0 %1083  ;;  %v1082_v59 = vpop.permute.xlu1 %1081  ;;  %1430 = vmatprep.subr.bf16.mxu1 %v3674_v58 }
 0x518   : > { %v1090_v62 = vrot.slane %v1084_v51, 4  ;;  %v1089_v63 = vrot.slane %v1082_v59, 4  ;;  %1431 = vmatpush1.bf16.msra.mxu1 %v3676_v61 }
 0x51a   : > { %v1094_v0 = vsel %vm466_vm0, %v1084_v51, %v1090_v62  ;;  %v1093_v1 = vsel %vm466_vm0, %v1082_v59, %v1089_v63  ;;  %v3677_v2 = vld [vmem:[#allocation3 + $0x44] ss:$8 sps:$4 sm:$0xff]   ;;  %v3679_v12 = vld [vmem:[#allocation3 + $0x40] ss:$8 sps:$4 sm:$0xff]  }
 0x51b   : > { %1102 = vst.msk [vmem:[#allocation3 + $0x28] sm:$0xff] %vm4183_vm7, %v1094_v0  ;;  %1101 = vst.msk [vmem:[#allocation3 + $0x20] sm:$0xff] %vm4183_vm7, %v1093_v1  ;;  %v1184_v11 = vpop.permute.xlu0 %1183  ;;  %v1182_v6 = vpop.permute.xlu1 %1181  ;;  %1432 = vmatprep.subr.bf16.mxu1 %v3677_v2 }
 0x51c   : > { %v1188_v13 = vrot.slane %v1184_v11, 4  ;;  %v1187_v14 = vrot.slane %v1182_v6, 4  ;;  %1433 = vmatpush1.bf16.msra.mxu1 %v3679_v12 }
 0x51e   : > { %v1192_v16 = vsel %vm571_vm3, %v1184_v11, %v1188_v13  ;;  %v1191_v17 = vsel %vm571_vm3, %v1182_v6, %v1187_v14  ;;  %v3680_v21 = vld [vmem:[#allocation3 + $0x34] ss:$8 sps:$4 sm:$0xff]   ;;  %v3682_v25 = vld [vmem:[#allocation3 + $0x30] ss:$8 sps:$4 sm:$0xff]  }
 0x51f   : > { %1200 = vst.msk [vmem:[#allocation3 + $0x98] sm:$0xff] %vm4183_vm7, %v1192_v16  ;;  %1199 = vst.msk [vmem:[#allocation3 + $0x90] sm:$0xff] %vm4183_vm7, %v1191_v17  ;;  %v1180_v18 = vpop.permute.xlu0 %1179  ;;  %v1178_v22 = vpop.permute.xlu1 %1177  ;;  %1434 = vmatprep.subr.bf16.mxu1 %v3680_v21 }
 0x520   : > { %v1186_v26 = vrot.slane %v1180_v18, 4  ;;  %v1185_v27 = vrot.slane %v1178_v22, 4  ;;  %1435 = vmatpush1.bf16.msra.mxu1 %v3682_v25 }
 0x522   : > { %v1190_v28 = vsel %vm571_vm3, %v1180_v18, %v1186_v26  ;;  %v1189_v29 = vsel %vm571_vm3, %v1178_v22, %v1185_v27  ;;  %v3683_v30 = vld [vmem:[#allocation3 + $0x24] ss:$8 sps:$4 sm:$0xff]   ;;  %v3685_v24 = vld [vmem:[#allocation3 + $0x20] ss:$8 sps:$4 sm:$0xff]  }
 0x523   : > { %1198 = vst.msk [vmem:[#allocation3 + $0x88] sm:$0xff] %vm4183_vm7, %v1190_v28  ;;  %1197 = vst.msk [vmem:[#allocation3 + $0x80] sm:$0xff] %vm4183_vm7, %v1189_v29  ;;  %1436 = vmatprep.subr.bf16.mxu1 %v3683_v30 }
 0x524   : > { %1437 = vmatpush1.bf16.msra.mxu1 %v3685_v24 }
 0x525   : > { %1438 = vmatprep.subr.bf16.mxu1 %v3686_v9 }
 0x526   : > { %v3692_v7 = vld [vmem:[#allocation3 + $0x94] ss:$8 sps:$4 sm:$0xff]   ;;  %v3694_v23 = vld [vmem:[#allocation3 + $0x90] ss:$8 sps:$4 sm:$0xff]  }
 0x528   : > { %1439 = vmatpush1.bf16.msra.mxu1 %v3688_v10 }
 0x529   : > { %1440 = vmatprep.subr.bf16.mxu1 %v3689_v19 }
 0x52a   : > { %v3695_v32 = vld [vmem:[#allocation3 + $0x84] ss:$8 sps:$4 sm:$0xff]   ;;  %v3697_v33 = vld [vmem:[#allocation3 + $0x80] ss:$8 sps:$4 sm:$0xff]  }
 0x52c   : > { %1441 = vmatpush1.bf16.msra.mxu1 %v3691_v31  ;;  %v4310_v39 = vpop.permute.xlu1 %1269  ;;  %v4312_v41 = vpop.permute.xlu0 %1274 }
 0x52d   : > { %1454 = vmatprep.subr.bf16.mxu1 %v3692_v7 }
 0x530   : > { %1455 = vmatpush2.bf16.msra.mxu1 %v3694_v23  ;;  %v1260_v40 = vpop.permute.xlu1 %1259  ;;  %v1250_v43 = vpop.permute.xlu0 %1249 }
 0x531   : > { %1456 = vmatprep.subr.bf16.mxu1 %v3695_v32 }
 0x534   : > { %1457 = vmatpush2.bf16.msra.mxu1 %v3697_v33  ;;  %v4314_v42 = vpop.permute.xlu1 %1264  ;;  %v1240_v45 = vpop.permute.xlu0 %1239 }
 0x537   : > { %1459 = vmatmul.mubr.bf16.vlgmr.msra.gmra.mxu1 %v3698_v34 }
 0x538   : > { %3350 = vmatprep.mubr.msk.bf16.mxu1 %vm1413_vm15, %v3701_v4  ;;  %v1255_v44 = vpop.permute.xlu1 %1254 }
 0x53c   : > { %v1245_v50 = vpop.permute.xlu1 %1244 }
 0x53f   : > { %1469 = vmatmul.mubr.bf16.gmra.mxu1 %v3703_v35 }
 0x540   : > { %3351 = vmatprep.mubr.msk.bf16.mxu1 %vm1413_vm15, %v3704_v20 }
 0x547   : > { %1479 = vmatmul.mubr.bf16.gmra.mxu1 %v3706_v36 }
 0x548   : > { %3352 = vmatprep.mubr.msk.bf16.mxu1 %vm1413_vm15, %v3707_v37 }
 0x54f   : > { %1489 = vmatmul.mubr.bf16.gmra.mxu1 %v3709_v38 }
 0x550   : > { %2457 = vmatprep.mubr.bf16.mxu1 %v3859_v5 }
 0x5f7   : > { %v1460_v46 = vpop.f32.mrf.mxu1 }
 0x5f8   : > { %v1461_v48 = vadd.f32 %v1460_v46, %v1240_v45 }
 0x5f9   : > { %v1462_v49 = vpop.f32.mrf.mxu1 }
 0x5fa   : > { %vm1499_vm8 = vcmp.gt.f32.partialorder %v1461_v48, 0.0  ;;  %v1516_v52 = vmul.f32 %v4316_v47, %v1461_v48  ;;  %v1463_v53 = vadd.f32 %v1462_v49, %v1240_v45 }
 0x5fb   : > { %v1464_v54 = vpop.f32.mrf.mxu1 }
 0x5fc   : > { %vm1500_vm9 = vcmp.gt.f32.partialorder %v1463_v53, 0.0  ;;  %v1517_v55 = vmul.f32 %v4316_v47, %v1463_v53  ;;  %v1465_v56 = vadd.f32 %v1464_v54, %v1245_v50  ;;  %v4320_v58 = vsel %vm1499_vm8, %v1461_v48, %v1516_v52 }
 0x5fd   : > { %v1466_v57 = vpop.f32.mrf.mxu1 }
 0x5fe   : > { %v1533_v51 = vsel %vm1500_vm9, %v1463_v53, %v1517_v55  ;;  %vm1501_vm10 = vcmp.gt.f32.partialorder %v1465_v56, 0.0  ;;  %v1518_v59 = vmul.f32 %v4316_v47, %v1465_v56  ;;  %v1467_v61 = vadd.f32 %v1466_v57, %v1245_v50 }
 0x5ff   : > { %v1470_v62 = vpop.f32.mrf.mxu1  ;;  %v3466_v63 = vpack.c.bf16 %v1533_v51, %v4320_v58 }
 0x600   : > { %vm1502_vm11 = vcmp.gt.f32.partialorder %v1467_v61, 0.0  ;;  %v1519_v0 = vmul.f32 %v4316_v47, %v1467_v61  ;;  %v1471_v1 = vadd.f32 %v1470_v62, %v1250_v43  ;;  %v4325_v11 = vsel %vm1501_vm10, %v1465_v56, %v1518_v59 }
 0x601   : > { %v1472_v2 = vpop.f32.mrf.mxu1  ;;  %1596 = vst.msk [vmem:[#allocation2 + $0x40] sm:$0xff] %vm4183_vm7, %v3466_v63  ;;  %v3625_v57 = vpack.i.bf16 %v4325_v11, %v4320_v58 }
 0x602   : > { %v1535_v6 = vsel %vm1502_vm11, %v1467_v61, %v1519_v0  ;;  %vm1503_vm12 = vcmp.gt.f32.partialorder %v1471_v1, 0.0  ;;  %v1520_v12 = vmul.f32 %v4316_v47, %v1471_v1  ;;  %v1473_v13 = vadd.f32 %v1472_v2, %v1250_v43 }
 0x603   : > { %v1474_v14 = vpop.f32.mrf.mxu1  ;;  %v3467_v16 = vpack.c.bf16 %v1535_v6, %v4325_v11 }
 0x604   : > { %vm1504_vm14 = vcmp.gt.f32.partialorder %v1473_v13, 0.0  ;;  %v1521_v17 = vmul.f32 %v4316_v47, %v1473_v13  ;;  %v1475_v21 = vadd.f32 %v1474_v14, %v1255_v44  ;;  %v4334_v22 = vsel %vm1503_vm12, %v1471_v1, %v1520_v12 }
 0x605   : > { %v1476_v18 = vpop.f32.mrf.mxu1  ;;  %1597 = vst.msk [vmem:[#allocation2 + $0x48] sm:$0xff] %vm4183_vm7, %v3467_v16 }
 0x606   : > { %v1537_v25 = vsel %vm1504_vm14, %v1473_v13, %v1521_v17  ;;  %vm1505_vm6 = vcmp.gt.f32.partialorder %v1475_v21, 0.0  ;;  %v1522_v26 = vmul.f32 %v4316_v47, %v1475_v21  ;;  %v1477_v27 = vadd.f32 %v1476_v18, %v1255_v44 }
 0x607   : > { %v1480_v28 = vpop.f32.mrf.mxu1  ;;  %v3468_v29 = vpack.c.bf16 %v1537_v25, %v4334_v22 }
 0x608   : > { %vm1506_vm8 = vcmp.gt.f32.partialorder %v1477_v27, 0.0  ;;  %v1523_v30 = vmul.f32 %v4316_v47, %v1477_v27  ;;  %v1481_v24 = vadd.f32 %v1480_v28, %v1260_v40  ;;  %v1538_v10 = vsel %vm1505_vm6, %v1475_v21, %v1522_v26 }
 0x609   : > { %v1482_v9 = vpop.f32.mrf.mxu1  ;;  %1598 = vst.msk [vmem:[#allocation2 + $0x50] sm:$0xff] %vm4183_vm7, %v3468_v29  ;;  %v3620_v58 = vpack.i.bf16 %v1538_v10, %v4334_v22 }
 0x60a   : > { %v1539_v19 = vsel %vm1506_vm8, %v1477_v27, %v1523_v30  ;;  %vm1507_vm9 = vcmp.gt.f32.partialorder %v1481_v24, 0.0  ;;  %v1524_v31 = vmul.f32 %v4316_v47, %v1481_v24  ;;  %v1483_v7 = vadd.f32 %v1482_v9, %v1260_v40 }
 0x60b   : > { %v1484_v23 = vpop.f32.mrf.mxu1  ;;  %v3469_v32 = vpack.c.bf16 %v1539_v19, %v1538_v10 }
 0x60c   : > { %vm1508_vm10 = vcmp.gt.f32.partialorder %v1483_v7, 0.0  ;;  %v1525_v33 = vmul.f32 %v4316_v47, %v1483_v7  ;;  %v1485_v34 = vadd.f32 %v1484_v23, %v4314_v42  ;;  %v1540_v35 = vsel %vm1507_vm9, %v1481_v24, %v1524_v31 }
 0x60d   : > { %v1486_v4 = vpop.f32.mrf.mxu1  ;;  %1599 = vst.msk [vmem:[#allocation2 + $0x58] sm:$0xff] %vm4183_vm7, %v3469_v32 }
 0x60e   : > { %v1541_v20 = vsel %vm1508_vm10, %v1483_v7, %v1525_v33  ;;  %vm1509_vm11 = vcmp.gt.f32.partialorder %v1485_v34, 0.0  ;;  %v1526_v36 = vmul.f32 %v4316_v47, %v1485_v34  ;;  %v1487_v37 = vadd.f32 %v1486_v4, %v4314_v42 }
 0x60f   : > { %v1490_v38 = vpop.f32.mrf.mxu1  ;;  %v3470_v40 = vpack.c.bf16 %v1541_v20, %v1540_v35  ;;  %vm1764_vm10 = vcmask 998400  }
 0x610   : > { %vm1510_vm12 = vcmp.gt.f32.partialorder %v1487_v37, 0.0  ;;  %v1527_v43 = vmul.f32 %v4316_v47, %v1487_v37  ;;  %v1491_v44 = vadd.f32 %v1490_v38, %v4310_v39  ;;  %v1542_v45 = vsel %vm1509_vm11, %v1485_v34, %v1526_v36 }
 0x611   : > { %v1492_v46 = vpop.f32.mrf.mxu1  ;;  %v3615_v48 = vpack.i.bf16 %v1542_v45, %v1540_v35  ;;  %1600 = vst.msk [vmem:[#allocation2 + $0x60] sm:$0xff] %vm4183_vm7, %v3470_v40  ;;  %vm1797_vm11 = vcmask 64516  }
 0x612   : > { %v1543_v49 = vsel %vm1510_vm12, %v1487_v37, %v1527_v43  ;;  %vm1511_vm14 = vcmp.gt.f32.partialorder %v1491_v44, 0.0  ;;  %v1528_v50 = vmul.f32 %v4316_v47, %v1491_v44  ;;  %v1493_v52 = vadd.f32 %v1492_v46, %v4310_v39  ;;  %vm4405_vm12 = vmor %vm1797_vm11, %vm624_vm4 }
 0x613   : > { %v1494_v42 = vpop.f32.mrf.mxu1  ;;  %v3471_v53 = vpack.c.bf16 %v1543_v49, %v1542_v45  ;;  %3616 = vrot.lane.b32.xlu1 %v3615_v48, %s3869_s20 }
 0x614   : > { %vm1512_vm6 = vcmp.gt.f32.partialorder %v1493_v52, 0.0  ;;  %v1529_v54 = vmul.f32 %v4316_v47, %v1493_v52  ;;  %v1495_v55 = vadd.f32 %v1494_v42, %v4312_v41  ;;  %v1544_v51 = vsel %vm1511_vm14, %v1491_v44, %v1528_v50 }
 0x615   : > { %1601 = vst.msk [vmem:[#allocation2 + $0x68] sm:$0xff] %vm4183_vm7, %v3471_v53  ;;  %v1496_v56 = vpop.f32.mrf.mxu1 }
 0x616   : > { %v1545_v59 = vsel %vm1512_vm6, %v1493_v52, %v1529_v54  ;;  %vm1513_vm8 = vcmp.gt.f32.partialorder %v1495_v55, 0.0  ;;  %v1530_v39 = vmul.f32 %v4316_v47, %v1495_v55  ;;  %v1497_v61 = vadd.f32 %v1496_v56, %v4312_v41 }
 0x617   : > { %3626 = vrot.lane.b32.xlu1 %v3625_v57, %s3869_s20  ;;  %v3472_v62 = vpack.c.bf16 %v1545_v59, %v1544_v51 }
 0x618   : > { %vm1514_vm9 = vcmp.gt.f32.partialorder %v1497_v61, 0.0  ;;  %v1531_v63 = vmul.f32 %v4316_v47, %v1497_v61  ;;  %v1546_v0 = vsel %vm1513_vm8, %v1495_v55, %v1530_v39 }
 0x619   : > { %v3610_v1 = vpack.i.bf16 %v1546_v0, %v1544_v51  ;;  %1602 = vst.msk [vmem:[#allocation2 + $0x70] sm:$0xff] %vm4183_vm7, %v3472_v62 }
 0x61a   : > { %v1547_v2 = vsel %vm1514_vm9, %v1497_v61, %v1531_v63 }
 0x61b   : > { %v3473_v6 = vpack.c.bf16 %v1547_v2, %v1546_v0  ;;  %3611 = vrot.lane.b32.xlu0 %v3610_v1, %s3869_s20 }
 0x61d   : > { %1603 = vst.msk [vmem:[#allocation2 + $0x78] sm:$0xff] %vm4183_vm7, %v3473_v6 }
 0x61f   : > { %3621 = vrot.lane.b32.xlu0 %v3620_v58, %s3869_s20 }
 0x685   : > { %v3617_v41 = vpop.permute.xlu1 %3616 }
 0x686   : > { %v3619_v11 = vunpack.i.h.bf16 %v3617_v41  ;;  %v3618_v12 = vunpack.i.l.bf16 %v3617_v41 }
 0x688   : > { %v1694_v16 = vsel %vm4062_vm13, %v3619_v11, 0.0  ;;  %v1692_v17 = vsel %vm4062_vm13, %v3618_v12, 0.0 }
 0x689   : > { %v3627_v22 = vpop.permute.xlu1 %3626  ;;  %v1704_v29 = vpack.c.bf16 %v1694_v16, %v1692_v17  ;;  %v2114_v16 = vld [vmem:[%s4775_s7 + $0x18] sm:$0xff]  ;;  %v2113_v17 = vld [vmem:[%s4775_s7 + $0x10] sm:$0xff] }
 0x68a   : > { %v3629_v9 = vunpack.i.h.bf16 %v3627_v22  ;;  %v3628_v10 = vunpack.i.l.bf16 %v3627_v22 }
 0x68b   : > { %v3365_v23 = vcombine.low %v1704_v29, %v3867_v3  ;;  %v3366_v32 = vcombine.high %v1704_v29, %v3867_v3 }
 0x68c   : > { %v1686_v33 = vsel %vm4062_vm13, %v3629_v9, 0.0  ;;  %v1684_v34 = vsel %vm4062_vm13, %v3628_v10, 0.0 }
 0x68d   : > { %v3612_v13 = vpop.permute.xlu0 %3611  ;;  %v1700_v4 = vpack.c.bf16 %v1686_v33, %v1684_v34 }
 0x68e   : > { %v3614_v14 = vunpack.i.h.bf16 %v3612_v13  ;;  %v3613_v47 = vunpack.i.l.bf16 %v3612_v13 }
 0x68f   : > { %v3362_v36 = vcombine.high %v1700_v4, %v3867_v3  ;;  %v3361_v37 = vcombine.low %v1700_v4, %v3867_v3 }
 0x690   : > { %v1698_v21 = vsel %vm4062_vm13, %v3614_v14, 0.0  ;;  %v1696_v18 = vsel %vm4062_vm13, %v3613_v47, 0.0 }
 0x691   : > { %v1706_v25 = vpack.c.bf16 %v1698_v21, %v1696_v18  ;;  %v3622_v26 = vpop.permute.xlu0 %3621  ;;  %v4481_v21 = vld [vmem:[%s4775_s7] sm:$0xff]  ;;  %v4486_v18 = vld [vmem:[%s4775_s7 + $0x8] sm:$0xff] }
 0x692   : > { %v3624_v27 = vunpack.i.h.bf16 %v3622_v26  ;;  %v3623_v28 = vunpack.i.l.bf16 %v3622_v26 }
 0x693   : > { %v3367_v30 = vcombine.low %v1706_v25, %v3867_v3  ;;  %v3368_v24 = vcombine.high %v1706_v25, %v3867_v3 }
 0x694   : > { %v1690_v19 = vsel %vm4062_vm13, %v3624_v27, 0.0  ;;  %v1688_v31 = vsel %vm4062_vm13, %v3623_v28, 0.0 }
 0x695   : > { %1752 = vrot.lane.b32.xlu0 %v3367_v30, %s3870_s21  ;;  %1754 = vrot.lane.b32.xlu1 %v3368_v24, %s3870_s21  ;;  %v1702_v7 = vpack.c.bf16 %v1690_v19, %v1688_v31 }
 0x697   : > { %v3363_v35 = vcombine.low %v1702_v7, %v3867_v3  ;;  %v3364_v20 = vcombine.high %v1702_v7, %v3867_v3 }
 0x699   : > { %1748 = vrot.lane.b32.xlu0 %v3365_v23, %s3870_s21  ;;  %1750 = vrot.lane.b32.xlu1 %v3366_v32, %s3870_s21 }
 0x69d   : > { %1744 = vrot.lane.b32.xlu0 %v3363_v35, %s3870_s21  ;;  %1746 = vrot.lane.b32.xlu1 %v3364_v20, %s3870_s21 }
 0x6a1   : > { %1742 = vrot.lane.b32.xlu1 %v3362_v36, %s3870_s21  ;;  %1740 = vrot.lane.b32.xlu0 %v3361_v37, %s3870_s21 }
 0x707   : > { %v1753_v38 = vpop.permute.xlu0 %1752  ;;  %v1755_v40 = vpop.permute.xlu1 %1754 }
 0x708   : > { %v1762_v43 = vrot.slane %v1753_v38, 4  ;;  %v1763_v44 = vrot.slane %v1755_v40, 4 }
 0x70a   : > { %v1771_v45 = vsel %vm1764_vm10, %v1753_v38, %v1762_v43  ;;  %v1772_v46 = vsel %vm1764_vm10, %v1755_v40, %v1763_v44 }
 0x70b   : > { %1787 = vst.msk [vmem:[#allocation2 + $0x70] sm:$0xff] %vm4183_vm7, %v1771_v45  ;;  %1788 = vst.msk [vmem:[#allocation2 + $0x78] sm:$0xff] %vm4183_vm7, %v1772_v46  ;;  %v1749_v48 = vpop.permute.xlu0 %1748  ;;  %v1751_v49 = vpop.permute.xlu1 %1750 }
 0x70c   : > { %v1760_v50 = vrot.slane %v1749_v48, 4  ;;  %v1761_v52 = vrot.slane %v1751_v49, 4 }
 0x70e   : > { %v1769_v42 = vsel %vm1764_vm10, %v1749_v48, %v1760_v50  ;;  %v1770_v53 = vsel %vm1764_vm10, %v1751_v49, %v1761_v52 }
 0x70f   : > { %1785 = vst.msk [vmem:[#allocation2 + $0x60] sm:$0xff] %vm4183_vm7, %v1769_v42  ;;  %1786 = vst.msk [vmem:[#allocation2 + $0x68] sm:$0xff] %vm4183_vm7, %v1770_v53  ;;  %v1745_v54 = vpop.permute.xlu0 %1744  ;;  %v1747_v55 = vpop.permute.xlu1 %1746 }
 0x710   : > { %v1758_v57 = vrot.slane %v1745_v54, 4  ;;  %v1759_v51 = vrot.slane %v1747_v55, 4 }
 0x712   : > { %v1795_v59 = vld [vmem:[#allocation2 + $0x70] sm:$0xff]  ;;  %v1796_v39 = vld [vmem:[#allocation2 + $0x78] sm:$0xff]  ;;  %v1767_v61 = vsel %vm1764_vm10, %v1745_v54, %v1758_v57  ;;  %v1768_v62 = vsel %vm1764_vm10, %v1747_v55, %v1759_v51 }
 0x713   : > { %1805 = vst.msk [vmem:[#allocation3 + $0x30] sm:$0xff] %vm4405_vm12, %v1795_v59  ;;  %1806 = vst.msk [vmem:[#allocation3 + $0x38] sm:$0xff] %vm4405_vm12, %v1796_v39  ;;  %1837 = vrot.lane.b32.xlu1 %v1796_v39, %s3862_s14  ;;  %v1743_v63 = vpop.permute.xlu1 %1742  ;;  %1835 = vrot.lane.b32.xlu0 %v1795_v59, %s3862_s14  ;;  %v1741_v0 = vpop.permute.xlu0 %1740 }
 0x714   : > { %1783 = vst.msk [vmem:[#allocation2 + $0x50] sm:$0xff] %vm4183_vm7, %v1767_v61  ;;  %1784 = vst.msk [vmem:[#allocation2 + $0x58] sm:$0xff] %vm4183_vm7, %v1768_v62  ;;  %v1757_v1 = vrot.slane %v1743_v63, 4  ;;  %v1756_v2 = vrot.slane %v1741_v0, 4 }
 0x716   : > { %v1793_v6 = vld [vmem:[#allocation2 + $0x60] sm:$0xff]  ;;  %v1794_v58 = vld [vmem:[#allocation2 + $0x68] sm:$0xff]  ;;  %v1766_v41 = vsel %vm1764_vm10, %v1743_v63, %v1757_v1  ;;  %v1765_v11 = vsel %vm1764_vm10, %v1741_v0, %v1756_v2 }
 0x717   : > { %1803 = vst.msk [vmem:[#allocation3 + $0x20] sm:$0xff] %vm4405_vm12, %v1793_v6  ;;  %1804 = vst.msk [vmem:[#allocation3 + $0x28] sm:$0xff] %vm4405_vm12, %v1794_v58  ;;  %1833 = vrot.lane.b32.xlu1 %v1794_v58, %s3862_s14  ;;  %1831 = vrot.lane.b32.xlu0 %v1793_v6, %s3862_s14 }
 0x718   : > { %1782 = vst.msk [vmem:[#allocation2 + $0x48] sm:$0xff] %vm4183_vm7, %v1766_v41  ;;  %1781 = vst.msk [vmem:[#allocation2 + $0x40] sm:$0xff] %vm4183_vm7, %v1765_v11  ;;  %vm2365_vm7 = vcmask 523264  }
 0x71a   : > { %v2078_v41 = vld [vmem:[#allocation3 + $0x38] sm:$0xff] }
 0x71b   : > { %v1791_v12 = vld [vmem:[#allocation2 + $0x50] sm:$0xff]  ;;  %v1792_v13 = vld [vmem:[#allocation2 + $0x58] sm:$0xff] }
 0x71c   : > { %1801 = vst.msk [vmem:[#allocation3 + $0x10] sm:$0xff] %vm4405_vm12, %v1791_v12  ;;  %1802 = vst.msk [vmem:[#allocation3 + $0x18] sm:$0xff] %vm4405_vm12, %v1792_v13  ;;  %1829 = vrot.lane.b32.xlu1 %v1792_v13, %s3862_s14  ;;  %1827 = vrot.lane.b32.xlu0 %v1791_v12, %s3862_s14  ;;  %v3722_v11 = vld [vmem:[#allocation3 + $0x34] ss:$8 sps:$4 sm:$0xff]  }
 0x71f   : > { %v1790_v14 = vld [vmem:[#allocation2 + $0x48] sm:$0xff]  ;;  %v1789_v47 = vld [vmem:[#allocation2 + $0x40] sm:$0xff] }
 0x720   : > { %1800 = vst.msk [vmem:[#allocation3 + $0x8] sm:$0xff] %vm4405_vm12, %v1790_v14  ;;  %1799 = vst.msk [vmem:[#allocation3] sm:$0xff] %vm4405_vm12, %v1789_v47  ;;  %1825 = vrot.lane.b32.xlu1 %v1790_v14, %s3862_s14  ;;  %1823 = vrot.lane.b32.xlu0 %v1789_v47, %s3862_s14 }
 0x724   : > { %1961 = vrot.lane.b32.xlu1 %v1794_v58, %s3864_s16  ;;  %1959 = vrot.lane.b32.xlu0 %v1793_v6, %s3864_s16 }
 0x728   : > { %1957 = vrot.lane.b32.xlu1 %v1792_v13, %s3864_s16  ;;  %1955 = vrot.lane.b32.xlu0 %v1791_v12, %s3864_s16 }
 0x72c   : > { %1953 = vrot.lane.b32.xlu1 %v1790_v14, %s3864_s16  ;;  %1951 = vrot.lane.b32.xlu0 %v1789_v47, %s3864_s16 }
 0x730   : > { %1965 = vrot.lane.b32.xlu1 %v1796_v39, %s3864_s16  ;;  %1963 = vrot.lane.b32.xlu0 %v1795_v59, %s3864_s16 }
 0x734   : > { %1897 = vrot.lane.b32.xlu1 %v1794_v58, %s3863_s15  ;;  %1895 = vrot.lane.b32.xlu0 %v1793_v6, %s3863_s15 }
 0x738   : > { %2025 = vrot.lane.b32.xlu1 %v1794_v58, %s3865_s17  ;;  %2023 = vrot.lane.b32.xlu0 %v1793_v6, %s3865_s17  ;;  %v2077_v58 = vld [vmem:[#allocation3 + $0x30] sm:$0xff] }
 0x739   : > { %v3381_v15 = vcombine.low %v2077_v58, %v2078_v41 }
 0x73c   : > { %1893 = vrot.lane.b32.xlu1 %v1792_v13, %s3863_s15  ;;  %1891 = vrot.lane.b32.xlu0 %v1791_v12, %s3863_s15 }
 0x740   : > { %1901 = vrot.lane.b32.xlu1 %v1796_v39, %s3863_s15  ;;  %1899 = vrot.lane.b32.xlu0 %v1795_v59, %s3863_s15 }
 0x744   : > { %2029 = vrot.lane.b32.xlu1 %v1796_v39, %s3865_s17  ;;  %2027 = vrot.lane.b32.xlu0 %v1795_v59, %s3865_s17 }
 0x748   : > { %2021 = vrot.lane.b32.xlu1 %v1792_v13, %s3865_s17  ;;  %2019 = vrot.lane.b32.xlu0 %v1791_v12, %s3865_s17 }
 0x74c   : > { %1889 = vrot.lane.b32.xlu1 %v1790_v14, %s3863_s15  ;;  %1887 = vrot.lane.b32.xlu0 %v1789_v47, %s3863_s15 }
 0x750   : > { %2017 = vrot.lane.b32.xlu1 %v1790_v14, %s3865_s17  ;;  %2015 = vrot.lane.b32.xlu0 %v1789_v47, %s3865_s17 }
 0x754   : > { %2132 = vperm.xlu1 %3631, %v2114_v16   ;;  %2127 = vperm.xlu0 %3630, %v2113_v17  }
 0x758   : > { %2117 = vperm.xlu1 %3631, %v4481_v21   ;;  %2122 = vperm.xlu0 %3630, %v4486_v18  }
 0x75c   : > { %3642 = vset.pattern.permute.xlu1 %v3861_v8  ;;  %3643 = vset.pattern.permute.xlu0 %v3861_v8 }
 0x785   : > { %v1838_v22 = vpop.permute.xlu1 %1837  ;;  %v1836_v25 = vpop.permute.xlu0 %1835 }
 0x786   : > { %v1846_v26 = vrot.slane %v1838_v22, 4  ;;  %v1845_v27 = vrot.slane %v1836_v25, 4 }
 0x788   : > { %v1854_v28 = vsel %vm466_vm0, %v1838_v22, %v1846_v26  ;;  %v1853_v29 = vsel %vm466_vm0, %v1836_v25, %v1845_v27  ;;  %v2075_v22 = vld [vmem:[#allocation3 + $0x20] sm:$0xff]  ;;  %v2076_v25 = vld [vmem:[#allocation3 + $0x28] sm:$0xff] }
 0x789   : > { %1870 = vst.msk [vmem:[#allocation3 + $0x78] sm:$0xff] %vm4405_vm12, %v1854_v28  ;;  %1869 = vst.msk [vmem:[#allocation3 + $0x70] sm:$0xff] %vm4405_vm12, %v1853_v29  ;;  %v1834_v30 = vpop.permute.xlu1 %1833  ;;  %v1832_v24 = vpop.permute.xlu0 %1831  ;;  %v3724_v26 = vld [vmem:[#allocation3 + $0x24] ss:$8 sps:$4 sm:$0xff]  }
 0x78a   : > { %v1844_v9 = vrot.slane %v1834_v30, 4  ;;  %v1843_v10 = vrot.slane %v1832_v24, 4 }
 0x78c   : > { %v1852_v8 = vsel %vm466_vm0, %v1834_v30, %v1844_v9  ;;  %v1851_v19 = vsel %vm466_vm0, %v1832_v24, %v1843_v10  ;;  %v3379_v24 = vcombine.low %v2075_v22, %v2076_v25 }
 0x78d   : > { %1868 = vst.msk [vmem:[#allocation3 + $0x68] sm:$0xff] %vm4405_vm12, %v1852_v8  ;;  %1867 = vst.msk [vmem:[#allocation3 + $0x60] sm:$0xff] %vm4405_vm12, %v1851_v19  ;;  %v2073_v8 = vld [vmem:[#allocation3 + $0x10] sm:$0xff]  ;;  %v2074_v19 = vld [vmem:[#allocation3 + $0x18] sm:$0xff] }
 0x78e   : > { %v1830_v31 = vpop.permute.xlu1 %1829  ;;  %v1828_v7 = vpop.permute.xlu0 %1827 }
 0x78f   : > { %v1842_v23 = vrot.slane %v1830_v31, 4  ;;  %v1841_v32 = vrot.slane %v1828_v7, 4 }
 0x790   : > { %v3710_v4 = vld [vmem:[#allocation3 + $0x74] ss:$8 sps:$4 sm:$0xff]   ;;  %v3712_v36 = vld [vmem:[#allocation3 + $0x70] ss:$8 sps:$4 sm:$0xff]  }
 0x791   : > { %v1850_v33 = vsel %vm466_vm0, %v1830_v31, %v1842_v23  ;;  %v1849_v34 = vsel %vm466_vm0, %v1828_v7, %v1841_v32  ;;  %2372 = vmatprep.subr.bf16.mxu0 %v3710_v4  ;;  %v3726_v31 = vld [vmem:[#allocation3 + $0x14] ss:$8 sps:$4 sm:$0xff]  }
 0x792   : > { %1866 = vst.msk [vmem:[#allocation3 + $0x58] sm:$0xff] %vm4405_vm12, %v1850_v33  ;;  %1865 = vst.msk [vmem:[#allocation3 + $0x50] sm:$0xff] %vm4405_vm12, %v1849_v34  ;;  %v1826_v35 = vpop.permute.xlu1 %1825  ;;  %v1824_v20 = vpop.permute.xlu0 %1823  ;;  %2373 = vmatpush1.bf16.msra.mxu0 %v3712_v36  ;;  %v3377_v34 = vcombine.low %v2073_v8, %v2074_v19 }
 0x793   : > { %v1840_v37 = vrot.slane %v1826_v35, 4  ;;  %v1839_v38 = vrot.slane %v1824_v20, 4 }
 0x794   : > { %v3713_v44 = vld [vmem:[#allocation3 + $0x64] ss:$8 sps:$4 sm:$0xff]   ;;  %v3715_v48 = vld [vmem:[#allocation3 + $0x60] ss:$8 sps:$4 sm:$0xff]  }
 0x795   : > { %v1848_v40 = vsel %vm466_vm0, %v1826_v35, %v1840_v37  ;;  %v1847_v43 = vsel %vm466_vm0, %v1824_v20, %v1839_v38  ;;  %2374 = vmatprep.subr.bf16.mxu0 %v3713_v44  ;;  %v3728_v20 = vld [vmem:[#allocation3 + $0x4] ss:$8 sps:$4 sm:$0xff]  }
 0x796   : > { %1864 = vst.msk [vmem:[#allocation3 + $0x48] sm:$0xff] %vm4405_vm12, %v1848_v40  ;;  %1863 = vst.msk [vmem:[#allocation3 + $0x40] sm:$0xff] %vm4405_vm12, %v1847_v43  ;;  %v1962_v45 = vpop.permute.xlu1 %1961  ;;  %v1960_v46 = vpop.permute.xlu0 %1959  ;;  %2375 = vmatpush1.bf16.msra.mxu0 %v3715_v48  ;;  %v3730_v43 = vld [vmem:[#allocation3] ss:$8 sps:$4 sm:$0xff]  }
 0x797   : > { %v1972_v49 = vrot.slane %v1962_v45, 4  ;;  %v1971_v50 = vrot.slane %v1960_v46, 4 }
 0x799   : > { %v1980_v52 = vsel %vm536_vm2, %v1962_v45, %v1972_v49  ;;  %v1979_v42 = vsel %vm536_vm2, %v1960_v46, %v1971_v50  ;;  %v3716_v53 = vld [vmem:[#allocation3 + $0x54] ss:$8 sps:$4 sm:$0xff]   ;;  %v3718_v57 = vld [vmem:[#allocation3 + $0x50] ss:$8 sps:$4 sm:$0xff]  }
 0x79a   : > { %1996 = vst.msk [vmem:[#allocation3 + $0xe8] sm:$0xff] %vm4405_vm12, %v1980_v52  ;;  %1995 = vst.msk [vmem:[#allocation3 + $0xe0] sm:$0xff] %vm4405_vm12, %v1979_v42  ;;  %v1958_v54 = vpop.permute.xlu1 %1957  ;;  %v1956_v55 = vpop.permute.xlu0 %1955  ;;  %2376 = vmatprep.subr.bf16.mxu0 %v3716_v53 }
 0x79b   : > { %v1970_v51 = vrot.slane %v1958_v54, 4  ;;  %v1969_v59 = vrot.slane %v1956_v55, 4  ;;  %2377 = vmatpush1.bf16.msra.mxu0 %v3718_v57 }
 0x79d   : > { %v1978_v39 = vsel %vm536_vm2, %v1958_v54, %v1970_v51  ;;  %v1977_v61 = vsel %vm536_vm2, %v1956_v55, %v1969_v59  ;;  %v3719_v62 = vld [vmem:[#allocation3 + $0x44] ss:$8 sps:$4 sm:$0xff]   ;;  %v3721_v1 = vld [vmem:[#allocation3 + $0x40] ss:$8 sps:$4 sm:$0xff]  }
 0x79e   : > { %1994 = vst.msk [vmem:[#allocation3 + $0xd8] sm:$0xff] %vm4405_vm12, %v1978_v39  ;;  %1993 = vst.msk [vmem:[#allocation3 + $0xd0] sm:$0xff] %vm4405_vm12, %v1977_v61  ;;  %v1954_v63 = vpop.permute.xlu1 %1953  ;;  %v1952_v0 = vpop.permute.xlu0 %1951  ;;  %2378 = vmatprep.subr.bf16.mxu0 %v3719_v62 }
 0x79f   : > { %v1968_v2 = vrot.slane %v1954_v63, 4  ;;  %v1967_v6 = vrot.slane %v1952_v0, 4  ;;  %2379 = vmatpush1.bf16.msra.mxu0 %v3721_v1 }
 0x7a0   : > { %2380 = vmatprep.subr.bf16.mxu0 %v3722_v11 }
 0x7a1   : > { %v1976_v12 = vsel %vm536_vm2, %v1954_v63, %v1968_v2  ;;  %v1975_v13 = vsel %vm536_vm2, %v1952_v0, %v1967_v6  ;;  %v3736_v55 = vld [vmem:[#allocation3 + $0xe4] ss:$8 sps:$4 sm:$0xff]   ;;  %v3734_v61 = vld [vmem:[#allocation3 + $0xe0] ss:$8 sps:$4 sm:$0xff]  }
 0x7a2   : > { %1992 = vst.msk [vmem:[#allocation3 + $0xc8] sm:$0xff] %vm4405_vm12, %v1976_v12  ;;  %1991 = vst.msk [vmem:[#allocation3 + $0xc0] sm:$0xff] %vm4405_vm12, %v1975_v13  ;;  %v1966_v14 = vpop.permute.xlu1 %1965  ;;  %v1964_v47 = vpop.permute.xlu0 %1963 }
 0x7a3   : > { %v1974_v16 = vrot.slane %v1966_v14, 4  ;;  %v1973_v17 = vrot.slane %v1964_v47, 4  ;;  %2381 = vmatpush1.bf16.msra.mxu0 %v3381_v15 }
 0x7a4   : > { %2382 = vmatprep.subr.bf16.mxu0 %v3724_v26 }
 0x7a5   : > { %v1982_v27 = vsel %vm536_vm2, %v1966_v14, %v1974_v16  ;;  %v1981_v28 = vsel %vm536_vm2, %v1964_v47, %v1973_v17  ;;  %v3739_v0 = vld [vmem:[#allocation3 + $0xd4] ss:$8 sps:$4 sm:$0xff]   ;;  %v3737_v41 = vld [vmem:[#allocation3 + $0xd0] ss:$8 sps:$4 sm:$0xff]  }
 0x7a6   : > { %1998 = vst.msk [vmem:[#allocation3 + $0xf8] sm:$0xff] %vm4405_vm12, %v1982_v27  ;;  %1997 = vst.msk [vmem:[#allocation3 + $0xf0] sm:$0xff] %vm4405_vm12, %v1981_v28  ;;  %v1898_v29 = vpop.permute.xlu1 %1897  ;;  %v1896_v30 = vpop.permute.xlu0 %1895 }
 0x7a7   : > { %v1908_v9 = vrot.slane %v1898_v29, 4  ;;  %v1907_v10 = vrot.slane %v1896_v30, 4  ;;  %2383 = vmatpush1.bf16.msra.mxu0 %v3379_v24 }
 0x7a8   : > { %2384 = vmatprep.subr.bf16.mxu0 %v3726_v31 }
 0x7a9   : > { %v1916_v7 = vsel %vm501_vm1, %v1898_v29, %v1908_v9  ;;  %v1915_v23 = vsel %vm501_vm1, %v1896_v30, %v1907_v10  ;;  %v3742_v13 = vld [vmem:[#allocation3 + $0xc4] ss:$8 sps:$4 sm:$0xff]   ;;  %v3740_v17 = vld [vmem:[#allocation3 + $0xc0] ss:$8 sps:$4 sm:$0xff]  }
 0x7aa   : > { %1932 = vst.msk [vmem:[#allocation3 + $0xa8] sm:$0xff] %vm4405_vm12, %v1916_v7  ;;  %1931 = vst.msk [vmem:[#allocation3 + $0xa0] sm:$0xff] %vm4405_vm12, %v1915_v23  ;;  %v2026_v32 = vpop.permute.xlu1 %2025  ;;  %v2024_v33 = vpop.permute.xlu0 %2023 }
 0x7ab   : > { %v2036_v4 = vrot.slane %v2026_v32, 4  ;;  %v2035_v35 = vrot.slane %v2024_v33, 4  ;;  %2385 = vmatpush1.bf16.msra.mxu0 %v3377_v34 }
 0x7ac   : > { %2386 = vmatprep.subr.bf16.mxu0 %v3728_v20 }
 0x7ad   : > { %v2044_v36 = vsel %vm571_vm3, %v2026_v32, %v2036_v4  ;;  %v2043_v37 = vsel %vm571_vm3, %v2024_v33, %v2035_v35  ;;  %v3733_v46 = vld [vmem:[#allocation3 + $0xf4] ss:$8 sps:$4 sm:$0xff]   ;;  %v3731_v42 = vld [vmem:[#allocation3 + $0xf0] ss:$8 sps:$4 sm:$0xff]  }
 0x7ae   : > { %2060 = vst.msk [vmem:[#allocation3 + $0x128] sm:$0xff] %vm4405_vm12, %v2044_v36  ;;  %2059 = vst.msk [vmem:[#allocation3 + $0x120] sm:$0xff] %vm4405_vm12, %v2043_v37  ;;  %v1894_v38 = vpop.permute.xlu1 %1893  ;;  %v1892_v40 = vpop.permute.xlu0 %1891 }
 0x7af   : > { %v1906_v44 = vrot.slane %v1894_v38, 4  ;;  %v1905_v45 = vrot.slane %v1892_v40, 4  ;;  %2387 = vmatpush1.bf16.msra.mxu0 %v3730_v43 }
 0x7b0   : > { %2388 = vmatprep.subr.bf16.mxu0 %v3733_v46  ;;  %v3771_v46 = vld [vmem:[%s4772_s4 + $0x1c] ss:$12 sps:$4 sm:$0xff]  }
 0x7b1   : > { %v1914_v48 = vsel %vm501_vm1, %v1894_v38, %v1906_v44  ;;  %v1913_v49 = vsel %vm501_vm1, %v1892_v40, %v1905_v45  ;;  %v3751_v31 = vld [vmem:[#allocation3 + $0xa4] ss:$8 sps:$4 sm:$0xff]   ;;  %v3749_v33 = vld [vmem:[#allocation3 + $0xa0] ss:$8 sps:$4 sm:$0xff]  }
 0x7b2   : > { %1930 = vst.msk [vmem:[#allocation3 + $0x98] sm:$0xff] %vm4405_vm12, %v1914_v48  ;;  %1929 = vst.msk [vmem:[#allocation3 + $0x90] sm:$0xff] %vm4405_vm12, %v1913_v49  ;;  %v1902_v50 = vpop.permute.xlu1 %1901  ;;  %v1900_v52 = vpop.permute.xlu0 %1899  ;;  %v3767_v44 = vld [vmem:[%s4772_s4] ss:$12 sps:$4 sm:$0xff]   ;;  %v3770_v45 = vld [vmem:[%s4772_s4 + $0x8] ss:$12 sps:$4 sm:$0xff]  }
 0x7b3   : > { %v1910_v53 = vrot.slane %v1902_v50, 4  ;;  %v1909_v54 = vrot.slane %v1900_v52, 4  ;;  %2389 = vmatpush2.bf16.msra.mxu0 %v3731_v42  ;;  %v3773_v48 = vld [vmem:[%s4772_s4 + $0x18] ss:$12 sps:$4 sm:$0xff]   ;;  %v3774_v49 = vld [vmem:[%s4772_s4 + $0x20] ss:$12 sps:$4 sm:$0xff]  }
 0x7b4   : > { %2390 = vmatprep.subr.bf16.mxu0 %v3736_v55 }
 0x7b5   : > { %v1918_v57 = vsel %vm501_vm1, %v1902_v50, %v1910_v53  ;;  %v1917_v51 = vsel %vm501_vm1, %v1900_v52, %v1909_v54  ;;  %v3754_v7 = vld [vmem:[#allocation3 + $0x124] ss:$8 sps:$4 sm:$0xff]   ;;  %v3752_v34 = vld [vmem:[#allocation3 + $0x120] ss:$8 sps:$4 sm:$0xff]  }
 0x7b6   : > { %1934 = vst.msk [vmem:[#allocation3 + $0xb8] sm:$0xff] %vm4405_vm12, %v1918_v57  ;;  %1933 = vst.msk [vmem:[#allocation3 + $0xb0] sm:$0xff] %vm4405_vm12, %v1917_v51  ;;  %v2030_v59 = vpop.permute.xlu1 %2029  ;;  %v2028_v39 = vpop.permute.xlu0 %2027  ;;  %v2486_v51 = vstv %s3292_s29  ;;  %s373_s29 = scalar_lea.vmem %s4777_s9, %s4797_s30 }
 0x7b7   : > { %v2038_v62 = vrot.slane %v2030_v59, 4  ;;  %v2037_v63 = vrot.slane %v2028_v39, 4  ;;  %2391 = vmatpush2.bf16.msra.mxu0 %v3734_v61 }
 0x7b8   : > { %2392 = vmatprep.subr.bf16.mxu0 %v3739_v0 }
 0x7b9   : > { %v2046_v1 = vsel %vm571_vm3, %v2030_v59, %v2038_v62  ;;  %v2045_v2 = vsel %vm571_vm3, %v2028_v39, %v2037_v63  ;;  %v3755_v4 = vld [vmem:[#allocation3 + $0x94] ss:$8 sps:$4 sm:$0xff]   ;;  %v3760_v20 = vld [vmem:[#allocation3 + $0x90] ss:$8 sps:$4 sm:$0xff]  }
 0x7ba   : > { %2062 = vst.msk [vmem:[#allocation3 + $0x138] sm:$0xff] %vm4405_vm12, %v2046_v1  ;;  %2061 = vst.msk [vmem:[#allocation3 + $0x130] sm:$0xff] %vm4405_vm12, %v2045_v2  ;;  %v2022_v6 = vpop.permute.xlu1 %2021  ;;  %v2020_v58 = vpop.permute.xlu0 %2019 }
 0x7bb   : > { %v2034_v11 = vrot.slane %v2022_v6, 4  ;;  %v2033_v12 = vrot.slane %v2020_v58, 4  ;;  %2393 = vmatpush2.bf16.msra.mxu0 %v3737_v41 }
 0x7bc   : > { %2394 = vmatprep.subr.bf16.mxu0 %v3742_v13 }
 0x7bd   : > { %v2042_v14 = vsel %vm571_vm3, %v2022_v6, %v2034_v11  ;;  %v2041_v47 = vsel %vm571_vm3, %v2020_v58, %v2033_v12  ;;  %v3745_v26 = vld [vmem:[#allocation3 + $0xb4] ss:$8 sps:$4 sm:$0xff]   ;;  %v3743_v9 = vld [vmem:[#allocation3 + $0xb0] ss:$8 sps:$4 sm:$0xff]  }
 0x7be   : > { %2058 = vst.msk [vmem:[#allocation3 + $0x118] sm:$0xff] %vm4405_vm12, %v2042_v14  ;;  %2057 = vst.msk [vmem:[#allocation3 + $0x110] sm:$0xff] %vm4405_vm12, %v2041_v47  ;;  %v1890_v15 = vpop.permute.xlu1 %1889  ;;  %v1888_v16 = vpop.permute.xlu0 %1887 }
 0x7bf   : > { %v1904_v22 = vrot.slane %v1890_v15, 4  ;;  %v1903_v25 = vrot.slane %v1888_v16, 4  ;;  %2395 = vmatpush2.bf16.msra.mxu0 %v3740_v17 }
 0x7c0   : > { %2396 = vmatprep.subr.bf16.mxu0 %v3745_v26 }
 0x7c1   : > { %v1912_v27 = vsel %vm501_vm1, %v1890_v15, %v1904_v22  ;;  %v1911_v28 = vsel %vm501_vm1, %v1888_v16, %v1903_v25  ;;  %v3746_v29 = vld [vmem:[#allocation3 + $0x130] ss:$8 sps:$4 sm:$0xff]   ;;  %v3748_v10 = vld [vmem:[#allocation3 + $0x134] ss:$8 sps:$4 sm:$0xff]  }
 0x7c2   : > { %1928 = vst.msk [vmem:[#allocation3 + $0x88] sm:$0xff] %vm4405_vm12, %v1912_v27  ;;  %1927 = vst.msk [vmem:[#allocation3 + $0x80] sm:$0xff] %vm4405_vm12, %v1911_v28  ;;  %v2018_v30 = vpop.permute.xlu1 %2017  ;;  %v2016_v24 = vpop.permute.xlu0 %2015  ;;  %2433 = vmatprep.subr.bf16.mxu1 %v3748_v10 }
 0x7c3   : > { %v2032_v8 = vrot.slane %v2018_v30, 4  ;;  %v2031_v19 = vrot.slane %v2016_v24, 4  ;;  %2397 = vmatpush2.bf16.msra.mxu0 %v3743_v9  ;;  %2434 = vmatpush1.bf16.msra.mxu1 %v3746_v29 }
 0x7c4   : > { %2398 = vmatprep.subr.bf16.mxu0 %v3751_v31  ;;  %2435 = vmatprep.subr.bf16.mxu1 %v3754_v7 }
 0x7c5   : > { %v2040_v23 = vsel %vm571_vm3, %v2018_v30, %v2032_v8  ;;  %v2039_v32 = vsel %vm571_vm3, %v2016_v24, %v2031_v19  ;;  %v3759_v35 = vld [vmem:[#allocation3 + $0x114] ss:$8 sps:$4 sm:$0xff]   ;;  %v3757_v36 = vld [vmem:[#allocation3 + $0x110] ss:$8 sps:$4 sm:$0xff]  }
 0x7c6   : > { %2056 = vst.msk [vmem:[#allocation3 + $0x108] sm:$0xff] %vm4405_vm12, %v2040_v23  ;;  %2055 = vst.msk [vmem:[#allocation3 + $0x100] sm:$0xff] %vm4405_vm12, %v2039_v32 }
 0x7c7   : > { %2399 = vmatpush2.bf16.msra.mxu0 %v3749_v33  ;;  %2436 = vmatpush1.bf16.msra.mxu1 %v3752_v34 }
 0x7c8   : > { %2400 = vmatprep.subr.bf16.mxu0 %v3755_v4  ;;  %2437 = vmatprep.subr.bf16.mxu1 %v3759_v35 }
 0x7c9   : > { %v3761_v37 = vld [vmem:[#allocation3 + $0x84] ss:$8 sps:$4 sm:$0xff]   ;;  %v3766_v43 = vld [vmem:[#allocation3 + $0x80] ss:$8 sps:$4 sm:$0xff]  }
 0x7cb   : > { %2401 = vmatpush2.bf16.msra.mxu0 %v3760_v20  ;;  %2438 = vmatpush1.bf16.msra.mxu1 %v3757_v36 }
 0x7cc   : > { %2402 = vmatprep.subr.bf16.mxu0 %v3761_v37 }
 0x7cd   : > { %v3763_v38 = vld [vmem:[#allocation3 + $0x100] ss:$8 sps:$4 sm:$0xff]   ;;  %v3765_v40 = vld [vmem:[#allocation3 + $0x104] ss:$8 sps:$4 sm:$0xff]  }
 0x7ce   : > { %2439 = vmatprep.subr.bf16.mxu1 %v3765_v40 }
 0x7cf   : > { %2403 = vmatpush2.bf16.msra.mxu0 %v3766_v43  ;;  %2440 = vmatpush1.bf16.msra.mxu1 %v3763_v38  ;;  %v2133_v50 = vpop.permute.xlu1 %2132  ;;  %v2128_v52 = vpop.permute.xlu0 %2127 }
 0x7d2   : > { %2405 = vmatmul.mubr.bf16.vlgmr.msra.gmra.mxu0 %v3767_v44  ;;  %3415 = vmatmul.mubr.msk.bf16.vlgmr.msra.gmra.mxu1 %vm2365_vm7, %v3770_v45 }
 0x7d3   : > { %2414 = vmatprep.mubr.bf16.mxu0 %v3771_v46  ;;  %2467 = vmatprep.mubr.bf16.mxu1 %v3859_v5  ;;  %v2118_v42 = vpop.permute.xlu1 %2117  ;;  %v2123_v5 = vpop.permute.xlu0 %2122 }
 0x7da   : > { %2415 = vmatmul.mubr.bf16.gmra.mxu0 %v3773_v48  ;;  %3416 = vmatmul.mubr.msk.bf16.gmra.mxu1 %vm2365_vm7, %v3774_v49 }
 0x892   : > { %v2406_v53 = vpop.f32.mrf.mxu0  ;;  %v2459_v54 = vpop.f32.mrf.mxu1 }
 0x893   : > { %v2407_v55 = vadd.f32 %v2406_v53, %v2118_v42 }
 0x894   : > { %v2408_v57 = vpop.f32.mrf.mxu0  ;;  %v2461_v59 = vpop.f32.mrf.mxu1 }
 0x895   : > { %v2409_v39 = vadd.f32 %v2408_v57, %v2118_v42  ;;  %v2460_v61 = vadd.f32 %v2459_v54, %v2407_v55 }
 0x896   : > { %v2410_v62 = vpop.f32.mrf.mxu0  ;;  %v2463_v63 = vpop.f32.mrf.mxu1 }
 0x897   : > { %v2462_v0 = vadd.f32 %v2461_v59, %v2409_v39  ;;  %v2487_v1 = vmul.f32 %v2486_v51, %v2460_v61  ;;  %v2411_v2 = vadd.f32 %v2410_v62, %v2123_v5  ;;  %vm2478_vm14 = vcmp.gt.f32.partialorder %v2460_v61, 0.0 }
 0x898   : > { %v2412_v6 = vpop.f32.mrf.mxu0  ;;  %v2465_v58 = vpop.f32.mrf.mxu1 }
 0x899   : > { %vm2479_vm6 = vcmp.gt.f32.partialorder %v2462_v0, 0.0  ;;  %v2488_v41 = vmul.f32 %v2486_v51, %v2462_v0  ;;  %v2413_v11 = vadd.f32 %v2412_v6, %v2123_v5  ;;  %v2464_v13 = vadd.f32 %v2463_v63, %v2411_v2 }
 0x89a   : > { %v2416_v12 = vpop.f32.mrf.mxu0  ;;  %v2469_v47 = vpop.f32.mrf.mxu1  ;;  %v2495_v15 = vsel %vm2478_vm14, %v2460_v61, %v2487_v1 }
 0x89b   : > { %v2417_v14 = vadd.f32 %v2416_v12, %v2128_v52  ;;  %v2496_v16 = vsel %vm2479_vm6, %v2462_v0, %v2488_v41  ;;  %v2466_v17 = vadd.f32 %v2465_v58, %v2413_v11  ;;  %vm2480_vm8 = vcmp.gt.f32.partialorder %v2464_v13, 0.0 }
 0x89c   : > { %v2418_v22 = vpop.f32.mrf.mxu0  ;;  %v3474_v25 = vpack.c.bf16 %v2496_v16, %v2495_v15  ;;  %v2489_v26 = vmul.f32 %v2486_v51, %v2464_v13  ;;  %v2471_v29 = vpop.f32.mrf.mxu1  ;;  %vm2615_vm6 = vcmask 982016  }
 0x89d   : > { %v2419_v27 = vadd.f32 %v2418_v22, %v2128_v52  ;;  %v2470_v28 = vadd.f32 %v2469_v47, %v2417_v14  ;;  %vm2481_vm9 = vcmp.gt.f32.partialorder %v2466_v17, 0.0  ;;  %v2490_v30 = vmul.f32 %v2486_v51, %v2466_v17  ;;  %v3114_v22 = vld [vmem:[%s4775_s7] sm:$0x1] }
 0x89e   : > { %v2420_v24 = vpop.f32.mrf.mxu0  ;;  %2527 = vst.msk [vmem:[#allocation2] sm:$0xff] %vm4405_vm12, %v3474_v25  ;;  %v2497_v9 = vsel %vm2480_vm8, %v2464_v13, %v2489_v26  ;;  %v2473_v31 = vpop.f32.mrf.mxu1  ;;  %vm2632_vm8 = vcmask 31748  }
 0x89f   : > { %v2491_v10 = vmul.f32 %v2486_v51, %v2470_v28  ;;  %v2421_v8 = vadd.f32 %v2420_v24, %v2133_v50  ;;  %v2472_v19 = vadd.f32 %v2471_v29, %v2419_v27  ;;  %vm2482_vm10 = vcmp.gt.f32.partialorder %v2470_v28, 0.0 }
 0x8a0   : > { %v2498_v7 = vsel %vm2481_vm9, %v2466_v17, %v2490_v30  ;;  %v2422_v23 = vpop.f32.mrf.mxu0  ;;  %v3637_v32 = vpack.i.bf16 %v2497_v9, %v2495_v15  ;;  %v2475_v37 = vpop.f32.mrf.mxu1  ;;  %vm4633_vm9 = vmor %vm2632_vm8, %vm624_vm4 }
 0x8a1   : > { %vm2483_vm11 = vcmp.gt.f32.partialorder %v2472_v19, 0.0  ;;  %v2492_v33 = vmul.f32 %v2486_v51, %v2472_v19  ;;  %v3475_v34 = vpack.c.bf16 %v2498_v7, %v2497_v9  ;;  %v2474_v4 = vadd.f32 %v2473_v31, %v2421_v8 }
 0x8a2   : > { %v2423_v35 = vadd.f32 %v2422_v23, %v2133_v50  ;;  %3638 = vrot.lane.b32.xlu0 %v3637_v32, %s3871_s12  ;;  %v2499_v20 = vsel %vm2482_vm10, %v2470_v28, %v2491_v10  ;;  %v3807_v28 = vld [vmem:[%s4773_s5 + $0x4] ss:$8 sps:$4 sm:$0xff]  }
 0x8a3   : > { %v2500_v36 = vsel %vm2483_vm11, %v2472_v19, %v2492_v33  ;;  %2528 = vst.msk [vmem:[#allocation2 + $0x8] sm:$0xff] %vm4405_vm12, %v3475_v34  ;;  %vm2484_vm7 = vcmp.gt.f32.partialorder %v2474_v4, 0.0  ;;  %v2493_v40 = vmul.f32 %v2486_v51, %v2474_v4  ;;  %3447 = vmatprep.mubr.msk.bf16.mxu1 %vm1413_vm15, %v3807_v28  ;;  %vm3028_vm11 = vcmask 965632  }
 0x8a4   : > { %v3476_v38 = vpack.c.bf16 %v2500_v36, %v2499_v20  ;;  %v2476_v43 = vadd.f32 %v2475_v37, %v2423_v35 }
 0x8a5   : > { %v2501_v44 = vsel %vm2484_vm7, %v2474_v4, %v2493_v40 }
 0x8a6   : > { %2529 = vst.msk [vmem:[#allocation2 + $0x10] sm:$0xff] %vm4405_vm12, %v3476_v38  ;;  %vm2485_vm14 = vcmp.gt.f32.partialorder %v2476_v43, 0.0  ;;  %v2494_v45 = vmul.f32 %v2486_v51, %v2476_v43  ;;  %v3632_v46 = vpack.i.bf16 %v2501_v44, %v2499_v20 }
 0x8a8   : > { %v2502_v48 = vsel %vm2485_vm14, %v2476_v43, %v2494_v45  ;;  %3633 = vrot.lane.b32.xlu1 %v3632_v46, %s3871_s12 }
 0x8a9   : > { %v3477_v49 = vpack.c.bf16 %v2502_v48, %v2501_v44 }
 0x8ab   : > { %2530 = vst.msk [vmem:[#allocation2 + $0x18] sm:$0xff] %vm4405_vm12, %v3477_v49 }
 0x914   : > { %v3639_v50 = vpop.permute.xlu0 %3638 }
 0x915   : > { %v3641_v52 = vunpack.i.h.bf16 %v3639_v50  ;;  %v3640_v42 = vunpack.i.l.bf16 %v3639_v50 }
 0x917   : > { %v2577_v51 = vsel %vm4062_vm13, %v3641_v52, 0.0  ;;  %v2575_v59 = vsel %vm4062_vm13, %v3640_v42, 0.0 }
 0x918   : > { %v2583_v63 = vpack.c.bf16 %v2577_v51, %v2575_v59 }
 0x91a   : > { %v3634_v53 = vpop.permute.xlu1 %3633  ;;  %v3421_v0 = vcombine.low %v2583_v63, %v3867_v3  ;;  %v3422_v1 = vcombine.high %v2583_v63, %v3867_v3 }
 0x91b   : > { %v3636_v54 = vunpack.i.h.bf16 %v3634_v53  ;;  %v3635_v55 = vunpack.i.l.bf16 %v3634_v53 }
 0x91d   : > { %v2581_v57 = vsel %vm4062_vm13, %v3636_v54, 0.0  ;;  %v2579_v5 = vsel %vm4062_vm13, %v3635_v55, 0.0 }
 0x91e   : > { %v2585_v39 = vpack.c.bf16 %v2581_v57, %v2579_v5 }
 0x920   : > { %v3423_v61 = vcombine.low %v2585_v39, %v3867_v3  ;;  %v3424_v62 = vcombine.high %v2585_v39, %v3867_v3 }
 0x922   : > { %2607 = vrot.lane.b32.xlu1 %v3423_v61, %s3872_s18  ;;  %2609 = vrot.lane.b32.xlu0 %v3424_v62, %s3872_s18 }
 0x926   : > { %2605 = vrot.lane.b32.xlu0 %v3422_v1, %s3872_s18  ;;  %2603 = vrot.lane.b32.xlu1 %v3421_v0, %s3872_s18 }
 0x994   : > { %v2608_v2 = vpop.permute.xlu1 %2607  ;;  %v2610_v6 = vpop.permute.xlu0 %2609 }
 0x995   : > { %v2613_v58 = vrot.slane %v2608_v2, 4  ;;  %v2614_v41 = vrot.slane %v2610_v6, 4 }
 0x997   : > { %v2618_v11 = vsel %vm2615_vm6, %v2608_v2, %v2613_v58  ;;  %v2619_v12 = vsel %vm2615_vm6, %v2610_v6, %v2614_v41 }
 0x998   : > { %2626 = vst.msk [vmem:[#allocation2 + $0x10] sm:$0xff] %vm4405_vm12, %v2618_v11  ;;  %2627 = vst.msk [vmem:[#allocation2 + $0x18] sm:$0xff] %vm4405_vm12, %v2619_v12  ;;  %v2606_v13 = vpop.permute.xlu0 %2605  ;;  %v2604_v14 = vpop.permute.xlu1 %2603 }
 0x999   : > { %v2612_v47 = vrot.slane %v2606_v13, 4  ;;  %v2611_v15 = vrot.slane %v2604_v14, 4 }
 0x99b   : > { %v2617_v16 = vsel %vm2615_vm6, %v2606_v13, %v2612_v47  ;;  %v2616_v17 = vsel %vm2615_vm6, %v2604_v14, %v2611_v15 }
 0x99c   : > { %2625 = vst.msk [vmem:[#allocation2 + $0x8] sm:$0xff] %vm4405_vm12, %v2617_v16  ;;  %2624 = vst.msk [vmem:[#allocation2] sm:$0xff] %vm4405_vm12, %v2616_v17 }
 0x99f   : > { %v2630_v25 = vld [vmem:[#allocation2 + $0x10] sm:$0xff]  ;;  %v2631_v26 = vld [vmem:[#allocation2 + $0x18] sm:$0xff] }
 0x9a0   : > { %2636 = vst.msk [vmem:[#allocation3 + $0x10] sm:$0xff] %vm4633_vm9, %v2630_v25  ;;  %2637 = vst.msk [vmem:[#allocation3 + $0x18] sm:$0xff] %vm4633_vm9, %v2631_v26  ;;  %2716 = vrot.lane.b32.xlu0 %v2631_v26, %s3864_s16  ;;  %2714 = vrot.lane.b32.xlu1 %v2630_v25, %s3864_s16 }
 0x9a3   : > { %v2629_v27 = vld [vmem:[#allocation2 + $0x8] sm:$0xff]  ;;  %v2628_v56 = vld [vmem:[#allocation2] sm:$0xff] }
 0x9a4   : > { %2635 = vst.msk [vmem:[#allocation3 + $0x8] sm:$0xff] %vm4633_vm9, %v2629_v27  ;;  %2634 = vst.msk [vmem:[#allocation3] sm:$0xff] %vm4633_vm9, %v2628_v56  ;;  %2712 = vrot.lane.b32.xlu0 %v2629_v27, %s3864_s16  ;;  %2710 = vrot.lane.b32.xlu1 %v2628_v56, %s3864_s16 }
 0x9a7   : > { %v3793_v28 = vld [vmem:[#allocation3 + $0x14] ss:$8 sps:$4 sm:$0xff]  }
 0x9a8   : > { %2684 = vrot.lane.b32.xlu0 %v2631_v26, %s3863_s15  ;;  %2682 = vrot.lane.b32.xlu1 %v2630_v25, %s3863_s15 }
 0x9ac   : > { %2680 = vrot.lane.b32.xlu0 %v2629_v27, %s3863_s15  ;;  %2678 = vrot.lane.b32.xlu1 %v2628_v56, %s3863_s15 }
 0x9b0   : > { %2652 = vrot.lane.b32.xlu0 %v2631_v26, %s3862_s14  ;;  %2650 = vrot.lane.b32.xlu1 %v2630_v25, %s3862_s14 }
 0x9b4   : > { %2648 = vrot.lane.b32.xlu0 %v2629_v27, %s3862_s14  ;;  %2646 = vrot.lane.b32.xlu1 %v2628_v56, %s3862_s14 }
 0x9b8   : > { %2748 = vrot.lane.b32.xlu0 %v2631_v26, %s3865_s17  ;;  %2746 = vrot.lane.b32.xlu1 %v2630_v25, %s3865_s17 }
 0x9bc   : > { %2744 = vrot.lane.b32.xlu0 %v2629_v27, %s3865_s17  ;;  %2742 = vrot.lane.b32.xlu1 %v2628_v56, %s3865_s17 }
 0x9c0   : > { %2797 = vperm.xlu0 %3643, %v4486_v18   ;;  %2792 = vperm.xlu1 %3642, %v4481_v21  }
 0xa12   : > { %v2717_v29 = vpop.permute.xlu0 %2716  ;;  %v2715_v30 = vpop.permute.xlu1 %2714 }
 0xa13   : > { %v2721_v24 = vrot.slane %v2717_v29, 4  ;;  %v2720_v9 = vrot.slane %v2715_v30, 4 }
 0xa15   : > { %v2725_v10 = vsel %vm536_vm2, %v2717_v29, %v2721_v24  ;;  %v2724_v8 = vsel %vm536_vm2, %v2715_v30, %v2720_v9  ;;  %v3795_v29 = vld [vmem:[#allocation3 + $0x10] ss:$8 sps:$4 sm:$0xff]   ;;  %v3796_v30 = vld [vmem:[#allocation3 + $0x4] ss:$8 sps:$4 sm:$0xff]   ;;  %v3798_v24 = vld [vmem:[#allocation3] ss:$8 sps:$4 sm:$0xff]  }
 0xa16   : > { %2733 = vst.msk [vmem:[#allocation3 + $0x78] sm:$0xff] %vm4633_vm9, %v2725_v10  ;;  %2732 = vst.msk [vmem:[#allocation3 + $0x70] sm:$0xff] %vm4633_vm9, %v2724_v8  ;;  %v2713_v21 = vpop.permute.xlu0 %2712  ;;  %v2711_v18 = vpop.permute.xlu1 %2710 }
 0xa17   : > { %v2719_v19 = vrot.slane %v2713_v21, 4  ;;  %v2718_v31 = vrot.slane %v2711_v18, 4 }
 0xa19   : > { %v2723_v7 = vsel %vm536_vm2, %v2713_v21, %v2719_v19  ;;  %v2722_v23 = vsel %vm536_vm2, %v2711_v18, %v2718_v31  ;;  %v3805_v18 = vld [vmem:[%s4773_s5] ss:$8 sps:$4 sm:$0xff]  }
 0xa1a   : > { %2731 = vst.msk [vmem:[#allocation3 + $0x68] sm:$0xff] %vm4633_vm9, %v2723_v7  ;;  %2730 = vst.msk [vmem:[#allocation3 + $0x60] sm:$0xff] %vm4633_vm9, %v2722_v23  ;;  %v2685_v32 = vpop.permute.xlu0 %2684  ;;  %v2683_v33 = vpop.permute.xlu1 %2682  ;;  %v2959_v7 = vstv %s3293_s23 }
 0xa1b   : > { %v2689_v34 = vrot.slane %v2685_v32, 4  ;;  %v2688_v4 = vrot.slane %v2683_v33, 4 }
 0xa1d   : > { %v2693_v35 = vsel %vm501_vm1, %v2685_v32, %v2689_v34  ;;  %v2692_v20 = vsel %vm501_vm1, %v2683_v33, %v2688_v4  ;;  %v3775_v36 = vld [vmem:[#allocation3 + $0x70] ss:$8 sps:$4 sm:$0xff]   ;;  %v3777_v40 = vld [vmem:[#allocation3 + $0x74] ss:$8 sps:$4 sm:$0xff]  }
 0xa1e   : > { %2701 = vst.msk [vmem:[#allocation3 + $0x58] sm:$0xff] %vm4633_vm9, %v2693_v35  ;;  %2700 = vst.msk [vmem:[#allocation3 + $0x50] sm:$0xff] %vm4633_vm9, %v2692_v20  ;;  %v2681_v37 = vpop.permute.xlu0 %2680  ;;  %v2679_v38 = vpop.permute.xlu1 %2678  ;;  %2912 = vmatprep.subr.bf16.mxu1 %v3777_v40 }
 0xa1f   : > { %v2687_v43 = vrot.slane %v2681_v37, 4  ;;  %v2686_v44 = vrot.slane %v2679_v38, 4  ;;  %2913 = vmatpush1.bf16.msra.mxu1 %v3775_v36 }
 0xa21   : > { %v2691_v45 = vsel %vm501_vm1, %v2681_v37, %v2687_v43  ;;  %v2690_v46 = vsel %vm501_vm1, %v2679_v38, %v2686_v44  ;;  %v3778_v48 = vld [vmem:[#allocation3 + $0x60] ss:$8 sps:$4 sm:$0xff]   ;;  %v3780_v52 = vld [vmem:[#allocation3 + $0x64] ss:$8 sps:$4 sm:$0xff]  }
 0xa22   : > { %2699 = vst.msk [vmem:[#allocation3 + $0x48] sm:$0xff] %vm4633_vm9, %v2691_v45  ;;  %2698 = vst.msk [vmem:[#allocation3 + $0x40] sm:$0xff] %vm4633_vm9, %v2690_v46  ;;  %v2653_v49 = vpop.permute.xlu0 %2652  ;;  %v2651_v50 = vpop.permute.xlu1 %2650  ;;  %2914 = vmatprep.subr.bf16.mxu1 %v3780_v52 }
 0xa23   : > { %v2657_v42 = vrot.slane %v2653_v49, 4  ;;  %v2656_v53 = vrot.slane %v2651_v50, 4  ;;  %2915 = vmatpush1.bf16.msra.mxu1 %v3778_v48 }
 0xa25   : > { %v2661_v54 = vsel %vm466_vm0, %v2653_v49, %v2657_v42  ;;  %v2660_v55 = vsel %vm466_vm0, %v2651_v50, %v2656_v53  ;;  %v3781_v57 = vld [vmem:[#allocation3 + $0x50] ss:$8 sps:$4 sm:$0xff]   ;;  %v3783_v59 = vld [vmem:[#allocation3 + $0x54] ss:$8 sps:$4 sm:$0xff]  }
 0xa26   : > { %2669 = vst.msk [vmem:[#allocation3 + $0x38] sm:$0xff] %vm4633_vm9, %v2661_v54  ;;  %2668 = vst.msk [vmem:[#allocation3 + $0x30] sm:$0xff] %vm4633_vm9, %v2660_v55  ;;  %v2649_v5 = vpop.permute.xlu0 %2648  ;;  %v2647_v51 = vpop.permute.xlu1 %2646  ;;  %2916 = vmatprep.subr.bf16.mxu1 %v3783_v59 }
 0xa27   : > { %v2655_v39 = vrot.slane %v2649_v5, 4  ;;  %v2654_v61 = vrot.slane %v2647_v51, 4  ;;  %2917 = vmatpush1.bf16.msra.mxu1 %v3781_v57 }
 0xa29   : > { %v2659_v62 = vsel %vm466_vm0, %v2649_v5, %v2655_v39  ;;  %v2658_v63 = vsel %vm466_vm0, %v2647_v51, %v2654_v61  ;;  %v3784_v0 = vld [vmem:[#allocation3 + $0x44] ss:$8 sps:$4 sm:$0xff]   ;;  %v3786_v6 = vld [vmem:[#allocation3 + $0x40] ss:$8 sps:$4 sm:$0xff]  }
 0xa2a   : > { %2667 = vst.msk [vmem:[#allocation3 + $0x28] sm:$0xff] %vm4633_vm9, %v2659_v62  ;;  %2666 = vst.msk [vmem:[#allocation3 + $0x20] sm:$0xff] %vm4633_vm9, %v2658_v63  ;;  %v2749_v1 = vpop.permute.xlu0 %2748  ;;  %v2747_v2 = vpop.permute.xlu1 %2746  ;;  %2918 = vmatprep.subr.bf16.mxu1 %v3784_v0 }
 0xa2b   : > { %v2753_v58 = vrot.slane %v2749_v1, 4  ;;  %v2752_v41 = vrot.slane %v2747_v2, 4  ;;  %2919 = vmatpush1.bf16.msra.mxu1 %v3786_v6 }
 0xa2d   : > { %v2757_v11 = vsel %vm571_vm3, %v2749_v1, %v2753_v58  ;;  %v2756_v12 = vsel %vm571_vm3, %v2747_v2, %v2752_v41  ;;  %v3787_v13 = vld [vmem:[#allocation3 + $0x34] ss:$8 sps:$4 sm:$0xff]   ;;  %v3789_v15 = vld [vmem:[#allocation3 + $0x30] ss:$8 sps:$4 sm:$0xff]   ;;  %v3877_v41 = vmov 5  }
 0xa2e   : > { %2765 = vst.msk [vmem:[#allocation3 + $0x98] sm:$0xff] %vm4633_vm9, %v2757_v11  ;;  %2764 = vst.msk [vmem:[#allocation3 + $0x90] sm:$0xff] %vm4633_vm9, %v2756_v12  ;;  %v2745_v14 = vpop.permute.xlu0 %2744  ;;  %v2743_v47 = vpop.permute.xlu1 %2742  ;;  %2920 = vmatprep.subr.bf16.mxu1 %v3787_v13  ;;  %3649 = vset.pattern.permute.xlu1 %v3877_v41 }
 0xa2f   : > { %v2751_v16 = vrot.slane %v2745_v14, 4  ;;  %v2750_v17 = vrot.slane %v2743_v47, 4  ;;  %2921 = vmatpush1.bf16.msra.mxu1 %v3789_v15  ;;  %3650 = vset.pattern.permute.xlu0 %v3877_v41 }
 0xa31   : > { %v2755_v25 = vsel %vm571_vm3, %v2745_v14, %v2751_v16  ;;  %v2754_v26 = vsel %vm571_vm3, %v2743_v47, %v2750_v17  ;;  %v3790_v27 = vld [vmem:[#allocation3 + $0x24] ss:$8 sps:$4 sm:$0xff]   ;;  %v3792_v56 = vld [vmem:[#allocation3 + $0x20] ss:$8 sps:$4 sm:$0xff]  }
 0xa32   : > { %2763 = vst.msk [vmem:[#allocation3 + $0x88] sm:$0xff] %vm4633_vm9, %v2755_v25  ;;  %2762 = vst.msk [vmem:[#allocation3 + $0x80] sm:$0xff] %vm4633_vm9, %v2754_v26  ;;  %2922 = vmatprep.subr.bf16.mxu1 %v3790_v27 }
 0xa33   : > { %2923 = vmatpush1.bf16.msra.mxu1 %v3792_v56 }
 0xa34   : > { %2924 = vmatprep.subr.bf16.mxu1 %v3793_v28 }
 0xa35   : > { %v3801_v9 = vld [vmem:[#allocation3 + $0x94] ss:$8 sps:$4 sm:$0xff]   ;;  %v3799_v10 = vld [vmem:[#allocation3 + $0x90] ss:$8 sps:$4 sm:$0xff]  }
 0xa37   : > { %2925 = vmatpush1.bf16.msra.mxu1 %v3795_v29 }
 0xa38   : > { %2926 = vmatprep.subr.bf16.mxu1 %v3796_v30 }
 0xa39   : > { %v3804_v8 = vld [vmem:[#allocation3 + $0x84] ss:$8 sps:$4 sm:$0xff]   ;;  %v3802_v21 = vld [vmem:[#allocation3 + $0x80] ss:$8 sps:$4 sm:$0xff]  }
 0xa3b   : > { %2927 = vmatpush1.bf16.msra.mxu1 %v3798_v24  ;;  %v2793_v19 = vpop.permute.xlu1 %2792  ;;  %v2798_v33 = vpop.permute.xlu0 %2797 }
 0xa3c   : > { %2940 = vmatprep.subr.bf16.mxu1 %v3801_v9 }
 0xa3f   : > { %2941 = vmatpush2.bf16.msra.mxu1 %v3799_v10 }
 0xa40   : > { %2942 = vmatprep.subr.bf16.mxu1 %v3804_v8 }
 0xa43   : > { %2943 = vmatpush2.bf16.msra.mxu1 %v3802_v21 }
 0xa46   : > { %2945 = vmatmul.mubr.bf16.vlgmr.msra.gmra.mxu1 %v3805_v18 }
 0xb06   : > { %v2946_v31 = vpop.f32.mrf.mxu1 }
 0xb07   : > { %v2947_v23 = vadd.f32 %v2946_v31, %v2793_v19 }
 0xb08   : > { %v2948_v32 = vpop.f32.mrf.mxu1 }
 0xb09   : > { %v2949_v34 = vadd.f32 %v2948_v32, %v2793_v19  ;;  %vm2955_vm4 = vcmp.gt.f32.partialorder %v2947_v23, 0.0  ;;  %v2960_v4 = vmul.f32 %v2959_v7, %v2947_v23 }
 0xb0a   : > { %v2950_v35 = vpop.f32.mrf.mxu1 }
 0xb0b   : > { %vm2956_vm15 = vcmp.gt.f32.partialorder %v2949_v34, 0.0  ;;  %v2961_v20 = vmul.f32 %v2959_v7, %v2949_v34  ;;  %v2951_v36 = vadd.f32 %v2950_v35, %v2798_v33  ;;  %v2964_v37 = vsel %vm2955_vm4, %v2947_v23, %v2960_v4  ;;  %v3103_v35 = vld [vmem:[%s4774_s6] sm:$0x1] }
 0xb0c   : > { %v2952_v38 = vpop.f32.mrf.mxu1 }
 0xb0d   : > { %v2965_v40 = vsel %vm2956_vm15, %v2949_v34, %v2961_v20  ;;  %vm2957_vm12 = vcmp.gt.f32.partialorder %v2951_v36, 0.0  ;;  %v2962_v43 = vmul.f32 %v2959_v7, %v2951_v36  ;;  %v2953_v44 = vadd.f32 %v2952_v38, %v2798_v33 }
 0xb0e   : > { %v3478_v45 = vpack.c.bf16 %v2965_v40, %v2964_v37 }
 0xb0f   : > { %v2966_v46 = vsel %vm2957_vm12, %v2951_v36, %v2962_v43  ;;  %vm2958_vm10 = vcmp.gt.f32.partialorder %v2953_v44, 0.0  ;;  %v2963_v48 = vmul.f32 %v2959_v7, %v2953_v44 }
 0xb10   : > { %2980 = vst.msk [vmem:[#allocation2 + $0x40] sm:$0xff] %vm4633_vm9, %v3478_v45  ;;  %v3644_v49 = vpack.i.bf16 %v2966_v46, %v2964_v37 }
 0xb11   : > { %v2967_v50 = vsel %vm2958_vm10, %v2953_v44, %v2963_v48 }
 0xb12   : > { %3645 = vrot.lane.b32.xlu1 %v3644_v49, %s3873_s24  ;;  %v3479_v52 = vpack.c.bf16 %v2967_v50, %v2966_v46 }
 0xb14   : > { %2981 = vst.msk [vmem:[#allocation2 + $0x48] sm:$0xff] %vm4633_vm9, %v3479_v52 }
 0xb84   : > { %v3646_v42 = vpop.permute.xlu1 %3645 }
 0xb85   : > { %v3648_v53 = vunpack.i.h.bf16 %v3646_v42  ;;  %v3647_v54 = vunpack.i.l.bf16 %v3646_v42 }
 0xb87   : > { %v3010_v55 = vsel %vm4062_vm13, %v3648_v53, 0.0  ;;  %v3008_v57 = vsel %vm4062_vm13, %v3647_v54, 0.0  ;;  %vm3876_vm13 = vmmov 0  }
 0xb88   : > { %v3012_v5 = vpack.c.bf16 %v3010_v55, %v3008_v57 }
 0xb8a   : > { %v3450_v51 = vcombine.low %v3012_v5, %v3867_v3  ;;  %v3451_v59 = vcombine.high %v3012_v5, %v3867_v3  ;;  %v3875_v3 = vmov 0.0  }
 0xb8b   : > { %3490 = vmatprep.subr.bf16.mxu0 %v3875_v3  ;;  %3500 = vmatprep.mubr.msk.bf16.mxu0 %vm3876_vm13, %v3875_v3 }
 0xb8c   : > { %3024 = vrot.lane.b32.xlu0 %v3451_v59, %s3874_s25  ;;  %3022 = vrot.lane.b32.xlu1 %v3450_v51, %s3874_s25 }
 0xbfe   : > { %v3025_v39 = vpop.permute.xlu0 %3024  ;;  %v3023_v61 = vpop.permute.xlu1 %3022 }
 0xbff   : > { %v3027_v62 = vrot.slane %v3025_v39, 4  ;;  %v3026_v63 = vrot.slane %v3023_v61, 4 }
 0xc01   : > { %v3030_v0 = vsel %vm3028_vm11, %v3025_v39, %v3027_v62  ;;  %v3029_v1 = vsel %vm3028_vm11, %v3023_v61, %v3026_v63 }
 0xc02   : > { %3034 = vst.msk [vmem:[#allocation2 + $0x48] sm:$0xff] %vm4633_vm9, %v3030_v0  ;;  %3033 = vst.msk [vmem:[#allocation2 + $0x40] sm:$0xff] %vm4633_vm9, %v3029_v1 }
 0xc09   : > { %v3036_v60 = vld [vmem:[#allocation2 + $0x48] sm:$0xf]  ;;  %v3035_v2 = vld [vmem:[#allocation2 + $0x40] sm:$0xf] }
 0xc0a   : > { %v3088_v6 = vld [vmem:[#allocation2 + $0x48] sm:$0xff]  ;;  %3038 = vst [vmem:[#allocation3 + $0x8] sm:$0xf] %v3036_v60  ;;  %3037 = vst [vmem:[#allocation3] sm:$0xf] %v3035_v2  ;;  %v3087_v58 = vld [vmem:[#allocation2 + $0x40] sm:$0xff] }
 0xc0b   : > { %3093 = vrot.lane.b32.xlu0 %v3088_v6, %s3865_s17  ;;  %3091 = vrot.lane.b32.xlu1 %v3087_v58, %s3865_s17 }
 0xc0f   : > { %3077 = vrot.lane.b32.xlu0 %v3088_v6, %s3864_s16  ;;  %3075 = vrot.lane.b32.xlu1 %v3087_v58, %s3864_s16  ;;  %s3294_s16 = sld [smem:[#allocation4 + $0x5]] }
 0xc11   : > { %v3812_v4 = vld [vmem:[#allocation3] ss:$8 sps:$4 sm:$0xff]  }
 0xc13   : > { %3061 = vrot.lane.b32.xlu0 %v3088_v6, %s3863_s15  ;;  %3059 = vrot.lane.b32.xlu1 %v3087_v58, %s3863_s15 }
 0xc15   : > { %v3194_v37 = vstv %s3294_s16 }
 0xc17   : > { %3045 = vrot.lane.b32.xlu0 %v3088_v6, %s3862_s14  ;;  %3043 = vrot.lane.b32.xlu1 %v3087_v58, %s3862_s14 }
 0xc1b   : > { %3117 = vperm.xlu1 %3649, %v3114_v22  }
 0xc7d   : > { %v3094_v11 = vpop.permute.xlu0 %3093  ;;  %v3092_v13 = vpop.permute.xlu1 %3091 }
 0xc7e   : > { %v3096_v12 = vrot.slane %v3094_v11, 4  ;;  %v3095_v14 = vrot.slane %v3092_v13, 4 }
 0xc80   : > { %v3098_v47 = vsel %vm571_vm3, %v3094_v11, %v3096_v12  ;;  %v3097_v15 = vsel %vm571_vm3, %v3092_v13, %v3095_v14 }
 0xc81   : > { %3102 = vst [vmem:[#allocation3 + $0x48] sm:$0xf] %v3098_v47  ;;  %v3078_v16 = vpop.permute.xlu0 %3077  ;;  %3101 = vst [vmem:[#allocation3 + $0x40] sm:$0xf] %v3097_v15  ;;  %v3076_v25 = vpop.permute.xlu1 %3075 }
 0xc82   : > { %v3080_v17 = vrot.slane %v3078_v16, 4  ;;  %v3079_v26 = vrot.slane %v3076_v25, 4 }
 0xc84   : > { %v3082_v27 = vsel %vm536_vm2, %v3078_v16, %v3080_v17  ;;  %v3081_v56 = vsel %vm536_vm2, %v3076_v25, %v3079_v26 }
 0xc85   : > { %3086 = vst [vmem:[#allocation3 + $0x38] sm:$0xf] %v3082_v27  ;;  %v3062_v28 = vpop.permute.xlu0 %3061  ;;  %3085 = vst [vmem:[#allocation3 + $0x30] sm:$0xf] %v3081_v56  ;;  %v3060_v30 = vpop.permute.xlu1 %3059 }
 0xc86   : > { %v3064_v29 = vrot.slane %v3062_v28, 4  ;;  %v3063_v24 = vrot.slane %v3060_v30, 4 }
 0xc88   : > { %v3066_v9 = vsel %vm501_vm1, %v3062_v28, %v3064_v29  ;;  %v3065_v10 = vsel %vm501_vm1, %v3060_v30, %v3063_v24  ;;  %v3808_v21 = vld [vmem:[#allocation3 + $0x40] ss:$8 sps:$4 sm:$0xff]  }
 0xc89   : > { %3070 = vst [vmem:[#allocation3 + $0x28] sm:$0xf] %v3066_v9  ;;  %v3046_v8 = vpop.permute.xlu0 %3045  ;;  %3069 = vst [vmem:[#allocation3 + $0x20] sm:$0xf] %v3065_v10  ;;  %v3044_v19 = vpop.permute.xlu1 %3043  ;;  %3491 = vmatpush3.bf16.msra.mxu0 %v3808_v21 }
 0xc8a   : > { %v3048_v18 = vrot.slane %v3046_v8, 4  ;;  %v3047_v31 = vrot.slane %v3044_v19, 4  ;;  %3492 = vmatprep.subr.bf16.mxu0 %v3875_v3 }
 0xc8c   : > { %v3050_v7 = vsel %vm466_vm0, %v3046_v8, %v3048_v18  ;;  %v3049_v23 = vsel %vm466_vm0, %v3044_v19, %v3047_v31  ;;  %v3809_v32 = vld [vmem:[#allocation3 + $0x30] ss:$8 sps:$4 sm:$0xff]  }
 0xc8d   : > { %3054 = vst [vmem:[#allocation3 + $0x18] sm:$0xf] %v3050_v7  ;;  %3053 = vst [vmem:[#allocation3 + $0x10] sm:$0xf] %v3049_v23  ;;  %3493 = vmatpush3.bf16.msra.mxu0 %v3809_v32 }
 0xc8e   : > { %3494 = vmatprep.subr.bf16.mxu0 %v3875_v3 }
 0xc90   : > { %v3810_v33 = vld [vmem:[#allocation3 + $0x20] ss:$8 sps:$4 sm:$0xff]  }
 0xc91   : > { %3495 = vmatpush3.bf16.msra.mxu0 %v3810_v33 }
 0xc92   : > { %3496 = vmatprep.subr.bf16.mxu0 %v3875_v3 }
 0xc94   : > { %v3811_v34 = vld [vmem:[#allocation3 + $0x10] ss:$8 sps:$4 sm:$0xff]  }
 0xc95   : > { %3497 = vmatpush3.bf16.msra.mxu0 %v3811_v34 }
 0xc96   : > { %3498 = vmatprep.subr.bf16.mxu0 %v3875_v3  ;;  %v3118_v20 = vpop.permute.xlu1 %3117 }
 0xc99   : > { %3499 = vmatpush3.bf16.msra.mxu0 %v3812_v4 }
 0xc9c   : > { %3501 = vmatmul.mubr.msk.bf16.vlgmr.msra.gmra.mxu0 %vm854_vm5, %v3103_v35 }
 0xd5c   : > { %v3187_v36 = vpop.f32.mrf.mxu0 }
 0xd5d   : > { %v3188_v38 = vadd.f32 %v3187_v36, %v3118_v20 }
 0xd5e   : > { %v3502_v40 = vpop.f32.mrf.mxu0 }
 0xd5f   : > { %vm3193_vm0 = vcmp.gt.f32.partialorder %v3188_v38, 0.0  ;;  %v3195_v43 = vmul.f32 %v3194_v37, %v3188_v38 }
 0xd60   : > { %v3190_v44 = vpop.f32.mrf.mxu0 }
 0xd61   : > { %v3196_v45 = vsel %vm3193_vm0, %v3188_v38, %v3195_v43 }
 0xd62   : > { %3197 = vst [vmem:[%s373_s29] sm:$0x1] %v3196_v45  ;;  %v3503_v46 = vpop.f32.mrf.mxu0 }
 0xd63 PF: > { %s20_s11 = sadd.s32 1, %s3854_s11   ;;  %s4792_s30 = smov %s3850_s10 }
 0xd64   : > { %p17_p2 = scmp.ge.s32.totalorder %s20_s11, 4   ;;  %s4793_s10 = smov %s4795_s13 }
 0xd66   :  { %19 = sbr.rel (!%p17_p2) target bundleno = 2 (0x2), region = 112 }
 0xd6b   :  { %3221 = vsyncpa [#allocation5], 1 }
 0xd6c   :  { %3223 = vsyncpa [#allocation5 + $0x1], 1 }

</bundles_post_ra>
